<compile_context>
chip_gen: v7x
topology: tpu7x:2x2x1
jax: 0.10.0
libtpu: 0.0.40
codegen_flags: <defaults>
</compile_context>

<pallas_src>
import functools

import jax
import jax.numpy as jnp
from jax.experimental import pallas as pl
from jax.experimental.pallas import tpu as pltpu

SOS_token = 1
MAX_LENGTH = 10  # only used when no target sequence is given (not exercised)


def _round_up(x, m):
    return (x + m - 1) // m * m


def _pad_to(x, shape):
    return jnp.pad(x, [(0, s - d) for d, s in zip(x.shape, shape)])


def _fuse_gates(w3, in_p, h_p):
    # (3, in, H) in PyTorch gate order (r, z, n) -> (in_p, 3*h_p); each gate is
    # zero-padded to a full 128-lane block; bf16 for the MXU (f32 accumulate).
    return jnp.concatenate(
        [_pad_to(w3[g], (in_p, h_p)) for g in range(3)], axis=-1
    ).astype(jnp.bfloat16)


def _gi_bias(bih3, bhh3, h_p):
    # Biases folded into the hoisted input projection:
    # [bih_r + bhh_r | bih_z + bhh_z | bih_n]   (bhh_n is applied per step).
    return jnp.concatenate(
        [_pad_to(bih3[0] + bhh3[0], (1, h_p)),
         _pad_to(bih3[1] + bhh3[1], (1, h_p)),
         _pad_to(bih3[2], (1, h_p))], axis=-1).astype(jnp.float32)


def _stack_greedy(wih3, whh3, e_p, h_p):
    # Block weight [[Wih_r, Wih_z, Wih_n, 0], [Whh_r, Whh_z, 0, Whh_n]] so one
    # K-stacked [x, h] matmul yields (gi_r+gh_r, gi_z+gh_z, gi_n, gh_n).
    top = jnp.concatenate([_pad_to(wih3[0], (e_p, h_p)),
                           _pad_to(wih3[1], (e_p, h_p)),
                           _pad_to(wih3[2], (e_p, h_p)),
                           jnp.zeros((e_p, h_p), jnp.float32)], axis=-1)
    bot = jnp.concatenate([_pad_to(whh3[0], (h_p, h_p)),
                           _pad_to(whh3[1], (h_p, h_p)),
                           jnp.zeros((h_p, h_p), jnp.float32),
                           _pad_to(whh3[2], (h_p, h_p))], axis=-1)
    return jnp.concatenate([top, bot], axis=0).astype(jnp.bfloat16)


def _stack_greedy_bias(bih3, bhh3, h_p):
    return jnp.concatenate(
        [_pad_to(bih3[0] + bhh3[0], (1, h_p)),
         _pad_to(bih3[1] + bhh3[1], (1, h_p)),
         _pad_to(bih3[2], (1, h_p)),
         _pad_to(bhh3[2], (1, h_p))], axis=-1).astype(jnp.float32)


# ---------------------------------------------------------------------------
# Fused encoder + decoder kernel factory (single grid point, all in VMEM).
# ---------------------------------------------------------------------------
def make_seq2seq_kernel(S, T, Hp, Vp, v_out, teacher_forcing, sos_token):

    def gru_step(gi, h, whh, bhh_n):
        # Per-step serial work: one (Bp, Hp) @ (Hp, 3*Hp) bf16 MXU push with
        # f32 accumulation; everything h-independent was hoisted out.
        gh = jnp.dot(h.astype(jnp.bfloat16), whh,
                     preferred_element_type=jnp.float32)
        r = jax.nn.sigmoid(gi[:, :Hp] + gh[:, :Hp])
        z = jax.nn.sigmoid(gi[:, Hp:2 * Hp] + gh[:, Hp:2 * Hp])
        n = jnp.tanh(gi[:, 2 * Hp:] + r * (gh[:, 2 * Hp:] + bhh_n))
        return (1.0 - z) * n + z * h

    def encode(len_ref, emb_ref, e_wih_ref, e_whh_ref, e_gib_ref, e_bhhn_ref):
        Bp = len_ref.shape[0]
        lens = len_ref[...]                               # (Bp, 1) int32
        e_whh = e_whh_ref[...]
        e_bhhn = e_bhhn_ref[...]
        # Hoisted encoder input projection: ONE (S*Bp, Ep) @ (Ep, 3*Hp) matmul
        # (r/z biases already folded in).
        gi_all = (jnp.dot(emb_ref[...].astype(jnp.bfloat16), e_wih_ref[...],
                          preferred_element_type=jnp.float32)
                  + e_gib_ref[...])
        h = jnp.zeros((Bp, Hp), jnp.float32)              # Encoder.init_hidden
        for t in range(S):                                # fully unrolled
            h_new = gru_step(gi_all[t * Bp:(t + 1) * Bp], h, e_whh, e_bhhn)
            # pack_padded_sequence semantics: freeze h once past the length.
            h = jnp.where(lens > t, h_new, h)
        return h

    if teacher_forcing:
        def kernel(len_ref, emb_ref, e_wih_ref, e_whh_ref, e_gib_ref,
                   e_bhhn_ref, decx_ref, d_wih_ref, d_whh_ref, d_gib_ref,
                   d_bhhn_ref, wout_ref, bout_ref, out_ref):
            Bp = len_ref.shape[0]
            h = encode(len_ref, emb_ref, e_wih_ref, e_whh_ref,
                       e_gib_ref, e_bhhn_ref)
            d_whh = d_whh_ref[...]
            d_bhhn = d_bhhn_ref[...]
            # Teacher forcing: decoder inputs are h-independent, so the whole
            # input path is ONE (T*Bp, Ep) @ (Ep, 3*Hp) matmul before the loop.
            gi_all = (jnp.dot(decx_ref[...].astype(jnp.bfloat16),
                              d_wih_ref[...],
                              preferred_element_type=jnp.float32)
                      + d_gib_ref[...])
            hs = []
            for i in range(T):                            # fully unrolled
                h = gru_step(gi_all[i * Bp:(i + 1) * Bp], h, d_whh, d_bhhn)
                hs.append(h)
            # Batched output projection + log-softmax after the loop: one
            # (T*Bp, Hp) @ (Hp, Vp) matmul and one lane-dense store.
            h_all = jnp.concatenate(hs, axis=0)           # (T*Bp, Hp)
            lane = jax.lax.broadcasted_iota(jnp.int32, (1, Vp), 1)
            vocab_neg = jnp.where(lane < v_out, 0.0, -1e30).astype(jnp.float32)
            logits = (jnp.dot(h_all.astype(jnp.bfloat16), wout_ref[...],
                              preferred_element_type=jnp.float32)
                      + bout_ref[...] + vocab_neg)
            m = jnp.max(logits, axis=-1, keepdims=True)
            lse = m + jnp.log(jnp.sum(jnp.exp(logits - m),
                                      axis=-1, keepdims=True))
            out_ref[...] = logits - lse
        return kernel

    def kernel(len_ref, emb_ref, e_wih_ref, e_whh_ref, e_gib_ref, e_bhhn_ref,
               demb_ref, wstk_ref, bstk_ref, wout_ref, bout_ref, out_ref):
        Bp = len_ref.shape[0]
        h = encode(len_ref, emb_ref, e_wih_ref, e_whh_ref, e_gib_ref,
                   e_bhhn_ref)
        d_emb = demb_ref[...]
        wstk = wstk_ref[...]
        bstk = bstk_ref[...]
        wout = wout_ref[...]
        bout = bout_ref[...]
        # Hoisted: lane iota + additive mask killing padded vocab lanes.
        lane = jax.lax.broadcasted_iota(jnp.int32, (Bp, Vp), 1)
        vocab_neg = jnp.where(lane < v_out, 0.0, -1e30).astype(jnp.float32)
        ids = jnp.full((Bp, 1), sos_token, jnp.int32)
        for i in range(T):                                # fully unrolled
            # Embedding lookup as a one-hot MXU matmul, then ReLU.
            onehot = (lane == ids).astype(jnp.bfloat16)   # (Bp, Vp), exact
            x = jnp.maximum(jnp.dot(onehot, d_emb,
                                    preferred_element_type=jnp.float32), 0.0)
            # One K-stacked matmul: [x, h] @ block weight yields
            # (gi_r+gh_r, gi_z+gh_z, gi_n, gh_n) in a single MXU push (N=512).
            xh = jnp.concatenate([x, h], axis=-1).astype(jnp.bfloat16)
            g = jnp.dot(xh, wstk, preferred_element_type=jnp.float32) + bstk
            r = jax.nn.sigmoid(g[:, :Hp])
            z = jax.nn.sigmoid(g[:, Hp:2 * Hp])
            n = jnp.tanh(g[:, 2 * Hp:3 * Hp] + r * g[:, 3 * Hp:])
            h = (1.0 - z) * n + z * h
            logits = (jnp.dot(h.astype(jnp.bfloat16), wout,
                              preferred_element_type=jnp.float32)
                      + bout + vocab_neg)
            m = jnp.max(logits, axis=-1, keepdims=True)
            lse = m + jnp.log(jnp.sum(jnp.exp(logits - m),
                                      axis=-1, keepdims=True))
            out_ref[i * Bp:(i + 1) * Bp, :] = logits - lse
            # Greedy argmax reuses the LSE row max `m` (no second XLU max);
            # min-trick reproduces first-occurrence tie-breaking.
            ids = jnp.min(jnp.where(logits == m, lane, Vp),
                          axis=-1, keepdims=True).astype(jnp.int32)

    return kernel


# ---------------------------------------------------------------------------
# Full RNN.forward: pad / fuse in the wrapper, one pallas_call, slice padding.
# ---------------------------------------------------------------------------
@functools.partial(jax.jit, static_argnums=(4,))
def rnn_forward(params, src_seqs, tgt_seqs, src_seq_lengths, teacher_forcing):
    S, B = src_seqs.shape
    T = tgt_seqs.shape[0]
    E = params["enc_emb"].shape[1]
    H = params["enc_whh"].shape[-1]
    V_out = params["dec_emb"].shape[0]

    Bp = _round_up(max(B, 8), 8)
    Ep = _round_up(E, 128)
    Hp = _round_up(H, 128)
    Vp = _round_up(V_out, 128)

    # Encoder embedding lookup is glue (plain JAX gather); pad to (8,128) tiles
    # and flatten time into rows so the hoisted projection is one matmul.
    emb_seq = _pad_to(params["enc_emb"][src_seqs].astype(jnp.float32),
                      (S, Bp, Ep)).reshape(S * Bp, Ep)
    lengths = _pad_to(src_seq_lengths.astype(jnp.int32), (Bp,)).reshape(Bp, 1)

    e_wih = _fuse_gates(params["enc_wih"], Ep, Hp)
    e_whh = _fuse_gates(params["enc_whh"], Hp, Hp)
    e_gib = _gi_bias(params["enc_bih"], params["enc_bhh"], Hp)
    e_bhhn = _pad_to(params["enc_bhh"][2], (1, Hp)).astype(jnp.float32)
    wout = _pad_to(params["out_w"], (Hp, Vp)).astype(jnp.bfloat16)
    bout = _pad_to(params["out_b"], (1, Vp)).astype(jnp.float32)

    if teacher_forcing:
        # Decoder inputs are fully known: step 0 <- SOS, step i <- tgt[i-1].
        dec_in_ids = jnp.concatenate(
            [jnp.full((1, B), SOS_token, tgt_seqs.dtype), tgt_seqs[:-1]], axis=0)
        dec_x = _pad_to(
            jnp.maximum(params["dec_emb"][dec_in_ids], 0.0).astype(jnp.float32),
            (T, Bp, Ep)).reshape(T * Bp, Ep)
        d_wih = _fuse_gates(params["dec_wih"], Ep, Hp)
        d_whh = _fuse_gates(params["dec_whh"], Hp, Hp)
        d_gib = _gi_bias(params["dec_bih"], params["dec_bhh"], Hp)
        d_bhhn = _pad_to(params["dec_bhh"][2], (1, Hp)).astype(jnp.float32)
        args = (lengths, emb_seq, e_wih, e_whh, e_gib, e_bhhn,
                dec_x, d_wih, d_whh, d_gib, d_bhhn, wout, bout)
    else:
        d_emb = _pad_to(params["dec_emb"], (Vp, Ep)).astype(jnp.bfloat16)
        wstk = _stack_greedy(params["dec_wih"], params["dec_whh"], Ep, Hp)
        bstk = _stack_greedy_bias(params["dec_bih"], params["dec_bhh"], Hp)
        args = (lengths, emb_seq, e_wih, e_whh, e_gib, e_bhhn,
                d_emb, wstk, bstk, wout, bout)

    kernel = make_seq2seq_kernel(S, T, Hp, Vp, V_out,
                                 bool(teacher_forcing), SOS_token)
    vmem = pl.BlockSpec(memory_space=pltpu.MemorySpace.VMEM)
    # No grid: every operand stays VMEM-resident for the whole call; the
    # recurrences are in-kernel fully-unrolled loops (serial-latency-bound).
    out = pl.pallas_call(
        kernel,
        out_shape=jax.ShapeDtypeStruct((T * Bp, Vp), jnp.float32),
        in_specs=[vmem] * len(args),
        out_specs=vmem,
        compiler_params=pltpu.CompilerParams(vmem_limit_bytes=16 * 1024 * 1024),
    )(*args)
    return out.reshape(T, Bp, Vp)[:, :B, :V_out]


# ---------------------------------------------------------------------------
# Pure-JAX reference. matmul_dtype=bf16 mirrors the kernel's MXU precision
# (bf16 operands, f32 accumulation); matmul_dtype=f32 is the module semantics.
# ---------------------------------------------------------------------------
def _dot(a, b, md):
    return jnp.dot(a.astype(md), b.astype(md),
                   preferred_element_type=jnp.float32)


def _gru_cell_ref(x, h, wih, whh, bih, bhh, md):
    r = jax.nn.sigmoid(_dot(x, wih[0], md) + bih[0] + _dot(h, whh[0], md) + bhh[0])
    z = jax.nn.sigmoid(_dot(x, wih[1], md) + bih[1] + _dot(h, whh[1], md) + bhh[1])
    n = jnp.tanh(_dot(x, wih[2], md) + bih[2] + r * (_dot(h, whh[2], md) + bhh[2]))
    return (1.0 - z) * n + z * h


def rnn_reference(params, src_seqs, tgt_seqs, src_seq_lengths, teacher_forcing,
                  matmul_dtype=jnp.float32):
    md = matmul_dtype
    S, B = src_seqs.shape
    H = params["enc_whh"].shape[-1]
    h = jnp.zeros((B, H), jnp.float32)
    emb_seq = params["enc_emb"][src_seqs]
    for t in range(S):
        h_new = _gru_cell_ref(emb_seq[t], h, params["enc_wih"], params["enc_whh"],
                              params["enc_bih"], params["enc_bhh"], md)
        mask = (src_seq_lengths > t)[:, None]
        h = jnp.where(mask, h_new, h)
    T = tgt_seqs.shape[0]
    ids = jnp.full((B,), SOS_token, jnp.int32)
    dec_emb = params["dec_emb"].astype(md).astype(jnp.float32)
    outs = []
    for i in range(T):
        x = jnp.maximum(dec_emb[ids], 0.0)
        h = _gru_cell_ref(x, h, params["dec_wih"], params["dec_whh"],
                          params["dec_bih"], params["dec_bhh"], md)
        logits = _dot(h, params["out_w"], md) + params["out_b"]
        logp = jax.nn.log_softmax(logits, axis=-1)
        outs.append(logp)
        ids = tgt_seqs[i].astype(jnp.int32) if teacher_forcing \
            else jnp.argmax(logp, axis=-1).astype(jnp.int32)
    return jnp.stack(outs, axis=0)


# ---------------------------------------------------------------------------
def init_params(key, v_in, v_out, E, H):
    ks = jax.random.split(key, 12)
    s = 0.1
    return {
        "enc_emb": jax.random.normal(ks[0], (v_in, E), jnp.float32) * s,
        "enc_wih": jax.random.normal(ks[1], (3, E, H), jnp.float32) * s,
        "enc_whh": jax.random.normal(ks[2], (3, H, H), jnp.float32) * s,
        "enc_bih": jax.random.normal(ks[3], (3, 1, H), jnp.float32) * s,
        "enc_bhh": jax.random.normal(ks[4], (3, 1, H), jnp.float32) * s,
        "dec_emb": jax.random.normal(ks[5], (v_out, E), jnp.float32) * s,
        "dec_wih": jax.random.normal(ks[6], (3, E, H), jnp.float32) * s,
        "dec_whh": jax.random.normal(ks[7], (3, H, H), jnp.float32) * s,
        "dec_bih": jax.random.normal(ks[8], (3, 1, H), jnp.float32) * s,
        "dec_bhh": jax.random.normal(ks[9], (3, 1, H), jnp.float32) * s,
        "out_w": jax.random.normal(ks[10], (H, v_out), jnp.float32) * s,
        "out_b": jax.random.normal(ks[11], (1, v_out), jnp.float32) * s,
    }


if __name__ == "__main__":
    V_IN, V_OUT = 37, 41
    E, H = 32, 32
    S, T, B = 8, 6, 4

    key = jax.random.PRNGKey(0)
    kp, ks, kt = jax.random.split(key, 3)
    params = init_params(kp, V_IN, V_OUT, E, H)

    src_seqs = jax.random.randint(ks, (S, B), 0, V_IN, dtype=jnp.int32)
    tgt_seqs = jax.random.randint(kt, (T, B), 0, V_OUT, dtype=jnp.int32)
    src_seq_lengths = jnp.array([8, 7, 5, 3], dtype=jnp.int32)  # sorted, as PyTorch requires

    # Teacher forcing: tight check vs the bf16-matmul reference, loose sanity
    # check vs the pure-f32 module semantics.
    out_tf = jax.block_until_ready(
        rnn_forward(params, src_seqs, tgt_seqs, src_seq_lengths, True))
    ref_tf = rnn_reference(params, src_seqs, tgt_seqs, src_seq_lengths, True,
                           matmul_dtype=jnp.bfloat16)
    assert out_tf.shape == (T, B, V_OUT)
    assert jnp.max(jnp.abs(out_tf - ref_tf)) < 1e-3, "teacher-forcing mismatch"
    ref_tf32 = rnn_reference(params, src_seqs, tgt_seqs, src_seq_lengths, True)
    assert jnp.max(jnp.abs(out_tf - ref_tf32)) < 5e-2, "f32 semantics drift"

    # Greedy (no teacher forcing) decoding vs bf16-matmul reference.
    out_gr = jax.block_until_ready(
        rnn_forward(params, src_seqs, tgt_seqs, src_seq_lengths, False))
    ref_gr = rnn_reference(params, src_seqs, tgt_seqs, src_seq_lengths, False,
                           matmul_dtype=jnp.bfloat16)
    assert out_gr.shape == (T, B, V_OUT)
    assert bool(jnp.all(jnp.isfinite(out_gr)))
    assert jnp.max(jnp.abs(out_gr - ref_gr)) < 1e-3, "greedy mismatch"
    # log_softmax rows sum to 1 in prob space (padded vocab lanes masked).
    assert jnp.max(jnp.abs(jnp.sum(jnp.exp(out_gr), axis=-1) - 1.0)) < 1e-3

    print("KERNEL_OK")
</pallas_src>

<mosaic_0001>
module attributes {stable_mosaic.version = 11 : i64} {
  func.func @kernel(%arg0: memref<8x1xi32, #tpu.memory_space<vmem>>, %arg1: memref<64x128xf32, #tpu.memory_space<vmem>>, %arg2: memref<128x384xbf16, #tpu.memory_space<vmem>>, %arg3: memref<128x384xbf16, #tpu.memory_space<vmem>>, %arg4: memref<1x384xf32, #tpu.memory_space<vmem>>, %arg5: memref<1x128xf32, #tpu.memory_space<vmem>>, %arg6: memref<48x128xf32, #tpu.memory_space<vmem>>, %arg7: memref<128x384xbf16, #tpu.memory_space<vmem>>, %arg8: memref<128x384xbf16, #tpu.memory_space<vmem>>, %arg9: memref<1x384xf32, #tpu.memory_space<vmem>>, %arg10: memref<1x128xf32, #tpu.memory_space<vmem>>, %arg11: memref<128x128xbf16, #tpu.memory_space<vmem>>, %arg12: memref<1x128xf32, #tpu.memory_space<vmem>>, %arg13: memref<48x128xf32, #tpu.memory_space<vmem>>) attributes {dimension_semantics = [], scalar_prefetch = 0 : i64, scratch_operands = 0 : i64, tpu.core_type = #tpu.core_type<tc>} {
    %c0 = arith.constant 0 : index
    %c0_0 = arith.constant 0 : index
    %0 = vector.load %arg0[%c0, %c0_0] : memref<8x1xi32, #tpu.memory_space<vmem>>, vector<8x1xi32>
    %c0_1 = arith.constant 0 : index
    %c0_2 = arith.constant 0 : index
    %1 = vector.load %arg3[%c0_1, %c0_2] : memref<128x384xbf16, #tpu.memory_space<vmem>>, vector<128x384xbf16>
    %c0_3 = arith.constant 0 : index
    %c0_4 = arith.constant 0 : index
    %2 = vector.load %arg5[%c0_3, %c0_4] : memref<1x128xf32, #tpu.memory_space<vmem>>, vector<1x128xf32>
    %c0_5 = arith.constant 0 : index
    %c0_6 = arith.constant 0 : index
    %3 = vector.load %arg1[%c0_5, %c0_6] : memref<64x128xf32, #tpu.memory_space<vmem>>, vector<64x128xf32>
    %4 = arith.truncf %3 : vector<64x128xf32> to vector<64x128xbf16>
    %c0_7 = arith.constant 0 : index
    %c0_8 = arith.constant 0 : index
    %5 = vector.load %arg2[%c0_7, %c0_8] : memref<128x384xbf16, #tpu.memory_space<vmem>>, vector<128x384xbf16>
    %cst = arith.constant dense<0.000000e+00> : vector<64x384xf32>
    %6 = tpu.matmul %4, %5, %cst {dimension_numbers = #tpu.dot_dimension_numbers<[1], [0], [0], [1], [0, 0, 1, 1], [], []>} : vector<64x128xbf16>, vector<128x384xbf16>, vector<64x384xf32> -> vector<64x384xf32>
    %c0_9 = arith.constant 0 : index
    %c0_10 = arith.constant 0 : index
    %7 = vector.load %arg4[%c0_9, %c0_10] : memref<1x384xf32, #tpu.memory_space<vmem>>, vector<1x384xf32>
    %8 = vector.broadcast %7 : vector<1x384xf32> to vector<64x384xf32>
    %9 = arith.addf %6, %8 : vector<64x384xf32>
    %cst_11 = arith.constant 0.000000e+00 : f32
    %10 = vector.broadcast %cst_11 : f32 to vector<8x128xf32>
    %11 = vector.extract_strided_slice %9 {offsets = [0, 0], sizes = [8, 384], strides = [1, 1]} : vector<64x384xf32> to vector<8x384xf32>
    %12 = arith.truncf %10 : vector<8x128xf32> to vector<8x128xbf16>
    %cst_12 = arith.constant dense<0.000000e+00> : vector<8x384xf32>
    %13 = tpu.matmul %12, %1, %cst_12 {dimension_numbers = #tpu.dot_dimension_numbers<[1], [0], [0], [1], [0, 0, 1, 1], [], []>} : vector<8x128xbf16>, vector<128x384xbf16>, vector<8x384xf32> -> vector<8x384xf32>
    %14 = vector.extract_strided_slice %11 {offsets = [0, 0], sizes = [8, 128], strides = [1, 1]} : vector<8x384xf32> to vector<8x128xf32>
    %15 = vector.extract_strided_slice %13 {offsets = [0, 0], sizes = [8, 128], strides = [1, 1]} : vector<8x384xf32> to vector<8x128xf32>
    %16 = arith.addf %14, %15 : vector<8x128xf32>
    %17 = arith.negf %16 : vector<8x128xf32>
    %18 = math.exp %17 : vector<8x128xf32>
    %cst_13 = arith.constant 1.000000e+00 : f32
    %19 = vector.broadcast %cst_13 : f32 to vector<8x128xf32>
    %20 = arith.addf %19, %18 : vector<8x128xf32>
    %21 = arith.divf %19, %20 : vector<8x128xf32>
    %22 = vector.extract_strided_slice %11 {offsets = [0, 128], sizes = [8, 128], strides = [1, 1]} : vector<8x384xf32> to vector<8x128xf32>
    %23 = vector.extract_strided_slice %13 {offsets = [0, 128], sizes = [8, 128], strides = [1, 1]} : vector<8x384xf32> to vector<8x128xf32>
    %24 = arith.addf %22, %23 : vector<8x128xf32>
    %25 = arith.negf %24 : vector<8x128xf32>
    %26 = math.exp %25 : vector<8x128xf32>
    %cst_14 = arith.constant 1.000000e+00 : f32
    %27 = vector.broadcast %cst_14 : f32 to vector<8x128xf32>
    %28 = arith.addf %27, %26 : vector<8x128xf32>
    %29 = arith.divf %27, %28 : vector<8x128xf32>
    %30 = vector.extract_strided_slice %11 {offsets = [0, 256], sizes = [8, 128], strides = [1, 1]} : vector<8x384xf32> to vector<8x128xf32>
    %31 = vector.extract_strided_slice %13 {offsets = [0, 256], sizes = [8, 128], strides = [1, 1]} : vector<8x384xf32> to vector<8x128xf32>
    %32 = vector.broadcast %2 : vector<1x128xf32> to vector<8x128xf32>
    %33 = arith.addf %31, %32 : vector<8x128xf32>
    %34 = arith.mulf %21, %33 : vector<8x128xf32>
    %35 = arith.addf %30, %34 : vector<8x128xf32>
    %36 = math.tanh %35 : vector<8x128xf32>
    %cst_15 = arith.constant 1.000000e+00 : f32
    %37 = vector.broadcast %cst_15 : f32 to vector<8x128xf32>
    %38 = arith.subf %37, %29 : vector<8x128xf32>
    %39 = arith.mulf %38, %36 : vector<8x128xf32>
    %40 = arith.mulf %29, %10 : vector<8x128xf32>
    %41 = arith.addf %39, %40 : vector<8x128xf32>
    %c0_i32 = arith.constant 0 : i32
    %42 = vector.broadcast %c0_i32 : i32 to vector<8x1xi32>
    %43 = arith.cmpi sgt, %0, %42 : vector<8x1xi32>
    %44 = vector.shape_cast %43 : vector<8x1xi1> to vector<8x1xi1>
    %45 = vector.broadcast %44 : vector<8x1xi1> to vector<8x128xi1>
    %46 = arith.select %45, %41, %10 : vector<8x128xi1>, vector<8x128xf32>
    %47 = vector.extract_strided_slice %9 {offsets = [8, 0], sizes = [8, 384], strides = [1, 1]} : vector<64x384xf32> to vector<8x384xf32>
    %48 = arith.truncf %46 : vector<8x128xf32> to vector<8x128xbf16>
    %cst_16 = arith.constant dense<0.000000e+00> : vector<8x384xf32>
    %49 = tpu.matmul %48, %1, %cst_16 {dimension_numbers = #tpu.dot_dimension_numbers<[1], [0], [0], [1], [0, 0, 1, 1], [], []>} : vector<8x128xbf16>, vector<128x384xbf16>, vector<8x384xf32> -> vector<8x384xf32>
    %50 = vector.extract_strided_slice %47 {offsets = [0, 0], sizes = [8, 128], strides = [1, 1]} : vector<8x384xf32> to vector<8x128xf32>
    %51 = vector.extract_strided_slice %49 {offsets = [0, 0], sizes = [8, 128], strides = [1, 1]} : vector<8x384xf32> to vector<8x128xf32>
    %52 = arith.addf %50, %51 : vector<8x128xf32>
    %53 = arith.negf %52 : vector<8x128xf32>
    %54 = math.exp %53 : vector<8x128xf32>
    %cst_17 = arith.constant 1.000000e+00 : f32
    %55 = vector.broadcast %cst_17 : f32 to vector<8x128xf32>
    %56 = arith.addf %55, %54 : vector<8x128xf32>
    %57 = arith.divf %55, %56 : vector<8x128xf32>
    %58 = vector.extract_strided_slice %47 {offsets = [0, 128], sizes = [8, 128], strides = [1, 1]} : vector<8x384xf32> to vector<8x128xf32>
    %59 = vector.extract_strided_slice %49 {offsets = [0, 128], sizes = [8, 128], strides = [1, 1]} : vector<8x384xf32> to vector<8x128xf32>
    %60 = arith.addf %58, %59 : vector<8x128xf32>
    %61 = arith.negf %60 : vector<8x128xf32>
    %62 = math.exp %61 : vector<8x128xf32>
    %cst_18 = arith.constant 1.000000e+00 : f32
    %63 = vector.broadcast %cst_18 : f32 to vector<8x128xf32>
    %64 = arith.addf %63, %62 : vector<8x128xf32>
    %65 = arith.divf %63, %64 : vector<8x128xf32>
    %66 = vector.extract_strided_slice %47 {offsets = [0, 256], sizes = [8, 128], strides = [1, 1]} : vector<8x384xf32> to vector<8x128xf32>
    %67 = vector.extract_strided_slice %49 {offsets = [0, 256], sizes = [8, 128], strides = [1, 1]} : vector<8x384xf32> to vector<8x128xf32>
    %68 = vector.broadcast %2 : vector<1x128xf32> to vector<8x128xf32>
    %69 = arith.addf %67, %68 : vector<8x128xf32>
    %70 = arith.mulf %57, %69 : vector<8x128xf32>
    %71 = arith.addf %66, %70 : vector<8x128xf32>
    %72 = math.tanh %71 : vector<8x128xf32>
    %cst_19 = arith.constant 1.000000e+00 : f32
    %73 = vector.broadcast %cst_19 : f32 to vector<8x128xf32>
    %74 = arith.subf %73, %65 : vector<8x128xf32>
    %75 = arith.mulf %74, %72 : vector<8x128xf32>
    %76 = arith.mulf %65, %46 : vector<8x128xf32>
    %77 = arith.addf %75, %76 : vector<8x128xf32>
    %c1_i32 = arith.constant 1 : i32
    %78 = vector.broadcast %c1_i32 : i32 to vector<8x1xi32>
    %79 = arith.cmpi sgt, %0, %78 : vector<8x1xi32>
    %80 = vector.shape_cast %79 : vector<8x1xi1> to vector<8x1xi1>
    %81 = vector.broadcast %80 : vector<8x1xi1> to vector<8x128xi1>
    %82 = arith.select %81, %77, %46 : vector<8x128xi1>, vector<8x128xf32>
    %83 = vector.extract_strided_slice %9 {offsets = [16, 0], sizes = [8, 384], strides = [1, 1]} : vector<64x384xf32> to vector<8x384xf32>
    %84 = arith.truncf %82 : vector<8x128xf32> to vector<8x128xbf16>
    %cst_20 = arith.constant dense<0.000000e+00> : vector<8x384xf32>
    %85 = tpu.matmul %84, %1, %cst_20 {dimension_numbers = #tpu.dot_dimension_numbers<[1], [0], [0], [1], [0, 0, 1, 1], [], []>} : vector<8x128xbf16>, vector<128x384xbf16>, vector<8x384xf32> -> vector<8x384xf32>
    %86 = vector.extract_strided_slice %83 {offsets = [0, 0], sizes = [8, 128], strides = [1, 1]} : vector<8x384xf32> to vector<8x128xf32>
    %87 = vector.extract_strided_slice %85 {offsets = [0, 0], sizes = [8, 128], strides = [1, 1]} : vector<8x384xf32> to vector<8x128xf32>
    %88 = arith.addf %86, %87 : vector<8x128xf32>
    %89 = arith.negf %88 : vector<8x128xf32>
    %90 = math.exp %89 : vector<8x128xf32>
    %cst_21 = arith.constant 1.000000e+00 : f32
    %91 = vector.broadcast %cst_21 : f32 to vector<8x128xf32>
    %92 = arith.addf %91, %90 : vector<8x128xf32>
    %93 = arith.divf %91, %92 : vector<8x128xf32>
    %94 = vector.extract_strided_slice %83 {offsets = [0, 128], sizes = [8, 128], strides = [1, 1]} : vector<8x384xf32> to vector<8x128xf32>
    %95 = vector.extract_strided_slice %85 {offsets = [0, 128], sizes = [8, 128], strides = [1, 1]} : vector<8x384xf32> to vector<8x128xf32>
    %96 = arith.addf %94, %95 : vector<8x128xf32>
    %97 = arith.negf %96 : vector<8x128xf32>
    %98 = math.exp %97 : vector<8x128xf32>
    %cst_22 = arith.constant 1.000000e+00 : f32
    %99 = vector.broadcast %cst_22 : f32 to vector<8x128xf32>
    %100 = arith.addf %99, %98 : vector<8x128xf32>
    %101 = arith.divf %99, %100 : vector<8x128xf32>
    %102 = vector.extract_strided_slice %83 {offsets = [0, 256], sizes = [8, 128], strides = [1, 1]} : vector<8x384xf32> to vector<8x128xf32>
    %103 = vector.extract_strided_slice %85 {offsets = [0, 256], sizes = [8, 128], strides = [1, 1]} : vector<8x384xf32> to vector<8x128xf32>
    %104 = vector.broadcast %2 : vector<1x128xf32> to vector<8x128xf32>
    %105 = arith.addf %103, %104 : vector<8x128xf32>
    %106 = arith.mulf %93, %105 : vector<8x128xf32>
    %107 = arith.addf %102, %106 : vector<8x128xf32>
    %108 = math.tanh %107 : vector<8x128xf32>
    %cst_23 = arith.constant 1.000000e+00 : f32
    %109 = vector.broadcast %cst_23 : f32 to vector<8x128xf32>
    %110 = arith.subf %109, %101 : vector<8x128xf32>
    %111 = arith.mulf %110, %108 : vector<8x128xf32>
    %112 = arith.mulf %101, %82 : vector<8x128xf32>
    %113 = arith.addf %111, %112 : vector<8x128xf32>
    %c2_i32 = arith.constant 2 : i32
    %114 = vector.broadcast %c2_i32 : i32 to vector<8x1xi32>
    %115 = arith.cmpi sgt, %0, %114 : vector<8x1xi32>
    %116 = vector.shape_cast %115 : vector<8x1xi1> to vector<8x1xi1>
    %117 = vector.broadcast %116 : vector<8x1xi1> to vector<8x128xi1>
    %118 = arith.select %117, %113, %82 : vector<8x128xi1>, vector<8x128xf32>
    %119 = vector.extract_strided_slice %9 {offsets = [24, 0], sizes = [8, 384], strides = [1, 1]} : vector<64x384xf32> to vector<8x384xf32>
    %120 = arith.truncf %118 : vector<8x128xf32> to vector<8x128xbf16>
    %cst_24 = arith.constant dense<0.000000e+00> : vector<8x384xf32>
    %121 = tpu.matmul %120, %1, %cst_24 {dimension_numbers = #tpu.dot_dimension_numbers<[1], [0], [0], [1], [0, 0, 1, 1], [], []>} : vector<8x128xbf16>, vector<128x384xbf16>, vector<8x384xf32> -> vector<8x384xf32>
    %122 = vector.extract_strided_slice %119 {offsets = [0, 0], sizes = [8, 128], strides = [1, 1]} : vector<8x384xf32> to vector<8x128xf32>
    %123 = vector.extract_strided_slice %121 {offsets = [0, 0], sizes = [8, 128], strides = [1, 1]} : vector<8x384xf32> to vector<8x128xf32>
    %124 = arith.addf %122, %123 : vector<8x128xf32>
    %125 = arith.negf %124 : vector<8x128xf32>
    %126 = math.exp %125 : vector<8x128xf32>
    %cst_25 = arith.constant 1.000000e+00 : f32
    %127 = vector.broadcast %cst_25 : f32 to vector<8x128xf32>
    %128 = arith.addf %127, %126 : vector<8x128xf32>
    %129 = arith.divf %127, %128 : vector<8x128xf32>
    %130 = vector.extract_strided_slice %119 {offsets = [0, 128], sizes = [8, 128], strides = [1, 1]} : vector<8x384xf32> to vector<8x128xf32>
    %131 = vector.extract_strided_slice %121 {offsets = [0, 128], sizes = [8, 128], strides = [1, 1]} : vector<8x384xf32> to vector<8x128xf32>
    %132 = arith.addf %130, %131 : vector<8x128xf32>
    %133 = arith.negf %132 : vector<8x128xf32>
    %134 = math.exp %133 : vector<8x128xf32>
    %cst_26 = arith.constant 1.000000e+00 : f32
    %135 = vector.broadcast %cst_26 : f32 to vector<8x128xf32>
    %136 = arith.addf %135, %134 : vector<8x128xf32>
    %137 = arith.divf %135, %136 : vector<8x128xf32>
    %138 = vector.extract_strided_slice %119 {offsets = [0, 256], sizes = [8, 128], strides = [1, 1]} : vector<8x384xf32> to vector<8x128xf32>
    %139 = vector.extract_strided_slice %121 {offsets = [0, 256], sizes = [8, 128], strides = [1, 1]} : vector<8x384xf32> to vector<8x128xf32>
    %140 = vector.broadcast %2 : vector<1x128xf32> to vector<8x128xf32>
    %141 = arith.addf %139, %140 : vector<8x128xf32>
    %142 = arith.mulf %129, %141 : vector<8x128xf32>
    %143 = arith.addf %138, %142 : vector<8x128xf32>
    %144 = math.tanh %143 : vector<8x128xf32>
    %cst_27 = arith.constant 1.000000e+00 : f32
    %145 = vector.broadcast %cst_27 : f32 to vector<8x128xf32>
    %146 = arith.subf %145, %137 : vector<8x128xf32>
    %147 = arith.mulf %146, %144 : vector<8x128xf32>
    %148 = arith.mulf %137, %118 : vector<8x128xf32>
    %149 = arith.addf %147, %148 : vector<8x128xf32>
    %c3_i32 = arith.constant 3 : i32
    %150 = vector.broadcast %c3_i32 : i32 to vector<8x1xi32>
    %151 = arith.cmpi sgt, %0, %150 : vector<8x1xi32>
    %152 = vector.shape_cast %151 : vector<8x1xi1> to vector<8x1xi1>
    %153 = vector.broadcast %152 : vector<8x1xi1> to vector<8x128xi1>
    %154 = arith.select %153, %149, %118 : vector<8x128xi1>, vector<8x128xf32>
    %155 = vector.extract_strided_slice %9 {offsets = [32, 0], sizes = [8, 384], strides = [1, 1]} : vector<64x384xf32> to vector<8x384xf32>
    %156 = arith.truncf %154 : vector<8x128xf32> to vector<8x128xbf16>
    %cst_28 = arith.constant dense<0.000000e+00> : vector<8x384xf32>
    %157 = tpu.matmul %156, %1, %cst_28 {dimension_numbers = #tpu.dot_dimension_numbers<[1], [0], [0], [1], [0, 0, 1, 1], [], []>} : vector<8x128xbf16>, vector<128x384xbf16>, vector<8x384xf32> -> vector<8x384xf32>
    %158 = vector.extract_strided_slice %155 {offsets = [0, 0], sizes = [8, 128], strides = [1, 1]} : vector<8x384xf32> to vector<8x128xf32>
    %159 = vector.extract_strided_slice %157 {offsets = [0, 0], sizes = [8, 128], strides = [1, 1]} : vector<8x384xf32> to vector<8x128xf32>
    %160 = arith.addf %158, %159 : vector<8x128xf32>
    %161 = arith.negf %160 : vector<8x128xf32>
    %162 = math.exp %161 : vector<8x128xf32>
    %cst_29 = arith.constant 1.000000e+00 : f32
    %163 = vector.broadcast %cst_29 : f32 to vector<8x128xf32>
    %164 = arith.addf %163, %162 : vector<8x128xf32>
    %165 = arith.divf %163, %164 : vector<8x128xf32>
    %166 = vector.extract_strided_slice %155 {offsets = [0, 128], sizes = [8, 128], strides = [1, 1]} : vector<8x384xf32> to vector<8x128xf32>
    %167 = vector.extract_strided_slice %157 {offsets = [0, 128], sizes = [8, 128], strides = [1, 1]} : vector<8x384xf32> to vector<8x128xf32>
    %168 = arith.addf %166, %167 : vector<8x128xf32>
    %169 = arith.negf %168 : vector<8x128xf32>
    %170 = math.exp %169 : vector<8x128xf32>
    %cst_30 = arith.constant 1.000000e+00 : f32
    %171 = vector.broadcast %cst_30 : f32 to vector<8x128xf32>
    %172 = arith.addf %171, %170 : vector<8x128xf32>
    %173 = arith.divf %171, %172 : vector<8x128xf32>
    %174 = vector.extract_strided_slice %155 {offsets = [0, 256], sizes = [8, 128], strides = [1, 1]} : vector<8x384xf32> to vector<8x128xf32>
    %175 = vector.extract_strided_slice %157 {offsets = [0, 256], sizes = [8, 128], strides = [1, 1]} : vector<8x384xf32> to vector<8x128xf32>
    %176 = vector.broadcast %2 : vector<1x128xf32> to vector<8x128xf32>
    %177 = arith.addf %175, %176 : vector<8x128xf32>
    %178 = arith.mulf %165, %177 : vector<8x128xf32>
    %179 = arith.addf %174, %178 : vector<8x128xf32>
    %180 = math.tanh %179 : vector<8x128xf32>
    %cst_31 = arith.constant 1.000000e+00 : f32
    %181 = vector.broadcast %cst_31 : f32 to vector<8x128xf32>
    %182 = arith.subf %181, %173 : vector<8x128xf32>
    %183 = arith.mulf %182, %180 : vector<8x128xf32>
    %184 = arith.mulf %173, %154 : vector<8x128xf32>
    %185 = arith.addf %183, %184 : vector<8x128xf32>
    %c4_i32 = arith.constant 4 : i32
    %186 = vector.broadcast %c4_i32 : i32 to vector<8x1xi32>
    %187 = arith.cmpi sgt, %0, %186 : vector<8x1xi32>
    %188 = vector.shape_cast %187 : vector<8x1xi1> to vector<8x1xi1>
    %189 = vector.broadcast %188 : vector<8x1xi1> to vector<8x128xi1>
    %190 = arith.select %189, %185, %154 : vector<8x128xi1>, vector<8x128xf32>
    %191 = vector.extract_strided_slice %9 {offsets = [40, 0], sizes = [8, 384], strides = [1, 1]} : vector<64x384xf32> to vector<8x384xf32>
    %192 = arith.truncf %190 : vector<8x128xf32> to vector<8x128xbf16>
    %cst_32 = arith.constant dense<0.000000e+00> : vector<8x384xf32>
    %193 = tpu.matmul %192, %1, %cst_32 {dimension_numbers = #tpu.dot_dimension_numbers<[1], [0], [0], [1], [0, 0, 1, 1], [], []>} : vector<8x128xbf16>, vector<128x384xbf16>, vector<8x384xf32> -> vector<8x384xf32>
    %194 = vector.extract_strided_slice %191 {offsets = [0, 0], sizes = [8, 128], strides = [1, 1]} : vector<8x384xf32> to vector<8x128xf32>
    %195 = vector.extract_strided_slice %193 {offsets = [0, 0], sizes = [8, 128], strides = [1, 1]} : vector<8x384xf32> to vector<8x128xf32>
    %196 = arith.addf %194, %195 : vector<8x128xf32>
    %197 = arith.negf %196 : vector<8x128xf32>
    %198 = math.exp %197 : vector<8x128xf32>
    %cst_33 = arith.constant 1.000000e+00 : f32
    %199 = vector.broadcast %cst_33 : f32 to vector<8x128xf32>
    %200 = arith.addf %199, %198 : vector<8x128xf32>
    %201 = arith.divf %199, %200 : vector<8x128xf32>
    %202 = vector.extract_strided_slice %191 {offsets = [0, 128], sizes = [8, 128], strides = [1, 1]} : vector<8x384xf32> to vector<8x128xf32>
    %203 = vector.extract_strided_slice %193 {offsets = [0, 128], sizes = [8, 128], strides = [1, 1]} : vector<8x384xf32> to vector<8x128xf32>
    %204 = arith.addf %202, %203 : vector<8x128xf32>
    %205 = arith.negf %204 : vector<8x128xf32>
    %206 = math.exp %205 : vector<8x128xf32>
    %cst_34 = arith.constant 1.000000e+00 : f32
    %207 = vector.broadcast %cst_34 : f32 to vector<8x128xf32>
    %208 = arith.addf %207, %206 : vector<8x128xf32>
    %209 = arith.divf %207, %208 : vector<8x128xf32>
    %210 = vector.extract_strided_slice %191 {offsets = [0, 256], sizes = [8, 128], strides = [1, 1]} : vector<8x384xf32> to vector<8x128xf32>
    %211 = vector.extract_strided_slice %193 {offsets = [0, 256], sizes = [8, 128], strides = [1, 1]} : vector<8x384xf32> to vector<8x128xf32>
    %212 = vector.broadcast %2 : vector<1x128xf32> to vector<8x128xf32>
    %213 = arith.addf %211, %212 : vector<8x128xf32>
    %214 = arith.mulf %201, %213 : vector<8x128xf32>
    %215 = arith.addf %210, %214 : vector<8x128xf32>
    %216 = math.tanh %215 : vector<8x128xf32>
    %cst_35 = arith.constant 1.000000e+00 : f32
    %217 = vector.broadcast %cst_35 : f32 to vector<8x128xf32>
    %218 = arith.subf %217, %209 : vector<8x128xf32>
    %219 = arith.mulf %218, %216 : vector<8x128xf32>
    %220 = arith.mulf %209, %190 : vector<8x128xf32>
    %221 = arith.addf %219, %220 : vector<8x128xf32>
    %c5_i32 = arith.constant 5 : i32
    %222 = vector.broadcast %c5_i32 : i32 to vector<8x1xi32>
    %223 = arith.cmpi sgt, %0, %222 : vector<8x1xi32>
    %224 = vector.shape_cast %223 : vector<8x1xi1> to vector<8x1xi1>
    %225 = vector.broadcast %224 : vector<8x1xi1> to vector<8x128xi1>
    %226 = arith.select %225, %221, %190 : vector<8x128xi1>, vector<8x128xf32>
    %227 = vector.extract_strided_slice %9 {offsets = [48, 0], sizes = [8, 384], strides = [1, 1]} : vector<64x384xf32> to vector<8x384xf32>
    %228 = arith.truncf %226 : vector<8x128xf32> to vector<8x128xbf16>
    %cst_36 = arith.constant dense<0.000000e+00> : vector<8x384xf32>
    %229 = tpu.matmul %228, %1, %cst_36 {dimension_numbers = #tpu.dot_dimension_numbers<[1], [0], [0], [1], [0, 0, 1, 1], [], []>} : vector<8x128xbf16>, vector<128x384xbf16>, vector<8x384xf32> -> vector<8x384xf32>
    %230 = vector.extract_strided_slice %227 {offsets = [0, 0], sizes = [8, 128], strides = [1, 1]} : vector<8x384xf32> to vector<8x128xf32>
    %231 = vector.extract_strided_slice %229 {offsets = [0, 0], sizes = [8, 128], strides = [1, 1]} : vector<8x384xf32> to vector<8x128xf32>
    %232 = arith.addf %230, %231 : vector<8x128xf32>
    %233 = arith.negf %232 : vector<8x128xf32>
    %234 = math.exp %233 : vector<8x128xf32>
    %cst_37 = arith.constant 1.000000e+00 : f32
    %235 = vector.broadcast %cst_37 : f32 to vector<8x128xf32>
    %236 = arith.addf %235, %234 : vector<8x128xf32>
    %237 = arith.divf %235, %236 : vector<8x128xf32>
    %238 = vector.extract_strided_slice %227 {offsets = [0, 128], sizes = [8, 128], strides = [1, 1]} : vector<8x384xf32> to vector<8x128xf32>
    %239 = vector.extract_strided_slice %229 {offsets = [0, 128], sizes = [8, 128], strides = [1, 1]} : vector<8x384xf32> to vector<8x128xf32>
    %240 = arith.addf %238, %239 : vector<8x128xf32>
    %241 = arith.negf %240 : vector<8x128xf32>
    %242 = math.exp %241 : vector<8x128xf32>
    %cst_38 = arith.constant 1.000000e+00 : f32
    %243 = vector.broadcast %cst_38 : f32 to vector<8x128xf32>
    %244 = arith.addf %243, %242 : vector<8x128xf32>
    %245 = arith.divf %243, %244 : vector<8x128xf32>
    %246 = vector.extract_strided_slice %227 {offsets = [0, 256], sizes = [8, 128], strides = [1, 1]} : vector<8x384xf32> to vector<8x128xf32>
    %247 = vector.extract_strided_slice %229 {offsets = [0, 256], sizes = [8, 128], strides = [1, 1]} : vector<8x384xf32> to vector<8x128xf32>
    %248 = vector.broadcast %2 : vector<1x128xf32> to vector<8x128xf32>
    %249 = arith.addf %247, %248 : vector<8x128xf32>
    %250 = arith.mulf %237, %249 : vector<8x128xf32>
    %251 = arith.addf %246, %250 : vector<8x128xf32>
    %252 = math.tanh %251 : vector<8x128xf32>
    %cst_39 = arith.constant 1.000000e+00 : f32
    %253 = vector.broadcast %cst_39 : f32 to vector<8x128xf32>
    %254 = arith.subf %253, %245 : vector<8x128xf32>
    %255 = arith.mulf %254, %252 : vector<8x128xf32>
    %256 = arith.mulf %245, %226 : vector<8x128xf32>
    %257 = arith.addf %255, %256 : vector<8x128xf32>
    %c6_i32 = arith.constant 6 : i32
    %258 = vector.broadcast %c6_i32 : i32 to vector<8x1xi32>
    %259 = arith.cmpi sgt, %0, %258 : vector<8x1xi32>
    %260 = vector.shape_cast %259 : vector<8x1xi1> to vector<8x1xi1>
    %261 = vector.broadcast %260 : vector<8x1xi1> to vector<8x128xi1>
    %262 = arith.select %261, %257, %226 : vector<8x128xi1>, vector<8x128xf32>
    %263 = vector.extract_strided_slice %9 {offsets = [56, 0], sizes = [8, 384], strides = [1, 1]} : vector<64x384xf32> to vector<8x384xf32>
    %264 = arith.truncf %262 : vector<8x128xf32> to vector<8x128xbf16>
    %cst_40 = arith.constant dense<0.000000e+00> : vector<8x384xf32>
    %265 = tpu.matmul %264, %1, %cst_40 {dimension_numbers = #tpu.dot_dimension_numbers<[1], [0], [0], [1], [0, 0, 1, 1], [], []>} : vector<8x128xbf16>, vector<128x384xbf16>, vector<8x384xf32> -> vector<8x384xf32>
    %266 = vector.extract_strided_slice %263 {offsets = [0, 0], sizes = [8, 128], strides = [1, 1]} : vector<8x384xf32> to vector<8x128xf32>
    %267 = vector.extract_strided_slice %265 {offsets = [0, 0], sizes = [8, 128], strides = [1, 1]} : vector<8x384xf32> to vector<8x128xf32>
    %268 = arith.addf %266, %267 : vector<8x128xf32>
    %269 = arith.negf %268 : vector<8x128xf32>
    %270 = math.exp %269 : vector<8x128xf32>
    %cst_41 = arith.constant 1.000000e+00 : f32
    %271 = vector.broadcast %cst_41 : f32 to vector<8x128xf32>
    %272 = arith.addf %271, %270 : vector<8x128xf32>
    %273 = arith.divf %271, %272 : vector<8x128xf32>
    %274 = vector.extract_strided_slice %263 {offsets = [0, 128], sizes = [8, 128], strides = [1, 1]} : vector<8x384xf32> to vector<8x128xf32>
    %275 = vector.extract_strided_slice %265 {offsets = [0, 128], sizes = [8, 128], strides = [1, 1]} : vector<8x384xf32> to vector<8x128xf32>
    %276 = arith.addf %274, %275 : vector<8x128xf32>
    %277 = arith.negf %276 : vector<8x128xf32>
    %278 = math.exp %277 : vector<8x128xf32>
    %cst_42 = arith.constant 1.000000e+00 : f32
    %279 = vector.broadcast %cst_42 : f32 to vector<8x128xf32>
    %280 = arith.addf %279, %278 : vector<8x128xf32>
    %281 = arith.divf %279, %280 : vector<8x128xf32>
    %282 = vector.extract_strided_slice %263 {offsets = [0, 256], sizes = [8, 128], strides = [1, 1]} : vector<8x384xf32> to vector<8x128xf32>
    %283 = vector.extract_strided_slice %265 {offsets = [0, 256], sizes = [8, 128], strides = [1, 1]} : vector<8x384xf32> to vector<8x128xf32>
    %284 = vector.broadcast %2 : vector<1x128xf32> to vector<8x128xf32>
    %285 = arith.addf %283, %284 : vector<8x128xf32>
    %286 = arith.mulf %273, %285 : vector<8x128xf32>
    %287 = arith.addf %282, %286 : vector<8x128xf32>
    %288 = math.tanh %287 : vector<8x128xf32>
    %cst_43 = arith.constant 1.000000e+00 : f32
    %289 = vector.broadcast %cst_43 : f32 to vector<8x128xf32>
    %290 = arith.subf %289, %281 : vector<8x128xf32>
    %291 = arith.mulf %290, %288 : vector<8x128xf32>
    %292 = arith.mulf %281, %262 : vector<8x128xf32>
    %293 = arith.addf %291, %292 : vector<8x128xf32>
    %c7_i32 = arith.constant 7 : i32
    %294 = vector.broadcast %c7_i32 : i32 to vector<8x1xi32>
    %295 = arith.cmpi sgt, %0, %294 : vector<8x1xi32>
    %296 = vector.shape_cast %295 : vector<8x1xi1> to vector<8x1xi1>
    %297 = vector.broadcast %296 : vector<8x1xi1> to vector<8x128xi1>
    %298 = arith.select %297, %293, %262 : vector<8x128xi1>, vector<8x128xf32>
    %c0_44 = arith.constant 0 : index
    %c0_45 = arith.constant 0 : index
    %299 = vector.load %arg8[%c0_44, %c0_45] : memref<128x384xbf16, #tpu.memory_space<vmem>>, vector<128x384xbf16>
    %c0_46 = arith.constant 0 : index
    %c0_47 = arith.constant 0 : index
    %300 = vector.load %arg10[%c0_46, %c0_47] : memref<1x128xf32, #tpu.memory_space<vmem>>, vector<1x128xf32>
    %c0_48 = arith.constant 0 : index
    %c0_49 = arith.constant 0 : index
    %301 = vector.load %arg6[%c0_48, %c0_49] : memref<48x128xf32, #tpu.memory_space<vmem>>, vector<48x128xf32>
    %302 = arith.truncf %301 : vector<48x128xf32> to vector<48x128xbf16>
    %c0_50 = arith.constant 0 : index
    %c0_51 = arith.constant 0 : index
    %303 = vector.load %arg7[%c0_50, %c0_51] : memref<128x384xbf16, #tpu.memory_space<vmem>>, vector<128x384xbf16>
    %cst_52 = arith.constant dense<0.000000e+00> : vector<48x384xf32>
    %304 = tpu.matmul %302, %303, %cst_52 {dimension_numbers = #tpu.dot_dimension_numbers<[1], [0], [0], [1], [0, 0, 1, 1], [], []>} : vector<48x128xbf16>, vector<128x384xbf16>, vector<48x384xf32> -> vector<48x384xf32>
    %c0_53 = arith.constant 0 : index
    %c0_54 = arith.constant 0 : index
    %305 = vector.load %arg9[%c0_53, %c0_54] : memref<1x384xf32, #tpu.memory_space<vmem>>, vector<1x384xf32>
    %306 = vector.broadcast %305 : vector<1x384xf32> to vector<48x384xf32>
    %307 = arith.addf %304, %306 : vector<48x384xf32>
    %308 = vector.extract_strided_slice %307 {offsets = [0, 0], sizes = [8, 384], strides = [1, 1]} : vector<48x384xf32> to vector<8x384xf32>
    %309 = arith.truncf %298 : vector<8x128xf32> to vector<8x128xbf16>
    %cst_55 = arith.constant dense<0.000000e+00> : vector<8x384xf32>
    %310 = tpu.matmul %309, %299, %cst_55 {dimension_numbers = #tpu.dot_dimension_numbers<[1], [0], [0], [1], [0, 0, 1, 1], [], []>} : vector<8x128xbf16>, vector<128x384xbf16>, vector<8x384xf32> -> vector<8x384xf32>
    %311 = vector.extract_strided_slice %308 {offsets = [0, 0], sizes = [8, 128], strides = [1, 1]} : vector<8x384xf32> to vector<8x128xf32>
    %312 = vector.extract_strided_slice %310 {offsets = [0, 0], sizes = [8, 128], strides = [1, 1]} : vector<8x384xf32> to vector<8x128xf32>
    %313 = arith.addf %311, %312 : vector<8x128xf32>
    %314 = arith.negf %313 : vector<8x128xf32>
    %315 = math.exp %314 : vector<8x128xf32>
    %cst_56 = arith.constant 1.000000e+00 : f32
    %316 = vector.broadcast %cst_56 : f32 to vector<8x128xf32>
    %317 = arith.addf %316, %315 : vector<8x128xf32>
    %318 = arith.divf %316, %317 : vector<8x128xf32>
    %319 = vector.extract_strided_slice %308 {offsets = [0, 128], sizes = [8, 128], strides = [1, 1]} : vector<8x384xf32> to vector<8x128xf32>
    %320 = vector.extract_strided_slice %310 {offsets = [0, 128], sizes = [8, 128], strides = [1, 1]} : vector<8x384xf32> to vector<8x128xf32>
    %321 = arith.addf %319, %320 : vector<8x128xf32>
    %322 = arith.negf %321 : vector<8x128xf32>
    %323 = math.exp %322 : vector<8x128xf32>
    %cst_57 = arith.constant 1.000000e+00 : f32
    %324 = vector.broadcast %cst_57 : f32 to vector<8x128xf32>
    %325 = arith.addf %324, %323 : vector<8x128xf32>
    %326 = arith.divf %324, %325 : vector<8x128xf32>
    %327 = vector.extract_strided_slice %308 {offsets = [0, 256], sizes = [8, 128], strides = [1, 1]} : vector<8x384xf32> to vector<8x128xf32>
    %328 = vector.extract_strided_slice %310 {offsets = [0, 256], sizes = [8, 128], strides = [1, 1]} : vector<8x384xf32> to vector<8x128xf32>
    %329 = vector.broadcast %300 : vector<1x128xf32> to vector<8x128xf32>
    %330 = arith.addf %328, %329 : vector<8x128xf32>
    %331 = arith.mulf %318, %330 : vector<8x128xf32>
    %332 = arith.addf %327, %331 : vector<8x128xf32>
    %333 = math.tanh %332 : vector<8x128xf32>
    %cst_58 = arith.constant 1.000000e+00 : f32
    %334 = vector.broadcast %cst_58 : f32 to vector<8x128xf32>
    %335 = arith.subf %334, %326 : vector<8x128xf32>
    %336 = arith.mulf %335, %333 : vector<8x128xf32>
    %337 = arith.mulf %326, %298 : vector<8x128xf32>
    %338 = arith.addf %336, %337 : vector<8x128xf32>
    %339 = vector.extract_strided_slice %307 {offsets = [8, 0], sizes = [8, 384], strides = [1, 1]} : vector<48x384xf32> to vector<8x384xf32>
    %340 = arith.truncf %338 : vector<8x128xf32> to vector<8x128xbf16>
    %cst_59 = arith.constant dense<0.000000e+00> : vector<8x384xf32>
    %341 = tpu.matmul %340, %299, %cst_59 {dimension_numbers = #tpu.dot_dimension_numbers<[1], [0], [0], [1], [0, 0, 1, 1], [], []>} : vector<8x128xbf16>, vector<128x384xbf16>, vector<8x384xf32> -> vector<8x384xf32>
    %342 = vector.extract_strided_slice %339 {offsets = [0, 0], sizes = [8, 128], strides = [1, 1]} : vector<8x384xf32> to vector<8x128xf32>
    %343 = vector.extract_strided_slice %341 {offsets = [0, 0], sizes = [8, 128], strides = [1, 1]} : vector<8x384xf32> to vector<8x128xf32>
    %344 = arith.addf %342, %343 : vector<8x128xf32>
    %345 = arith.negf %344 : vector<8x128xf32>
    %346 = math.exp %345 : vector<8x128xf32>
    %cst_60 = arith.constant 1.000000e+00 : f32
    %347 = vector.broadcast %cst_60 : f32 to vector<8x128xf32>
    %348 = arith.addf %347, %346 : vector<8x128xf32>
    %349 = arith.divf %347, %348 : vector<8x128xf32>
    %350 = vector.extract_strided_slice %339 {offsets = [0, 128], sizes = [8, 128], strides = [1, 1]} : vector<8x384xf32> to vector<8x128xf32>
    %351 = vector.extract_strided_slice %341 {offsets = [0, 128], sizes = [8, 128], strides = [1, 1]} : vector<8x384xf32> to vector<8x128xf32>
    %352 = arith.addf %350, %351 : vector<8x128xf32>
    %353 = arith.negf %352 : vector<8x128xf32>
    %354 = math.exp %353 : vector<8x128xf32>
    %cst_61 = arith.constant 1.000000e+00 : f32
    %355 = vector.broadcast %cst_61 : f32 to vector<8x128xf32>
    %356 = arith.addf %355, %354 : vector<8x128xf32>
    %357 = arith.divf %355, %356 : vector<8x128xf32>
    %358 = vector.extract_strided_slice %339 {offsets = [0, 256], sizes = [8, 128], strides = [1, 1]} : vector<8x384xf32> to vector<8x128xf32>
    %359 = vector.extract_strided_slice %341 {offsets = [0, 256], sizes = [8, 128], strides = [1, 1]} : vector<8x384xf32> to vector<8x128xf32>
    %360 = vector.broadcast %300 : vector<1x128xf32> to vector<8x128xf32>
    %361 = arith.addf %359, %360 : vector<8x128xf32>
    %362 = arith.mulf %349, %361 : vector<8x128xf32>
    %363 = arith.addf %358, %362 : vector<8x128xf32>
    %364 = math.tanh %363 : vector<8x128xf32>
    %cst_62 = arith.constant 1.000000e+00 : f32
    %365 = vector.broadcast %cst_62 : f32 to vector<8x128xf32>
    %366 = arith.subf %365, %357 : vector<8x128xf32>
    %367 = arith.mulf %366, %364 : vector<8x128xf32>
    %368 = arith.mulf %357, %338 : vector<8x128xf32>
    %369 = arith.addf %367, %368 : vector<8x128xf32>
    %370 = vector.extract_strided_slice %307 {offsets = [16, 0], sizes = [8, 384], strides = [1, 1]} : vector<48x384xf32> to vector<8x384xf32>
    %371 = arith.truncf %369 : vector<8x128xf32> to vector<8x128xbf16>
    %cst_63 = arith.constant dense<0.000000e+00> : vector<8x384xf32>
    %372 = tpu.matmul %371, %299, %cst_63 {dimension_numbers = #tpu.dot_dimension_numbers<[1], [0], [0], [1], [0, 0, 1, 1], [], []>} : vector<8x128xbf16>, vector<128x384xbf16>, vector<8x384xf32> -> vector<8x384xf32>
    %373 = vector.extract_strided_slice %370 {offsets = [0, 0], sizes = [8, 128], strides = [1, 1]} : vector<8x384xf32> to vector<8x128xf32>
    %374 = vector.extract_strided_slice %372 {offsets = [0, 0], sizes = [8, 128], strides = [1, 1]} : vector<8x384xf32> to vector<8x128xf32>
    %375 = arith.addf %373, %374 : vector<8x128xf32>
    %376 = arith.negf %375 : vector<8x128xf32>
    %377 = math.exp %376 : vector<8x128xf32>
    %cst_64 = arith.constant 1.000000e+00 : f32
    %378 = vector.broadcast %cst_64 : f32 to vector<8x128xf32>
    %379 = arith.addf %378, %377 : vector<8x128xf32>
    %380 = arith.divf %378, %379 : vector<8x128xf32>
    %381 = vector.extract_strided_slice %370 {offsets = [0, 128], sizes = [8, 128], strides = [1, 1]} : vector<8x384xf32> to vector<8x128xf32>
    %382 = vector.extract_strided_slice %372 {offsets = [0, 128], sizes = [8, 128], strides = [1, 1]} : vector<8x384xf32> to vector<8x128xf32>
    %383 = arith.addf %381, %382 : vector<8x128xf32>
    %384 = arith.negf %383 : vector<8x128xf32>
    %385 = math.exp %384 : vector<8x128xf32>
    %cst_65 = arith.constant 1.000000e+00 : f32
    %386 = vector.broadcast %cst_65 : f32 to vector<8x128xf32>
    %387 = arith.addf %386, %385 : vector<8x128xf32>
    %388 = arith.divf %386, %387 : vector<8x128xf32>
    %389 = vector.extract_strided_slice %370 {offsets = [0, 256], sizes = [8, 128], strides = [1, 1]} : vector<8x384xf32> to vector<8x128xf32>
    %390 = vector.extract_strided_slice %372 {offsets = [0, 256], sizes = [8, 128], strides = [1, 1]} : vector<8x384xf32> to vector<8x128xf32>
    %391 = vector.broadcast %300 : vector<1x128xf32> to vector<8x128xf32>
    %392 = arith.addf %390, %391 : vector<8x128xf32>
    %393 = arith.mulf %380, %392 : vector<8x128xf32>
    %394 = arith.addf %389, %393 : vector<8x128xf32>
    %395 = math.tanh %394 : vector<8x128xf32>
    %cst_66 = arith.constant 1.000000e+00 : f32
    %396 = vector.broadcast %cst_66 : f32 to vector<8x128xf32>
    %397 = arith.subf %396, %388 : vector<8x128xf32>
    %398 = arith.mulf %397, %395 : vector<8x128xf32>
    %399 = arith.mulf %388, %369 : vector<8x128xf32>
    %400 = arith.addf %398, %399 : vector<8x128xf32>
    %401 = vector.extract_strided_slice %307 {offsets = [24, 0], sizes = [8, 384], strides = [1, 1]} : vector<48x384xf32> to vector<8x384xf32>
    %402 = arith.truncf %400 : vector<8x128xf32> to vector<8x128xbf16>
    %cst_67 = arith.constant dense<0.000000e+00> : vector<8x384xf32>
    %403 = tpu.matmul %402, %299, %cst_67 {dimension_numbers = #tpu.dot_dimension_numbers<[1], [0], [0], [1], [0, 0, 1, 1], [], []>} : vector<8x128xbf16>, vector<128x384xbf16>, vector<8x384xf32> -> vector<8x384xf32>
    %404 = vector.extract_strided_slice %401 {offsets = [0, 0], sizes = [8, 128], strides = [1, 1]} : vector<8x384xf32> to vector<8x128xf32>
    %405 = vector.extract_strided_slice %403 {offsets = [0, 0], sizes = [8, 128], strides = [1, 1]} : vector<8x384xf32> to vector<8x128xf32>
    %406 = arith.addf %404, %405 : vector<8x128xf32>
    %407 = arith.negf %406 : vector<8x128xf32>
    %408 = math.exp %407 : vector<8x128xf32>
    %cst_68 = arith.constant 1.000000e+00 : f32
    %409 = vector.broadcast %cst_68 : f32 to vector<8x128xf32>
    %410 = arith.addf %409, %408 : vector<8x128xf32>
    %411 = arith.divf %409, %410 : vector<8x128xf32>
    %412 = vector.extract_strided_slice %401 {offsets = [0, 128], sizes = [8, 128], strides = [1, 1]} : vector<8x384xf32> to vector<8x128xf32>
    %413 = vector.extract_strided_slice %403 {offsets = [0, 128], sizes = [8, 128], strides = [1, 1]} : vector<8x384xf32> to vector<8x128xf32>
    %414 = arith.addf %412, %413 : vector<8x128xf32>
    %415 = arith.negf %414 : vector<8x128xf32>
    %416 = math.exp %415 : vector<8x128xf32>
    %cst_69 = arith.constant 1.000000e+00 : f32
    %417 = vector.broadcast %cst_69 : f32 to vector<8x128xf32>
    %418 = arith.addf %417, %416 : vector<8x128xf32>
    %419 = arith.divf %417, %418 : vector<8x128xf32>
    %420 = vector.extract_strided_slice %401 {offsets = [0, 256], sizes = [8, 128], strides = [1, 1]} : vector<8x384xf32> to vector<8x128xf32>
    %421 = vector.extract_strided_slice %403 {offsets = [0, 256], sizes = [8, 128], strides = [1, 1]} : vector<8x384xf32> to vector<8x128xf32>
    %422 = vector.broadcast %300 : vector<1x128xf32> to vector<8x128xf32>
    %423 = arith.addf %421, %422 : vector<8x128xf32>
    %424 = arith.mulf %411, %423 : vector<8x128xf32>
    %425 = arith.addf %420, %424 : vector<8x128xf32>
    %426 = math.tanh %425 : vector<8x128xf32>
    %cst_70 = arith.constant 1.000000e+00 : f32
    %427 = vector.broadcast %cst_70 : f32 to vector<8x128xf32>
    %428 = arith.subf %427, %419 : vector<8x128xf32>
    %429 = arith.mulf %428, %426 : vector<8x128xf32>
    %430 = arith.mulf %419, %400 : vector<8x128xf32>
    %431 = arith.addf %429, %430 : vector<8x128xf32>
    %432 = vector.extract_strided_slice %307 {offsets = [32, 0], sizes = [8, 384], strides = [1, 1]} : vector<48x384xf32> to vector<8x384xf32>
    %433 = arith.truncf %431 : vector<8x128xf32> to vector<8x128xbf16>
    %cst_71 = arith.constant dense<0.000000e+00> : vector<8x384xf32>
    %434 = tpu.matmul %433, %299, %cst_71 {dimension_numbers = #tpu.dot_dimension_numbers<[1], [0], [0], [1], [0, 0, 1, 1], [], []>} : vector<8x128xbf16>, vector<128x384xbf16>, vector<8x384xf32> -> vector<8x384xf32>
    %435 = vector.extract_strided_slice %432 {offsets = [0, 0], sizes = [8, 128], strides = [1, 1]} : vector<8x384xf32> to vector<8x128xf32>
    %436 = vector.extract_strided_slice %434 {offsets = [0, 0], sizes = [8, 128], strides = [1, 1]} : vector<8x384xf32> to vector<8x128xf32>
    %437 = arith.addf %435, %436 : vector<8x128xf32>
    %438 = arith.negf %437 : vector<8x128xf32>
    %439 = math.exp %438 : vector<8x128xf32>
    %cst_72 = arith.constant 1.000000e+00 : f32
    %440 = vector.broadcast %cst_72 : f32 to vector<8x128xf32>
    %441 = arith.addf %440, %439 : vector<8x128xf32>
    %442 = arith.divf %440, %441 : vector<8x128xf32>
    %443 = vector.extract_strided_slice %432 {offsets = [0, 128], sizes = [8, 128], strides = [1, 1]} : vector<8x384xf32> to vector<8x128xf32>
    %444 = vector.extract_strided_slice %434 {offsets = [0, 128], sizes = [8, 128], strides = [1, 1]} : vector<8x384xf32> to vector<8x128xf32>
    %445 = arith.addf %443, %444 : vector<8x128xf32>
    %446 = arith.negf %445 : vector<8x128xf32>
    %447 = math.exp %446 : vector<8x128xf32>
    %cst_73 = arith.constant 1.000000e+00 : f32
    %448 = vector.broadcast %cst_73 : f32 to vector<8x128xf32>
    %449 = arith.addf %448, %447 : vector<8x128xf32>
    %450 = arith.divf %448, %449 : vector<8x128xf32>
    %451 = vector.extract_strided_slice %432 {offsets = [0, 256], sizes = [8, 128], strides = [1, 1]} : vector<8x384xf32> to vector<8x128xf32>
    %452 = vector.extract_strided_slice %434 {offsets = [0, 256], sizes = [8, 128], strides = [1, 1]} : vector<8x384xf32> to vector<8x128xf32>
    %453 = vector.broadcast %300 : vector<1x128xf32> to vector<8x128xf32>
    %454 = arith.addf %452, %453 : vector<8x128xf32>
    %455 = arith.mulf %442, %454 : vector<8x128xf32>
    %456 = arith.addf %451, %455 : vector<8x128xf32>
    %457 = math.tanh %456 : vector<8x128xf32>
    %cst_74 = arith.constant 1.000000e+00 : f32
    %458 = vector.broadcast %cst_74 : f32 to vector<8x128xf32>
    %459 = arith.subf %458, %450 : vector<8x128xf32>
    %460 = arith.mulf %459, %457 : vector<8x128xf32>
    %461 = arith.mulf %450, %431 : vector<8x128xf32>
    %462 = arith.addf %460, %461 : vector<8x128xf32>
    %463 = vector.extract_strided_slice %307 {offsets = [40, 0], sizes = [8, 384], strides = [1, 1]} : vector<48x384xf32> to vector<8x384xf32>
    %464 = arith.truncf %462 : vector<8x128xf32> to vector<8x128xbf16>
    %cst_75 = arith.constant dense<0.000000e+00> : vector<8x384xf32>
    %465 = tpu.matmul %464, %299, %cst_75 {dimension_numbers = #tpu.dot_dimension_numbers<[1], [0], [0], [1], [0, 0, 1, 1], [], []>} : vector<8x128xbf16>, vector<128x384xbf16>, vector<8x384xf32> -> vector<8x384xf32>
    %466 = vector.extract_strided_slice %463 {offsets = [0, 0], sizes = [8, 128], strides = [1, 1]} : vector<8x384xf32> to vector<8x128xf32>
    %467 = vector.extract_strided_slice %465 {offsets = [0, 0], sizes = [8, 128], strides = [1, 1]} : vector<8x384xf32> to vector<8x128xf32>
    %468 = arith.addf %466, %467 : vector<8x128xf32>
    %469 = arith.negf %468 : vector<8x128xf32>
    %470 = math.exp %469 : vector<8x128xf32>
    %cst_76 = arith.constant 1.000000e+00 : f32
    %471 = vector.broadcast %cst_76 : f32 to vector<8x128xf32>
    %472 = arith.addf %471, %470 : vector<8x128xf32>
    %473 = arith.divf %471, %472 : vector<8x128xf32>
    %474 = vector.extract_strided_slice %463 {offsets = [0, 128], sizes = [8, 128], strides = [1, 1]} : vector<8x384xf32> to vector<8x128xf32>
    %475 = vector.extract_strided_slice %465 {offsets = [0, 128], sizes = [8, 128], strides = [1, 1]} : vector<8x384xf32> to vector<8x128xf32>
    %476 = arith.addf %474, %475 : vector<8x128xf32>
    %477 = arith.negf %476 : vector<8x128xf32>
    %478 = math.exp %477 : vector<8x128xf32>
    %cst_77 = arith.constant 1.000000e+00 : f32
    %479 = vector.broadcast %cst_77 : f32 to vector<8x128xf32>
    %480 = arith.addf %479, %478 : vector<8x128xf32>
    %481 = arith.divf %479, %480 : vector<8x128xf32>
    %482 = vector.extract_strided_slice %463 {offsets = [0, 256], sizes = [8, 128], strides = [1, 1]} : vector<8x384xf32> to vector<8x128xf32>
    %483 = vector.extract_strided_slice %465 {offsets = [0, 256], sizes = [8, 128], strides = [1, 1]} : vector<8x384xf32> to vector<8x128xf32>
    %484 = vector.broadcast %300 : vector<1x128xf32> to vector<8x128xf32>
    %485 = arith.addf %483, %484 : vector<8x128xf32>
    %486 = arith.mulf %473, %485 : vector<8x128xf32>
    %487 = arith.addf %482, %486 : vector<8x128xf32>
    %488 = math.tanh %487 : vector<8x128xf32>
    %cst_78 = arith.constant 1.000000e+00 : f32
    %489 = vector.broadcast %cst_78 : f32 to vector<8x128xf32>
    %490 = arith.subf %489, %481 : vector<8x128xf32>
    %491 = arith.mulf %490, %488 : vector<8x128xf32>
    %492 = arith.mulf %481, %462 : vector<8x128xf32>
    %493 = arith.addf %491, %492 : vector<8x128xf32>
    %494 = tpu.concatenate %338, %369, %400, %431, %462, %493 in 0 : vector<8x128xf32>, vector<8x128xf32>, vector<8x128xf32>, vector<8x128xf32>, vector<8x128xf32>, vector<8x128xf32> -> vector<48x128xf32>
    %495 = tpu.iota {dimensions = array<i32: 1>} : vector<1x128xi32>
    %c41_i32 = arith.constant 41 : i32
    %496 = vector.broadcast %c41_i32 : i32 to vector<1x128xi32>
    %497 = arith.cmpi slt, %495, %496 : vector<1x128xi32>
    %cst_79 = arith.constant 0.000000e+00 : f32
    %cst_80 = arith.constant -1.000000e+30 : f32
    %498 = vector.broadcast %cst_79 : f32 to vector<1x128xf32>
    %499 = vector.broadcast %cst_80 : f32 to vector<1x128xf32>
    %500 = arith.select %497, %498, %499 : vector<1x128xi1>, vector<1x128xf32>
    %501 = arith.truncf %494 : vector<48x128xf32> to vector<48x128xbf16>
    %c0_81 = arith.constant 0 : index
    %c0_82 = arith.constant 0 : index
    %502 = vector.load %arg11[%c0_81, %c0_82] : memref<128x128xbf16, #tpu.memory_space<vmem>>, vector<128x128xbf16>
    %cst_83 = arith.constant dense<0.000000e+00> : vector<48x128xf32>
    %503 = tpu.matmul %501, %502, %cst_83 {dimension_numbers = #tpu.dot_dimension_numbers<[1], [0], [0], [1], [0, 0, 1, 1], [], []>} : vector<48x128xbf16>, vector<128x128xbf16>, vector<48x128xf32> -> vector<48x128xf32>
    %c0_84 = arith.constant 0 : index
    %c0_85 = arith.constant 0 : index
    %504 = vector.load %arg12[%c0_84, %c0_85] : memref<1x128xf32, #tpu.memory_space<vmem>>, vector<1x128xf32>
    %505 = vector.broadcast %504 : vector<1x128xf32> to vector<48x128xf32>
    %506 = arith.addf %503, %505 : vector<48x128xf32>
    %507 = vector.broadcast %500 : vector<1x128xf32> to vector<48x128xf32>
    %508 = arith.addf %506, %507 : vector<48x128xf32>
    %cst_86 = arith.constant dense<0xFF800000> : vector<48xf32>
    %509 = vector.multi_reduction <maximumf>, %508, %cst_86 [1] : vector<48x128xf32> to vector<48xf32>
    %510 = vector.shape_cast %509 : vector<48xf32> to vector<48x1xf32>
    %511 = vector.broadcast %510 : vector<48x1xf32> to vector<48x128xf32>
    %512 = arith.subf %508, %511 : vector<48x128xf32>
    %513 = math.exp %512 : vector<48x128xf32>
    %cst_87 = arith.constant dense<0.000000e+00> : vector<48xf32>
    %514 = vector.multi_reduction <add>, %513, %cst_87 [1] : vector<48x128xf32> to vector<48xf32>
    %515 = vector.shape_cast %514 : vector<48xf32> to vector<48x1xf32>
    %516 = math.log %515 : vector<48x1xf32>
    %517 = arith.addf %510, %516 : vector<48x1xf32>
    %518 = vector.broadcast %517 : vector<48x1xf32> to vector<48x128xf32>
    %519 = arith.subf %508, %518 : vector<48x128xf32>
    %c0_88 = arith.constant 0 : index
    %c0_89 = arith.constant 0 : index
    %520 = vector.load %arg13[%c0_88, %c0_89] : memref<48x128xf32, #tpu.memory_space<vmem>>, vector<48x128xf32>
    tpu.vector_store %arg13[%c0_88, %c0_89], %519 {strides = array<i32>} : memref<48x128xf32, #tpu.memory_space<vmem>>, vector<48x128xf32>,
    return
  }
}

</mosaic_0001>

<bundles_post_ra>
// kernel: rnn_forward.1
= control target key start
LH: loop header
LB: loop body
LE: loop exit
PB: predicated region body
PF: predicated region fallthrough
CT: control target
= control target key end

     0   :  { %v5235_v1 = vmov 0   ;;  %v5237_v59 = vmov 0.0   ;;  %vm3735_vm4 = vmmov 0   ;;  %s5217_s2 = inlined_call_operand.vmem [shape: bf16[128,384], index: 2, kind: input, shape index: {}]   ;;  %s5218_s3 = inlined_call_operand.vmem [shape: bf16[128,384], index: 3, kind: input, shape index: {}]   ;;  %s5219_s1 = inlined_call_operand.vmem [shape: f32[64,128], index: 1, kind: input, shape index: {}]   ;;  %s5220_s0 = inlined_call_operand.vmem [shape: s32[8,1], index: 0, kind: input, shape index: {}]   ;;  %s5221_s4 = inlined_call_operand.vmem [shape: f32[1,384], index: 4, kind: input, shape index: {}]   ;;  %s5222_s5 = inlined_call_operand.vmem [shape: f32[1,128], index: 5, kind: input, shape index: {}]   ;;  %s5223_s7 = inlined_call_operand.vmem [shape: bf16[128,384], index: 7, kind: input, shape index: {}]   ;;  %s5224_s6 = inlined_call_operand.vmem [shape: f32[48,128], index: 6, kind: input, shape index: {}]   ;;  %s5225_s8 = inlined_call_operand.vmem [shape: bf16[128,384], index: 8, kind: input, shape index: {}]   ;;  %s5226_s9 = inlined_call_operand.vmem [shape: f32[1,384], index: 9, kind: input, shape index: {}]   ;;  %s5227_s10 = inlined_call_operand.vmem [shape: f32[1,128], index: 10, kind: input, shape index: {}]   ;;  %s5228_s11 = inlined_call_operand.vmem [shape: bf16[128,128], index: 11, kind: input, shape index: {}]   ;;  %s5229_s12 = inlined_call_operand.vmem [shape: f32[1,128], index: 12, kind: input, shape index: {}]   ;;  %s5230_s13 = inlined_call_operand.vmem [shape: f32[48,128], index: 13, kind: output, shape index: {}]  }
   0x1   :  { %v3408_v0 = vld [vmem:[%s5217_s2 + $0x4] ss:$12 sps:$4 sm:$0xff]   ;;  %300 = vmatprep.mubr.bf16.mxu1 %v5235_v1  ;;  %566 = vmatprep.mubr.bf16.mxu0 %v5235_v1  ;;  %v3410_v2 = vld [vmem:[%s5217_s2] ss:$12 sps:$4 sm:$0xff]   ;;  %v3414_v5 = vld [vmem:[%s5217_s2 + $0x1c] ss:$12 sps:$4 sm:$0xff]  }
   0x2   :  { %3406 = vset.pattern.permute.xlu0 %v5235_v1  ;;  %3407 = vset.pattern.permute.xlu1 %v5235_v1  ;;  %v3820_v3 = vld [vmem:[%s5218_s3 + $0x4] ss:$12 sps:$4 sm:$0xff]   ;;  %v3825_v4 = vld [vmem:[%s5218_s3] ss:$12 sps:$4 sm:$0xff]   ;;  %v3837_v7 = vld [vmem:[%s5218_s3 + $0x1c] ss:$12 sps:$4 sm:$0xff]  }
   0x3   :  { %268 = vmatprep.subr.bf16.mxu1 %v3408_v0  ;;  %v3416_v6 = vld [vmem:[%s5217_s2 + $0x18] ss:$12 sps:$4 sm:$0xff]   ;;  %534 = vmatprep.subr.bf16.mxu0 %v3820_v3  ;;  %v3420_v9 = vld [vmem:[%s5217_s2 + $0x34] ss:$12 sps:$4 sm:$0xff]   ;;  %v3422_v10 = vld [vmem:[%s5217_s2 + $0x30] ss:$12 sps:$4 sm:$0xff]  }
   0x4   :  { %269 = vmatpush1.bf16.msra.mxu1 %v3410_v2  ;;  %535 = vmatpush1.bf16.msra.mxu0 %v3825_v4  ;;  %v3843_v8 = vld [vmem:[%s5218_s3 + $0x18] ss:$12 sps:$4 sm:$0xff]   ;;  %v3855_v11 = vld [vmem:[%s5218_s3 + $0x34] ss:$12 sps:$4 sm:$0xff]   ;;  %v3864_v13 = vld [vmem:[%s5218_s3 + $0x30] ss:$12 sps:$4 sm:$0xff]  }
   0x5   :  { %270 = vmatprep.subr.bf16.mxu1 %v3414_v5  ;;  %536 = vmatprep.subr.bf16.mxu0 %v3837_v7  ;;  %v3426_v12 = vld [vmem:[%s5217_s2 + $0x4c] ss:$12 sps:$4 sm:$0xff]   ;;  %v3428_v15 = vld [vmem:[%s5217_s2 + $0x48] ss:$12 sps:$4 sm:$0xff]   ;;  %v3432_v16 = vld [vmem:[%s5217_s2 + $0x64] ss:$12 sps:$4 sm:$0xff]  }
   0x6   :  { %v3870_v14 = vld [vmem:[%s5218_s3 + $0x4c] ss:$12 sps:$4 sm:$0xff]   ;;  %v3882_v17 = vld [vmem:[%s5218_s3 + $0x48] ss:$12 sps:$4 sm:$0xff]   ;;  %v3888_v18 = vld [vmem:[%s5218_s3 + $0x64] ss:$12 sps:$4 sm:$0xff]  }
   0x7   :  { %v3434_v19 = vld [vmem:[%s5217_s2 + $0x60] ss:$12 sps:$4 sm:$0xff]   ;;  %v3438_v20 = vld [vmem:[%s5217_s2 + $0x7c] ss:$12 sps:$4 sm:$0xff]   ;;  %v3440_v23 = vld [vmem:[%s5217_s2 + $0x78] ss:$12 sps:$4 sm:$0xff]  }
   0x8   :  { %271 = vmatpush1.bf16.msra.mxu1 %v3416_v6  ;;  %537 = vmatpush1.bf16.msra.mxu0 %v3843_v8  ;;  %v3900_v21 = vld [vmem:[%s5218_s3 + $0x60] ss:$12 sps:$4 sm:$0xff]   ;;  %v3906_v22 = vld [vmem:[%s5218_s3 + $0x7c] ss:$12 sps:$4 sm:$0xff]   ;;  %v3918_v25 = vld [vmem:[%s5218_s3 + $0x78] ss:$12 sps:$4 sm:$0xff]   ;;  %v5231_v6 = vlaneseq }
   0x9   :  { %272 = vmatprep.subr.bf16.mxu1 %v3420_v9  ;;  %538 = vmatprep.subr.bf16.mxu0 %v3855_v11  ;;  %v3444_v24 = vld [vmem:[%s5217_s2 + $0x94] ss:$12 sps:$4 sm:$0xff]   ;;  %v3446_v27 = vld [vmem:[%s5217_s2 + $0x90] ss:$12 sps:$4 sm:$0xff]   ;;  %v3450_v29 = vld [vmem:[%s5217_s2 + $0xac] ss:$12 sps:$4 sm:$0xff]  }
   0xa   :  { %v3924_v26 = vld [vmem:[%s5218_s3 + $0x94] ss:$12 sps:$4 sm:$0xff]   ;;  %v3932_v28 = vld [vmem:[%s5218_s3 + $0x90] ss:$12 sps:$4 sm:$0xff]   ;;  %v3945_v31 = vld [vmem:[%s5218_s3 + $0xac] ss:$12 sps:$4 sm:$0xff]  }
   0xb   :  { %v3452_v30 = vld [vmem:[%s5217_s2 + $0xa8] ss:$12 sps:$4 sm:$0xff]   ;;  %v79_v32 = vld [vmem:[%s5219_s1] sm:$0xff]  ;;  %v82_v39 = vld [vmem:[%s5219_s1 + $0x18] sm:$0xff]  ;;  %v4121_v9 = vshrl.u32 %v5231_v6, 7 }
   0xc   :  { %273 = vmatpush1.bf16.msra.mxu1 %v3422_v10  ;;  %539 = vmatpush1.bf16.msra.mxu0 %v3864_v13  ;;  %v80_v33 = vld [vmem:[%s5219_s1 + $0x8] sm:$0xff]  ;;  %v81_v38 = vld [vmem:[%s5219_s1 + $0x10] sm:$0xff]  ;;  %v3458_v40 = vld [vmem:[%s5217_s2 + $0x38] ss:$12 sps:$4 sm:$0xff]  }
   0xd   :  { %274 = vmatprep.subr.bf16.mxu1 %v3426_v12  ;;  %540 = vmatprep.subr.bf16.mxu0 %v3870_v14  ;;  %v3456_v34 = vld [vmem:[%s5217_s2 + $0x8] ss:$12 sps:$4 sm:$0xff]   ;;  %v3963_v36 = vpack.c.bf16 %v80_v33, %v79_v32  ;;  %v3457_v37 = vld [vmem:[%s5217_s2 + $0x20] ss:$12 sps:$4 sm:$0xff]   ;;  %v88_v41 = vpack.c.bf16 %v82_v39, %v81_v38  ;;  %v3459_v42 = vld [vmem:[%s5217_s2 + $0x50] ss:$12 sps:$4 sm:$0xff]  }
   0xe   :  { %v3960_v35 = vld [vmem:[%s5218_s3 + $0xa8] ss:$12 sps:$4 sm:$0xff]   ;;  %v3991_v43 = vld [vmem:[%s5220_s0] sm:$0xff]  ;;  %v86_v53 = vld [vmem:[%s5219_s1 + $0x38] sm:$0xff]  ;;  %5241 = vst [vmem:[#allocation2_spill] sm:$0xff] %v4121_v9  ;;  %v5234_v10 = vsub.s32 0, %v4121_v9 }
   0xf   :  { %vm643_vm0 = vcmp.gt.s32.totalorder %v3991_v43, 0  ;;  %vm754_vm1 = vcmp.gt.s32.totalorder %v3991_v43, 1  ;;  %v83_v45 = vld [vmem:[%s5219_s1 + $0x20] sm:$0xff]  ;;  %v84_v46 = vld [vmem:[%s5219_s1 + $0x28] sm:$0xff]  ;;  %vm1087_vm2 = vcmp.gt.s32.totalorder %v3991_v43, 4  ;;  %vm1309_vm3 = vcmp.gt.s32.totalorder %v3991_v43, 6 }
  0x10   :  { %275 = vmatpush1.bf16.msra.mxu1 %v3428_v15  ;;  %541 = vmatpush1.bf16.msra.mxu0 %v3882_v17  ;;  %v644_v44 = vsel %vm643_vm0, 1, %v5235_v1  ;;  %v3460_v47 = vld [vmem:[%s5217_s2 + $0x68] ss:$12 sps:$4 sm:$0xff]   ;;  %v755_v48 = vsel %vm754_vm1, 1, %v5235_v1  ;;  %v89_v49 = vpack.c.bf16 %v84_v46, %v83_v45  ;;  %v3461_v50 = vld [vmem:[%s5217_s2 + $0x80] ss:$12 sps:$4 sm:$0xff]  }
  0x11   :  { %276 = vmatprep.subr.bf16.mxu1 %v3432_v16  ;;  %542 = vmatprep.subr.bf16.mxu0 %v3888_v18  ;;  %v1088_v51 = vsel %vm1087_vm2, 1, %v5235_v1  ;;  %v85_v52 = vld [vmem:[%s5219_s1 + $0x30] sm:$0xff]  ;;  %v3462_v54 = vld [vmem:[%s5217_s2 + $0x98] ss:$12 sps:$4 sm:$0xff]   ;;  %v1310_v55 = vsel %vm1309_vm3, 1, %v5235_v1  ;;  %v5233_v15 = vsub.s32 1, %v4121_v9 }
  0x12   :  { %646 = vperm.xlu0 %3406, %v644_v44   ;;  %v90_v56 = vpack.c.bf16 %v86_v53, %v85_v52  ;;  %v3463_v57 = vld [vmem:[%s5217_s2 + $0xb0] ss:$12 sps:$4 sm:$0xff]   ;;  %v4043_v58 = vld [vmem:[%s5218_s3 + $0x8] ss:$12 sps:$4 sm:$0xff]   ;;  %v4052_v60 = vld [vmem:[%s5218_s3 + $0x20] ss:$12 sps:$4 sm:$0xff]  }
  0x13   :  { %v4059_v61 = vld [vmem:[%s5218_s3 + $0x38] ss:$12 sps:$4 sm:$0xff]   ;;  %v4066_v62 = vld [vmem:[%s5218_s3 + $0x50] ss:$12 sps:$4 sm:$0xff]   ;;  %v4075_v63 = vld [vmem:[%s5218_s3 + $0x68] ss:$12 sps:$4 sm:$0xff]  }
  0x14   :  { %277 = vmatpush1.bf16.msra.mxu1 %v3434_v19  ;;  %543 = vmatpush1.bf16.msra.mxu0 %v3900_v21  ;;  %v4082_v0 = vld [vmem:[%s5218_s3 + $0x80] ss:$12 sps:$4 sm:$0xff]   ;;  %v4089_v2 = vld [vmem:[%s5218_s3 + $0x98] ss:$12 sps:$4 sm:$0xff]   ;;  %v4096_v5 = vld [vmem:[%s5218_s3 + $0xb0] ss:$12 sps:$4 sm:$0xff]  }
  0x15   :  { %278 = vmatprep.subr.bf16.mxu1 %v3438_v20  ;;  %544 = vmatprep.subr.bf16.mxu0 %v3906_v22  ;;  %v123_v12 = vld [vmem:[%s5221_s4] sm:$0x7]  ;;  %vm865_vm7 = vcmp.gt.s32.totalorder %v3991_v43, 2  ;;  %vm976_vm8 = vcmp.gt.s32.totalorder %v3991_v43, 3  ;;  %vm1198_vm9 = vcmp.gt.s32.totalorder %v3991_v43, 5  ;;  %vm1420_vm10 = vcmp.gt.s32.totalorder %v3991_v43, 7 }
  0x16   :  { %757 = vperm.xlu0 %3406, %v755_v48   ;;  %v128_v16 = vrot.slane %v123_v12, %v5234_v10  ;;  %v132_v19 = vrot.slane %v123_v12, %v5233_v15 }
  0x18   :  { %279 = vmatpush1.bf16.msra.mxu1 %v3440_v23  ;;  %545 = vmatpush1.bf16.msra.mxu0 %v3918_v25 }
  0x19   :  { %280 = vmatprep.subr.bf16.mxu1 %v3444_v24  ;;  %546 = vmatprep.subr.bf16.mxu0 %v3924_v26 }
  0x1a   :  { %1090 = vperm.xlu0 %3406, %v1088_v51  }
  0x1c   :  { %281 = vmatpush1.bf16.msra.mxu1 %v3446_v27  ;;  %547 = vmatpush1.bf16.msra.mxu0 %v3932_v28 }
  0x1d   :  { %282 = vmatprep.subr.bf16.mxu1 %v3450_v29  ;;  %548 = vmatprep.subr.bf16.mxu0 %v3945_v31 }
  0x1e   :  { %1312 = vperm.xlu0 %3406, %v1310_v55  }
  0x20   :  { %283 = vmatpush1.bf16.msra.mxu1 %v3452_v30  ;;  %549 = vmatpush1.bf16.msra.mxu0 %v3960_v35 }
  0x21   :  { %3042 = vmatprep.subr.bf16.mxu1 %v3456_v34  ;;  %651 = vmatprep.subr.bf16.mxu0 %v3820_v3 }
  0x23   :  { %301 = vmatmul.mubr.bf16.vlgmr.msra.gmra.mrb[0].mxu1 %v3963_v36  ;;  %567 = vmatmul.mubr.bf16.vlgmr.msra.gmra.mrb[0].mxu0 %v5235_v1 }
  0x24   :  { %3043 = vmatpush3.bf16.msra.mxu1 %v3456_v34  ;;  %310 = vmatprep.mubr.bf16.mxu1 %v5235_v1 }
  0x25   :  { %3044 = vmatprep.subr.bf16.mxu1 %v3457_v37  ;;  %652 = vmatpush1.bf16.msra.mxu0 %v3825_v4 }
  0x26   :  { %683 = vmatprep.mubr.bf16.mxu0 %v5235_v1  ;;  %653 = vmatprep.subr.bf16.mxu0 %v3837_v7 }
  0x28   :  { %3045 = vmatpush3.bf16.msra.mxu1 %v3457_v37 }
  0x29   :  { %3046 = vmatprep.subr.bf16.mxu1 %v3458_v40  ;;  %654 = vmatpush1.bf16.msra.mxu0 %v3843_v8 }
  0x2a   :  { %655 = vmatprep.subr.bf16.mxu0 %v3855_v11 }
  0x2b   :  { %311 = vmatmul.mubr.bf16.gmra.mrb[4].mxu1 %v88_v41 }
  0x2c   :  { %3047 = vmatpush3.bf16.msra.mxu1 %v3458_v40  ;;  %320 = vmatprep.mubr.bf16.mxu1 %v5235_v1 }
  0x2d   :  { %3048 = vmatprep.subr.bf16.mxu1 %v3459_v42  ;;  %656 = vmatpush1.bf16.msra.mxu0 %v3864_v13 }
  0x2e   :  { %657 = vmatprep.subr.bf16.mxu0 %v3870_v14 }
  0x30   :  { %3049 = vmatpush3.bf16.msra.mxu1 %v3459_v42 }
  0x31   :  { %3050 = vmatprep.subr.bf16.mxu1 %v3460_v47  ;;  %658 = vmatpush1.bf16.msra.mxu0 %v3882_v17 }
  0x32   :  { %659 = vmatprep.subr.bf16.mxu0 %v3888_v18 }
  0x33   :  { %321 = vmatmul.mubr.bf16.gmra.mrb[8].mxu1 %v89_v49 }
  0x34   :  { %3051 = vmatpush3.bf16.msra.mxu1 %v3460_v47  ;;  %330 = vmatprep.mubr.bf16.mxu1 %v5235_v1 }
  0x35   :  { %3052 = vmatprep.subr.bf16.mxu1 %v3461_v50  ;;  %660 = vmatpush1.bf16.msra.mxu0 %v3900_v21 }
  0x36   :  { %661 = vmatprep.subr.bf16.mxu0 %v3906_v22 }
  0x38   :  { %3053 = vmatpush3.bf16.msra.mxu1 %v3461_v50 }
  0x39   :  { %3054 = vmatprep.subr.bf16.mxu1 %v3462_v54  ;;  %662 = vmatpush1.bf16.msra.mxu0 %v3918_v25 }
  0x3a   :  { %663 = vmatprep.subr.bf16.mxu0 %v3924_v26 }
  0x3b   :  { %331 = vmatmul.mubr.bf16.gmra.mrb[12].mxu1 %v90_v56 }
  0x3c   :  { %3055 = vmatpush3.bf16.msra.mxu1 %v3462_v54  ;;  %3058 = vmatprep.mubr.bf16.mxu1 %v3963_v36 }
  0x3d   :  { %3056 = vmatprep.subr.bf16.mxu1 %v3463_v57  ;;  %664 = vmatpush1.bf16.msra.mxu0 %v3932_v28 }
  0x3e   :  { %665 = vmatprep.subr.bf16.mxu0 %v3945_v31 }
  0x40   :  { %3057 = vmatpush3.bf16.msra.mxu1 %v3463_v57 }
  0x41   :  { %3066 = vmatprep.subr.bf16.mxu1 %v5237_v59  ;;  %666 = vmatpush1.bf16.msra.mxu0 %v3960_v35 }
  0x42   :  { %762 = vmatprep.subr.bf16.mxu0 %v3820_v3 }
  0x43   :  { %3059 = vmatmul.mubr.bf16.vlgmr.msra.gmra.mrb[16].mxu1 %v88_v41 }
  0x44   :  { %3067 = vmatpush3.bf16.msra.mxu1 %v4043_v58  ;;  %3062 = vmatprep.mubr.bf16.mxu1 %v89_v49 }
  0x45   :  { %3068 = vmatprep.subr.bf16.mxu1 %v5237_v59 }
  0x48   :  { %3069 = vmatpush3.bf16.msra.mxu1 %v4052_v60 }
  0x49   :  { %3070 = vmatprep.subr.bf16.mxu1 %v5237_v59 }
  0x4b   :  { %3063 = vmatmul.mubr.bf16.gmra.mrb[20].mxu1 %v90_v56 }
  0x4c   :  { %3071 = vmatpush3.bf16.msra.mxu1 %v4059_v61  ;;  %3082 = vmatprep.mubr.msk.bf16.mxu1 %vm3735_vm4, %v5237_v59 }
  0x4d   :  { %3072 = vmatprep.subr.bf16.mxu1 %v5237_v59 }
  0x50   :  { %3073 = vmatpush3.bf16.msra.mxu1 %v4066_v62 }
  0x51   :  { %3074 = vmatprep.subr.bf16.mxu1 %v5237_v59 }
  0x54   :  { %3075 = vmatpush3.bf16.msra.mxu1 %v4075_v63 }
  0x55   :  { %3076 = vmatprep.subr.bf16.mxu1 %v5237_v59 }
  0x58   :  { %3077 = vmatpush3.bf16.msra.mxu1 %v4082_v0 }
  0x59   :  { %3078 = vmatprep.subr.bf16.mxu1 %v5237_v59 }
  0x5c   :  { %3079 = vmatpush3.bf16.msra.mxu1 %v4089_v2 }
  0x5d   :  { %3080 = vmatprep.subr.bf16.mxu1 %v5237_v59 }
  0x60   :  { %3081 = vmatpush3.bf16.msra.mxu1 %v4096_v5 }
  0x61   :  { %3086 = vmatprep.subr.bf16.mxu1 %v5237_v59 }
  0x63   :  { %3083 = vmatmul.mubr.bf16.vlgmr.msra.gmra.mrb[24].mxu1 %v5235_v1 }
  0x64   :  { %3087 = vmatpush3.bf16.msra.mxu1 %v4043_v58  ;;  %3102 = vmatprep.mubr.msk.bf16.mxu1 %vm3735_vm4, %v5237_v59 }
  0x65   :  { %3088 = vmatprep.subr.bf16.mxu1 %v5237_v59 }
  0x68   :  { %3089 = vmatpush3.bf16.msra.mxu1 %v4052_v60 }
  0x69   :  { %3090 = vmatprep.subr.bf16.mxu1 %v5237_v59 }
  0x6c   :  { %3091 = vmatpush3.bf16.msra.mxu1 %v4059_v61 }
  0x6d   :  { %3092 = vmatprep.subr.bf16.mxu1 %v5237_v59 }
  0x70   :  { %3093 = vmatpush3.bf16.msra.mxu1 %v4066_v62 }
  0x71   :  { %3094 = vmatprep.subr.bf16.mxu1 %v5237_v59 }
  0x74   :  { %3095 = vmatpush3.bf16.msra.mxu1 %v4075_v63 }
  0x75   :  { %3096 = vmatprep.subr.bf16.mxu1 %v5237_v59 }
  0x78   :  { %3097 = vmatpush3.bf16.msra.mxu1 %v4082_v0 }
  0x79   :  { %3098 = vmatprep.subr.bf16.mxu1 %v5237_v59 }
  0x7c   :  { %3099 = vmatpush3.bf16.msra.mxu1 %v4089_v2 }
  0x7d   :  { %3100 = vmatprep.subr.bf16.mxu1 %v5237_v59 }
  0x80   :  { %3101 = vmatpush3.bf16.msra.mxu1 %v4096_v5 }
  0x81   :  { %3106 = vmatprep.subr.bf16.mxu1 %v5237_v59 }
  0xf6   :  { %v302_v20 = vpop.f32.mrb[0].mxu1  ;;  %v568_v30 = vpop.f32.mrb[0].mxu0 }
  0xf7   :  { %v303_v23 = vadd.f32 %v302_v20, %v128_v16  ;;  %v304_v24 = vpop.f32.mrb[1].mxu1  ;;  %v570_v36 = vpop.f32.mrb[1].mxu0 }
  0xf8   :  { %v305_v27 = vadd.f32 %v304_v24, %v132_v19  ;;  %v306_v29 = vpop.f32.mrb[2].mxu1  ;;  %v572_v39 = vpop.f32.mrb[2].mxu0 }
  0xf9   :  { %v4132_v32 = vadd.f32 %v306_v29, %v128_v16  ;;  %v615_v33 = vadd.f32 %v568_v30, %v303_v23  ;;  %v308_v34 = vpop.f32.mrb[3].mxu1  ;;  %v573_v40 = vpop.f32.mrb[3].mxu0 }
  0xfa   :  { %v4134_v37 = vadd.f32 %v308_v34, %v132_v19  ;;  %v622_v38 = vadd.f32 %v570_v36, %v305_v27  ;;  %v5232_v27 = vsub.s32 2, %v4121_v9  ;;  %v4183_v9 = vpop.permute.xlu0 %646 }
  0xfb   :  { %vm648_vm5 = vcmp.eq.s32.totalorder %v4183_v9, 1 }
  0xfc   :  { %v136_v40 = vrot.slane %v123_v12, %v5232_v27  ;;  %v2790_v6 = vmul.f32 -1.442695, %v622_v38  ;;  %vm2792_vm6 = vmpackc.low %vm648_vm5, %vm648_vm5 }
  0xfe   :  { %v312_v41 = vpop.f32.mrb[4].mxu1 }
  0xff   :  { %v4136_v42 = vadd.f32 %v312_v41, %v128_v16  ;;  %v314_v44 = vpop.f32.mrb[5].mxu1 }
 0x100   :  { %v4138_v45 = vadd.f32 %v314_v44, %v132_v19  ;;  %v316_v46 = vpop.f32.mrb[6].mxu1 }
 0x101   :  { %v4140_v47 = vadd.f32 %v316_v46, %v128_v16  ;;  %v318_v48 = vpop.f32.mrb[7].mxu1 }
 0x102   :  { %v4142_v49 = vadd.f32 %v318_v48, %v132_v19 }
 0x106   :  { %v322_v50 = vpop.f32.mrb[8].mxu1 }
 0x107   :  { %v4144_v51 = vadd.f32 %v322_v50, %v128_v16  ;;  %v324_v52 = vpop.f32.mrb[9].mxu1  ;;  %v2789_v50 = vmul.f32 -1.442695, %v615_v33 }
 0x108   :  { %v4146_v53 = vadd.f32 %v324_v52, %v132_v19  ;;  %v326_v54 = vpop.f32.mrb[10].mxu1 }
 0x109   :  { %v4148_v55 = vadd.f32 %v326_v54, %v128_v16  ;;  %v328_v56 = vpop.f32.mrb[11].mxu1  ;;  %3544 = vpow2.f32 %v2789_v50  ;;  %v4180_v50 = vld [vmem:[%s5222_s5] ss:$0 sm:$0xff] }
 0x10a   :  { %v4150_v57 = vadd.f32 %v328_v56, %v132_v19  ;;  %3546 = vpow2.f32 %v2790_v6 }
 0x10e   :  { %v332_v20 = vpop.f32.mrb[12].mxu1 }
 0x10f   :  { %v4152_v23 = vadd.f32 %v332_v20, %v128_v16  ;;  %v334_v24 = vpop.f32.mrb[13].mxu1 }
 0x110   :  { %v4155_v29 = vadd.f32 %v334_v24, %v132_v19  ;;  %v336_v30 = vpop.f32.mrb[14].mxu1 }
 0x111   :  { %v4157_v34 = vadd.f32 %v336_v30, %v128_v16  ;;  %v338_v36 = vpop.f32.mrb[15].mxu1 }
 0x112   :  { %v4159_v39 = vadd.f32 %v338_v36, %v132_v19 }
 0x113   :  { %v3545_v33 = vpop.eup %3544 }
 0x114   :  { %5242 = vst [vmem:[#allocation3_spill] sm:$0xff] %v4159_v39 }
 0x116   :  { %v3060_v41 = vpop.f32.mrb[16].mxu1 }
 0x117   :  { %v4163_v44 = vadd.f32 %v3060_v41, %v136_v40  ;;  %v375_v46 = vpop.f32.mrb[17].mxu1 }
 0x118   :  { %v3061_v48 = vpop.f32.mrb[18].mxu1 }
 0x119   :  { %v4165_v52 = vadd.f32 %v3061_v48, %v136_v40  ;;  %v378_v54 = vpop.f32.mrb[19].mxu1  ;;  %v619_v48 = vadd.f32 1.0, %v3545_v33 }
 0x11a   :  { %v4167_v56 = vadd.f32 %v378_v54, %v136_v40  ;;  %v3547_v54 = vpop.eup %3546 }
 0x11b   :  { %3548 = vrcp.f32 %v619_v48 }
 0x11e   :  { %v3064_v16 = vpop.f32.mrb[20].mxu1 }
 0x11f   :  { %v4169_v20 = vadd.f32 %v3064_v16, %v136_v40  ;;  %v391_v19 = vpop.f32.mrb[21].mxu1  ;;  %v626_v16 = vadd.f32 1.0, %v3547_v54 }
 0x120   :  { %v4171_v24 = vadd.f32 %v391_v19, %v136_v40  ;;  %v3065_v30 = vpop.f32.mrb[22].mxu1 }
 0x121   :  { %v4173_v12 = vadd.f32 %v3065_v30, %v136_v40  ;;  %v394_v36 = vpop.f32.mrb[23].mxu1  ;;  %3550 = vrcp.f32 %v626_v16 }
 0x122   :  { %v4175_v41 = vadd.f32 %v394_v36, %v136_v40  ;;  %v376_v36 = vadd.f32 %v375_v46, %v136_v40 }
 0x123   :  { %5243 = vst [vmem:[#allocation4_spill] sm:$0xff] %v4173_v12 }
 0x125   :  { %v3549_v15 = vpop.eup %3548 }
 0x12b   :  { %v3551_v33 = vpop.eup %3550 }
 0x12c   :  { %v639_v48 = vsub.f32 1.0, %v3551_v33  ;;  %v641_v39 = vmul.f32 0.0, %v3551_v33 }
 0x136   :  { %v609_v19 = vpop.f32.mrb[24].mxu1 }
 0x137   :  { %v635_v27 = vadd.f32 %v4180_v50, %v609_v19  ;;  %v3084_v30 = vpop.f32.mrb[25].mxu1 }
 0x138   :  { %v612_v10 = vpop.f32.mrb[26].mxu1 }
 0x139   :  { %v636_v38 = vmul.f32 %v3549_v15, %v635_v27  ;;  %v3085_v1 = vpop.f32.mrb[27].mxu1  ;;  %v5245_v10 = vmov 0  }
 0x13a   :  { %v866_v15 = vsel %vm865_vm7, 1, %v5245_v10  ;;  %v977_v27 = vsel %vm976_vm8, 1, %v5245_v10  ;;  %v1421_v40 = vsel %vm1420_vm10, 1, %v5245_v10 }
 0x13b   :  { %v637_v6 = vadd.f32 %v636_v38, %v376_v36  ;;  %868 = vperm.xlu1 %3407, %v866_v15  }
 0x13d   :  { %3552 = vtanh.f32 %v637_v6 }
 0x13f   :  { %979 = vperm.xlu1 %3407, %v977_v27  }
 0x147   :  { %v3553_v59 = vpop.eup %3552 }
 0x148   :  { %v640_v12 = vmul.f32 %v3553_v59, %v639_v48  ;;  %v5244_v59 = vmov 0.0  }
 0x14a   :  { %v4186_v54 = vadd.f32 %v641_v39, %v640_v12  ;;  %v1199_v39 = vsel %vm1198_vm9, 1, %v5245_v10 }
 0x14b   :  { %1201 = vperm.xlu1 %3407, %v1199_v39  }
 0x14c   :  { %v2793_v1 = vpack.c.bf16 %v4186_v54, %v4186_v54 }
 0x14e   :  { %2794 = vmatmul.mubr.msk.bf16.vlgmr.msra.gmra.mrb[4].mxu0 %vm2792_vm6, %v2793_v1  ;;  %3103 = vmatmul.mubr.msk.bf16.vlgmr.msra.gmra.mrb[28].mxu1 %vm2792_vm6, %v2793_v1 }
 0x14f   :  { %763 = vmatpush1.bf16.msra.mxu0 %v3825_v4  ;;  %3107 = vmatpush3.bf16.msra.mxu1 %v4043_v58 }
 0x150   :  { %764 = vmatprep.subr.bf16.mxu0 %v3837_v7  ;;  %3108 = vmatprep.subr.bf16.mxu1 %v5244_v59 }
 0x151   :  { %794 = vmatprep.mubr.bf16.mxu0 %v5245_v10  ;;  %3122 = vmatprep.mubr.msk.bf16.mxu1 %vm3735_vm4, %v5244_v59 }
 0x152   :  { %1423 = vperm.xlu1 %3407, %v1421_v40  }
 0x153   :  { %765 = vmatpush1.bf16.msra.mxu0 %v3843_v8  ;;  %3109 = vmatpush3.bf16.msra.mxu1 %v4052_v60 }
 0x154   :  { %766 = vmatprep.subr.bf16.mxu0 %v3855_v11  ;;  %3110 = vmatprep.subr.bf16.mxu1 %v5244_v59 }
 0x157   :  { %767 = vmatpush1.bf16.msra.mxu0 %v3864_v13  ;;  %3111 = vmatpush3.bf16.msra.mxu1 %v4059_v61 }
 0x158   :  { %768 = vmatprep.subr.bf16.mxu0 %v3870_v14  ;;  %3112 = vmatprep.subr.bf16.mxu1 %v5244_v59 }
 0x15b   :  { %769 = vmatpush1.bf16.msra.mxu0 %v3882_v17  ;;  %3113 = vmatpush3.bf16.msra.mxu1 %v4066_v62 }
 0x15c   :  { %770 = vmatprep.subr.bf16.mxu0 %v3888_v18  ;;  %3114 = vmatprep.subr.bf16.mxu1 %v5244_v59 }
 0x15f   :  { %771 = vmatpush1.bf16.msra.mxu0 %v3900_v21  ;;  %3115 = vmatpush3.bf16.msra.mxu1 %v4075_v63 }
 0x160   :  { %772 = vmatprep.subr.bf16.mxu0 %v3906_v22  ;;  %3116 = vmatprep.subr.bf16.mxu1 %v5244_v59 }
 0x163   :  { %773 = vmatpush1.bf16.msra.mxu0 %v3918_v25  ;;  %3117 = vmatpush3.bf16.msra.mxu1 %v4082_v0 }
 0x164   :  { %774 = vmatprep.subr.bf16.mxu0 %v3924_v26  ;;  %3118 = vmatprep.subr.bf16.mxu1 %v5244_v59 }
 0x167   :  { %775 = vmatpush1.bf16.msra.mxu0 %v3932_v28  ;;  %3119 = vmatpush3.bf16.msra.mxu1 %v4089_v2 }
 0x168   :  { %776 = vmatprep.subr.bf16.mxu0 %v3945_v31  ;;  %3120 = vmatprep.subr.bf16.mxu1 %v5244_v59 }
 0x16b   :  { %777 = vmatpush1.bf16.msra.mxu0 %v3960_v35  ;;  %3121 = vmatpush3.bf16.msra.mxu1 %v4096_v5 }
 0x16c   :  { %873 = vmatprep.subr.bf16.mxu0 %v3820_v3  ;;  %3126 = vmatprep.subr.bf16.mxu1 %v5244_v59 }
 0x221   :  { %v685_v46 = vpop.f32.mrb[4].mxu0  ;;  %v726_v12 = vpop.f32.mrb[28].mxu1 }
 0x222   :  { %v732_v16 = vadd.f32 %v685_v46, %v4132_v32  ;;  %v687_v19 = vpop.f32.mrb[5].mxu0  ;;  %v3104_v30 = vpop.f32.mrb[29].mxu1  ;;  %v746_v32 = vadd.f32 %v4180_v50, %v726_v12 }
 0x223   :  { %v739_v36 = vadd.f32 %v687_v19, %v4134_v37  ;;  %v689_v38 = vpop.f32.mrb[6].mxu0  ;;  %v729_v6 = vpop.f32.mrb[30].mxu1  ;;  %v649_v37 = vsel %vm648_vm5, %v4186_v54, 0.0 }
 0x224   :  { %v2798_v33 = vmul.f32 -1.442695, %v732_v16  ;;  %v690_v48 = vpop.f32.mrb[7].mxu0  ;;  %v3105_v1 = vpop.f32.mrb[31].mxu1 }
 0x225   :  { %v2799_v15 = vmul.f32 -1.442695, %v739_v36  ;;  %v758_v48 = vpop.permute.xlu0 %757 }
 0x226   :  { %3554 = vpow2.f32 %v2798_v33  ;;  %vm759_vm11 = vcmp.eq.s32.totalorder %v758_v48, 1 }
 0x227   :  { %3556 = vpow2.f32 %v2799_v15 }
 0x230   :  { %v3555_v43 = vpop.eup %3554 }
 0x231   :  { %v3557_v27 = vpop.eup %3556  ;;  %v736_v39 = vadd.f32 1.0, %v3555_v43 }
 0x232   :  { %v743_v40 = vadd.f32 1.0, %v3557_v27 }
 0x233   :  { %3558 = vrcp.f32 %v736_v39 }
 0x234   :  { %3560 = vrcp.f32 %v743_v40 }
 0x23d   :  { %v3559_v46 = vpop.eup %3558 }
 0x23e   :  { %v3561_v30 = vpop.eup %3560  ;;  %v747_v16 = vmul.f32 %v3559_v46, %v746_v32 }
 0x23f   :  { %v752_v19 = vmul.f32 %v3561_v30, %v649_v37  ;;  %v750_v38 = vsub.f32 1.0, %v3561_v30 }
 0x240   :  { %v748_v36 = vadd.f32 %v747_v16, %v4167_v56 }
 0x242   :  { %3562 = vtanh.f32 %v748_v36 }
 0x24c   :  { %v3563_v6 = vpop.eup %3562 }
 0x24d   :  { %v751_v33 = vmul.f32 %v3563_v6, %v750_v38 }
 0x24f   :  { %v753_v1 = vadd.f32 %v752_v19, %v751_v33 }
 0x251   :  { %v4243_v15 = vsel %vm759_vm11, %v753_v1, %v649_v37 }
 0x252   :  { %v761_v12 = vpack.c.bf16 %v4243_v15, %v4243_v15 }
 0x254   :  { %795 = vmatmul.mubr.bf16.vlgmr.msra.gmra.mrb[8].mxu0 %v761_v12  ;;  %3123 = vmatmul.mubr.bf16.vlgmr.msra.gmra.mrb[32].mxu1 %v761_v12 }
 0x255   :  { %874 = vmatpush1.bf16.msra.mxu0 %v3825_v4  ;;  %3127 = vmatpush3.bf16.msra.mxu1 %v4043_v58 }
 0x256   :  { %875 = vmatprep.subr.bf16.mxu0 %v3837_v7  ;;  %3128 = vmatprep.subr.bf16.mxu1 %v5244_v59 }
 0x257   :  { %905 = vmatprep.mubr.bf16.mxu0 %v5245_v10  ;;  %3142 = vmatprep.mubr.msk.bf16.mxu1 %vm3735_vm4, %v5244_v59 }
 0x259   :  { %876 = vmatpush1.bf16.msra.mxu0 %v3843_v8  ;;  %3129 = vmatpush3.bf16.msra.mxu1 %v4052_v60 }
 0x25a   :  { %877 = vmatprep.subr.bf16.mxu0 %v3855_v11  ;;  %3130 = vmatprep.subr.bf16.mxu1 %v5244_v59 }
 0x25d   :  { %878 = vmatpush1.bf16.msra.mxu0 %v3864_v13  ;;  %3131 = vmatpush3.bf16.msra.mxu1 %v4059_v61 }
 0x25e   :  { %879 = vmatprep.subr.bf16.mxu0 %v3870_v14  ;;  %3132 = vmatprep.subr.bf16.mxu1 %v5244_v59 }
 0x261   :  { %880 = vmatpush1.bf16.msra.mxu0 %v3882_v17  ;;  %3133 = vmatpush3.bf16.msra.mxu1 %v4066_v62 }
 0x262   :  { %881 = vmatprep.subr.bf16.mxu0 %v3888_v18  ;;  %3134 = vmatprep.subr.bf16.mxu1 %v5244_v59 }
 0x265   :  { %882 = vmatpush1.bf16.msra.mxu0 %v3900_v21  ;;  %3135 = vmatpush3.bf16.msra.mxu1 %v4075_v63 }
 0x266   :  { %883 = vmatprep.subr.bf16.mxu0 %v3906_v22  ;;  %3136 = vmatprep.subr.bf16.mxu1 %v5244_v59 }
 0x269   :  { %884 = vmatpush1.bf16.msra.mxu0 %v3918_v25  ;;  %3137 = vmatpush3.bf16.msra.mxu1 %v4082_v0 }
 0x26a   :  { %885 = vmatprep.subr.bf16.mxu0 %v3924_v26  ;;  %3138 = vmatprep.subr.bf16.mxu1 %v5244_v59 }
 0x26d   :  { %886 = vmatpush1.bf16.msra.mxu0 %v3932_v28  ;;  %3139 = vmatpush3.bf16.msra.mxu1 %v4089_v2 }
 0x26e   :  { %887 = vmatprep.subr.bf16.mxu0 %v3945_v31  ;;  %3140 = vmatprep.subr.bf16.mxu1 %v5244_v59 }
 0x271   :  { %888 = vmatpush1.bf16.msra.mxu0 %v3960_v35  ;;  %3141 = vmatpush3.bf16.msra.mxu1 %v4096_v5 }
 0x272   :  { %984 = vmatprep.subr.bf16.mxu0 %v3820_v3  ;;  %3146 = vmatprep.subr.bf16.mxu1 %v5244_v59 }
 0x327   :  { %v796_v9 = vpop.f32.mrb[8].mxu0  ;;  %v837_v56 = vpop.f32.mrb[32].mxu1 }
 0x328   :  { %v843_v54 = vadd.f32 %v796_v9, %v4136_v42  ;;  %v798_v43 = vpop.f32.mrb[9].mxu0  ;;  %v3124_v27 = vpop.f32.mrb[33].mxu1  ;;  %v857_v6 = vadd.f32 %v4180_v50, %v837_v56 }
 0x329   :  { %v850_v39 = vadd.f32 %v798_v43, %v4138_v45  ;;  %v800_v40 = vpop.f32.mrb[10].mxu0  ;;  %v840_v32 = vpop.f32.mrb[34].mxu1 }
 0x32a   :  { %v2800_v46 = vmul.f32 -1.442695, %v843_v54  ;;  %v801_v30 = vpop.f32.mrb[11].mxu0  ;;  %v3125_v37 = vpop.f32.mrb[35].mxu1 }
 0x32b   :  { %v2801_v16 = vmul.f32 -1.442695, %v850_v39  ;;  %v869_v9 = vpop.permute.xlu1 %868 }
 0x32c   :  { %3564 = vpow2.f32 %v2800_v46  ;;  %vm870_vm12 = vcmp.eq.s32.totalorder %v869_v9, 1  ;;  %v4383_v9 = vld [vmem:[%s5218_s3 + $0x4c] ss:$12 sps:$4 sm:$0xff]  }
 0x32d   :  { %3566 = vpow2.f32 %v2801_v16 }
 0x336   :  { %v3565_v19 = vpop.eup %3564 }
 0x337   :  { %v847_v3 = vadd.f32 1.0, %v3565_v19  ;;  %v3567_v36 = vpop.eup %3566 }
 0x338   :  { %v854_v38 = vadd.f32 1.0, %v3567_v36 }
 0x339   :  { %3568 = vrcp.f32 %v847_v3 }
 0x33a   :  { %3570 = vrcp.f32 %v854_v38  ;;  %v980_v38 = vpop.permute.xlu1 %979 }
 0x33b   :  { %vm981_vm13 = vcmp.eq.s32.totalorder %v980_v38, 1 }
 0x343   :  { %v3569_v42 = vpop.eup %3568 }
 0x344   :  { %v858_v33 = vmul.f32 %v3569_v42, %v857_v6  ;;  %v3571_v48 = vpop.eup %3570 }
 0x345   :  { %v861_v1 = vsub.f32 1.0, %v3571_v48  ;;  %v863_v43 = vmul.f32 %v3571_v48, %v4243_v15  ;;  %v4362_v48 = vld [vmem:[%s5218_s3 + $0x18] ss:$12 sps:$4 sm:$0xff]  }
 0x346   :  { %v859_v45 = vadd.f32 %v858_v33, %v4163_v44 }
 0x348   :  { %3572 = vtanh.f32 %v859_v45  ;;  %v4352_v45 = vld [vmem:[%s5218_s3 + $0x1c] ss:$12 sps:$4 sm:$0xff]  }
 0x352   :  { %v3573_v12 = vpop.eup %3572 }
 0x353   :  { %v862_v54 = vmul.f32 %v3573_v12, %v861_v1  ;;  %v4369_v1 = vld [vmem:[%s5218_s3 + $0x34] ss:$12 sps:$4 sm:$0xff]   ;;  %v4376_v12 = vld [vmem:[%s5218_s3 + $0x30] ss:$12 sps:$4 sm:$0xff]  }
 0x355   :  { %v864_v27 = vadd.f32 %v863_v43, %v862_v54  ;;  %v4390_v54 = vld [vmem:[%s5218_s3 + $0x48] ss:$12 sps:$4 sm:$0xff]   ;;  %v4397_v43 = vld [vmem:[%s5218_s3 + $0x64] ss:$12 sps:$4 sm:$0xff]  }
 0x357   :  { %v4288_v39 = vsel %vm870_vm12, %v864_v27, %v4243_v15  ;;  %v4404_v27 = vld [vmem:[%s5218_s3 + $0x60] ss:$12 sps:$4 sm:$0xff]  }
 0x358   :  { %v872_v56 = vpack.c.bf16 %v4288_v39, %v4288_v39 }
 0x35a   :  { %906 = vmatmul.mubr.bf16.vlgmr.msra.gmra.mrb[12].mxu0 %v872_v56  ;;  %3143 = vmatmul.mubr.bf16.vlgmr.msra.gmra.mrb[36].mxu1 %v872_v56  ;;  %v4418_v56 = vld [vmem:[%s5218_s3 + $0x78] ss:$12 sps:$4 sm:$0xff]  }
 0x35b   :  { %985 = vmatpush1.bf16.msra.mxu0 %v3825_v4  ;;  %3147 = vmatpush3.bf16.msra.mxu1 %v4043_v58  ;;  %v4328_v4 = vld [vmem:[%s5218_s3 + $0x4] ss:$12 sps:$4 sm:$0xff]  }
 0x35c   :  { %986 = vmatprep.subr.bf16.mxu0 %v3837_v7  ;;  %3148 = vmatprep.subr.bf16.mxu1 %v5244_v59 }
 0x35d   :  { %1016 = vmatprep.mubr.bf16.mxu0 %v5245_v10  ;;  %3162 = vmatprep.mubr.msk.bf16.mxu1 %vm3735_vm4, %v5244_v59 }
 0x35f   :  { %987 = vmatpush1.bf16.msra.mxu0 %v3843_v8  ;;  %3149 = vmatpush3.bf16.msra.mxu1 %v4052_v60 }
 0x360   :  { %988 = vmatprep.subr.bf16.mxu0 %v3855_v11  ;;  %3150 = vmatprep.subr.bf16.mxu1 %v5244_v59 }
 0x363   :  { %989 = vmatpush1.bf16.msra.mxu0 %v3864_v13  ;;  %3151 = vmatpush3.bf16.msra.mxu1 %v4059_v61 }
 0x364   :  { %990 = vmatprep.subr.bf16.mxu0 %v3870_v14  ;;  %3152 = vmatprep.subr.bf16.mxu1 %v5244_v59 }
 0x367   :  { %991 = vmatpush1.bf16.msra.mxu0 %v3882_v17  ;;  %3153 = vmatpush3.bf16.msra.mxu1 %v4066_v62 }
 0x368   :  { %992 = vmatprep.subr.bf16.mxu0 %v3888_v18  ;;  %3154 = vmatprep.subr.bf16.mxu1 %v5244_v59 }
 0x36b   :  { %993 = vmatpush1.bf16.msra.mxu0 %v3900_v21  ;;  %3155 = vmatpush3.bf16.msra.mxu1 %v4075_v63 }
 0x36c   :  { %994 = vmatprep.subr.bf16.mxu0 %v3906_v22  ;;  %3156 = vmatprep.subr.bf16.mxu1 %v5244_v59 }
 0x36f   :  { %995 = vmatpush1.bf16.msra.mxu0 %v3918_v25  ;;  %3157 = vmatpush3.bf16.msra.mxu1 %v4082_v0 }
 0x370   :  { %996 = vmatprep.subr.bf16.mxu0 %v3924_v26  ;;  %3158 = vmatprep.subr.bf16.mxu1 %v5244_v59 }
 0x373   :  { %997 = vmatpush1.bf16.msra.mxu0 %v3932_v28  ;;  %3159 = vmatpush3.bf16.msra.mxu1 %v4089_v2 }
 0x374   :  { %998 = vmatprep.subr.bf16.mxu0 %v3945_v31  ;;  %3160 = vmatprep.subr.bf16.mxu1 %v5244_v59 }
 0x377   :  { %999 = vmatpush1.bf16.msra.mxu0 %v3960_v35  ;;  %3161 = vmatpush3.bf16.msra.mxu1 %v4096_v5 }
 0x378   :  { %1095 = vmatprep.subr.bf16.mxu0 %v4328_v4  ;;  %3166 = vmatprep.subr.bf16.mxu1 %v5244_v59 }
 0x42d   :  { %v907_v7 = vpop.f32.mrb[12].mxu0  ;;  %v948_v8 = vpop.f32.mrb[36].mxu1 }
 0x42e   :  { %v954_v11 = vadd.f32 %v907_v7, %v4140_v47  ;;  %v909_v13 = vpop.f32.mrb[13].mxu0  ;;  %v3144_v14 = vpop.f32.mrb[37].mxu1  ;;  %v968_v46 = vadd.f32 %v4180_v50, %v948_v8  ;;  %v4425_v7 = vld [vmem:[%s5218_s3 + $0x94] ss:$12 sps:$4 sm:$0xff]   ;;  %v4432_v8 = vld [vmem:[%s5218_s3 + $0x90] ss:$12 sps:$4 sm:$0xff]  }
 0x42f   :  { %v961_v17 = vadd.f32 %v909_v13, %v4142_v49  ;;  %v911_v18 = vpop.f32.mrb[14].mxu0  ;;  %v951_v21 = vpop.f32.mrb[38].mxu1 }
 0x430   :  { %v2802_v22 = vmul.f32 -1.442695, %v954_v11  ;;  %v912_v25 = vpop.f32.mrb[15].mxu0  ;;  %v3145_v26 = vpop.f32.mrb[39].mxu1 }
 0x431   :  { %v2803_v28 = vmul.f32 -1.442695, %v961_v17 }
 0x432   :  { %3574 = vpow2.f32 %v2802_v22 }
 0x433   :  { %3576 = vpow2.f32 %v2803_v28 }
 0x43c   :  { %v3575_v44 = vpop.eup %3574 }
 0x43d   :  { %v958_v15 = vadd.f32 1.0, %v3575_v44  ;;  %v3577_v40 = vpop.eup %3576 }
 0x43e   :  { %v965_v32 = vadd.f32 1.0, %v3577_v40 }
 0x43f   :  { %3578 = vrcp.f32 %v958_v15 }
 0x440   :  { %3580 = vrcp.f32 %v965_v32 }
 0x449   :  { %v3579_v47 = vpop.eup %3578 }
 0x44a   :  { %v969_v30 = vmul.f32 %v3579_v47, %v968_v46  ;;  %v3581_v37 = vpop.eup %3580 }
 0x44b   :  { %v972_v16 = vsub.f32 1.0, %v3581_v37  ;;  %v974_v3 = vmul.f32 %v3581_v37, %v4288_v39 }
 0x44c   :  { %v970_v49 = vadd.f32 %v969_v30, %v4165_v52  ;;  %v4345_v52 = vld [vmem:[%s5218_s3] ss:$12 sps:$4 sm:$0xff]  }
 0x44e   :  { %3582 = vtanh.f32 %v970_v49 }
 0x458   :  { %v3583_v19 = vpop.eup %3582 }
 0x459   :  { %v973_v36 = vmul.f32 %v3583_v19, %v972_v16 }
 0x45b   :  { %v975_v6 = vadd.f32 %v974_v3, %v973_v36  ;;  %v1091_v3 = vpop.permute.xlu0 %1090 }
 0x45c   :  { %vm1092_vm14 = vcmp.eq.s32.totalorder %v1091_v3, 1 }
 0x45d   :  { %v4338_v42 = vsel %vm981_vm13, %v975_v6, %v4288_v39  ;;  %v4411_v39 = vld [vmem:[%s5218_s3 + $0x7c] ss:$12 sps:$4 sm:$0xff]  }
 0x45e   :  { %v983_v33 = vpack.c.bf16 %v4338_v42, %v4338_v42 }
 0x460   :  { %1017 = vmatmul.mubr.bf16.vlgmr.msra.gmra.mrb[16].mxu0 %v983_v33  ;;  %3163 = vmatmul.mubr.bf16.vlgmr.msra.gmra.mrb[40].mxu1 %v983_v33 }
 0x461   :  { %1096 = vmatpush1.bf16.msra.mxu0 %v4345_v52  ;;  %3167 = vmatpush3.bf16.msra.mxu1 %v4043_v58 }
 0x462   :  { %1097 = vmatprep.subr.bf16.mxu0 %v4352_v45  ;;  %3168 = vmatprep.subr.bf16.mxu1 %v5244_v59 }
 0x463   :  { %1127 = vmatprep.mubr.bf16.mxu0 %v5245_v10  ;;  %3182 = vmatprep.mubr.msk.bf16.mxu1 %vm3735_vm4, %v5244_v59 }
 0x465   :  { %1098 = vmatpush1.bf16.msra.mxu0 %v4362_v48  ;;  %3169 = vmatpush3.bf16.msra.mxu1 %v4052_v60 }
 0x466   :  { %1099 = vmatprep.subr.bf16.mxu0 %v4369_v1  ;;  %3170 = vmatprep.subr.bf16.mxu1 %v5244_v59 }
 0x469   :  { %1100 = vmatpush1.bf16.msra.mxu0 %v4376_v12  ;;  %3171 = vmatpush3.bf16.msra.mxu1 %v4059_v61 }
 0x46a   :  { %1101 = vmatprep.subr.bf16.mxu0 %v4383_v9  ;;  %3172 = vmatprep.subr.bf16.mxu1 %v5244_v59 }
 0x46d   :  { %1102 = vmatpush1.bf16.msra.mxu0 %v4390_v54  ;;  %3173 = vmatpush3.bf16.msra.mxu1 %v4066_v62 }
 0x46e   :  { %1103 = vmatprep.subr.bf16.mxu0 %v4397_v43  ;;  %3174 = vmatprep.subr.bf16.mxu1 %v5244_v59 }
 0x471   :  { %1104 = vmatpush1.bf16.msra.mxu0 %v4404_v27  ;;  %3175 = vmatpush3.bf16.msra.mxu1 %v4075_v63 }
 0x472   :  { %1105 = vmatprep.subr.bf16.mxu0 %v4411_v39  ;;  %3176 = vmatprep.subr.bf16.mxu1 %v5244_v59 }
 0x475   :  { %1106 = vmatpush1.bf16.msra.mxu0 %v4418_v56  ;;  %3177 = vmatpush3.bf16.msra.mxu1 %v4082_v0 }
 0x476   :  { %1107 = vmatprep.subr.bf16.mxu0 %v4425_v7  ;;  %3178 = vmatprep.subr.bf16.mxu1 %v5244_v59 }
 0x479   :  { %1108 = vmatpush1.bf16.msra.mxu0 %v4432_v8  ;;  %3179 = vmatpush3.bf16.msra.mxu1 %v4089_v2 }
 0x47a   :  { %1109 = vmatprep.subr.bf16.mxu0 %v3945_v31  ;;  %3180 = vmatprep.subr.bf16.mxu1 %v5244_v59 }
 0x47d   :  { %1110 = vmatpush1.bf16.msra.mxu0 %v3960_v35  ;;  %3181 = vmatpush3.bf16.msra.mxu1 %v4096_v5 }
 0x47e   :  { %1206 = vmatprep.subr.bf16.mxu0 %v4328_v4  ;;  %3186 = vmatprep.subr.bf16.mxu1 %v5244_v59 }
 0x533   :  { %v1018_v11 = vpop.f32.mrb[16].mxu0  ;;  %v1059_v13 = vpop.f32.mrb[40].mxu1 }
 0x534   :  { %v1065_v14 = vadd.f32 %v1018_v11, %v4144_v51  ;;  %v1020_v17 = vpop.f32.mrb[17].mxu0  ;;  %v3164_v18 = vpop.f32.mrb[41].mxu1  ;;  %v1079_v46 = vadd.f32 %v4180_v50, %v1059_v13 }
 0x535   :  { %v1072_v21 = vadd.f32 %v1020_v17, %v4146_v53  ;;  %v1022_v22 = vpop.f32.mrb[18].mxu0  ;;  %v1062_v31 = vpop.f32.mrb[42].mxu1 }
 0x536   :  { %v2804_v25 = vmul.f32 -1.442695, %v1065_v14  ;;  %v1023_v26 = vpop.f32.mrb[19].mxu0  ;;  %v3165_v28 = vpop.f32.mrb[43].mxu1 }
 0x537   :  { %v2805_v35 = vmul.f32 -1.442695, %v1072_v21 }
 0x538   :  { %3584 = vpow2.f32 %v2804_v25 }
 0x539   :  { %3586 = vpow2.f32 %v2805_v35 }
 0x542   :  { %v3585_v44 = vpop.eup %3584 }
 0x543   :  { %v1069_v15 = vadd.f32 1.0, %v3585_v44  ;;  %v3587_v40 = vpop.eup %3586 }
 0x544   :  { %v1076_v32 = vadd.f32 1.0, %v3587_v40 }
 0x545   :  { %3588 = vrcp.f32 %v1069_v15  ;;  %v1202_v15 = vpop.permute.xlu1 %1201 }
 0x546   :  { %3590 = vrcp.f32 %v1076_v32  ;;  %vm1203_vm15 = vcmp.eq.s32.totalorder %v1202_v15, 1  ;;  %v3499_v15 = vld [vmem:[%s5223_s7 + $0x98] ss:$12 sps:$4 sm:$0xff]  }
 0x54f   :  { %v3589_v51 = vpop.eup %3588 }
 0x550   :  { %v1080_v47 = vmul.f32 %v3589_v51, %v1079_v46  ;;  %v3591_v30 = vpop.eup %3590 }
 0x551   :  { %v1083_v49 = vsub.f32 1.0, %v3591_v30  ;;  %v1085_v16 = vmul.f32 %v3591_v30, %v4338_v42 }
 0x552   :  { %v1081_v53 = vadd.f32 %v1080_v47, %v4171_v24 }
 0x554   :  { %3592 = vtanh.f32 %v1081_v53 }
 0x55e   :  { %v3593_v37 = vpop.eup %3592 }
 0x55f   :  { %v1084_v19 = vmul.f32 %v3593_v37, %v1083_v49 }
 0x561   :  { %v1086_v36 = vadd.f32 %v1085_v16, %v1084_v19 }
 0x563   :  { %v4448_v38 = vsel %vm1092_vm14, %v1086_v36, %v4338_v42 }
 0x564   :  { %v1094_v6 = vpack.c.bf16 %v4448_v38, %v4448_v38 }
 0x566   :  { %1128 = vmatmul.mubr.bf16.vlgmr.msra.gmra.mrb[20].mxu0 %v1094_v6  ;;  %3183 = vmatmul.mubr.bf16.vlgmr.msra.gmra.mrb[44].mxu1 %v1094_v6 }
 0x567   :  { %1207 = vmatpush1.bf16.msra.mxu0 %v4345_v52  ;;  %3187 = vmatpush3.bf16.msra.mxu1 %v4043_v58  ;;  %v4484_v58 = vld [vmem:[%s5218_s3 + $0xac] ss:$12 sps:$4 sm:$0xff]  }
 0x568   :  { %1208 = vmatprep.subr.bf16.mxu0 %v4352_v45  ;;  %3188 = vmatprep.subr.bf16.mxu1 %v5244_v59 }
 0x569   :  { %1238 = vmatprep.mubr.bf16.mxu0 %v5245_v10  ;;  %3202 = vmatprep.mubr.msk.bf16.mxu1 %vm3735_vm4, %v5244_v59 }
 0x56b   :  { %1209 = vmatpush1.bf16.msra.mxu0 %v4362_v48  ;;  %3189 = vmatpush3.bf16.msra.mxu1 %v4052_v60  ;;  %v4491_v60 = vld [vmem:[%s5218_s3 + $0xa8] ss:$12 sps:$4 sm:$0xff]  }
 0x56c   :  { %1210 = vmatprep.subr.bf16.mxu0 %v4369_v1  ;;  %3190 = vmatprep.subr.bf16.mxu1 %v5244_v59 }
 0x56f   :  { %1211 = vmatpush1.bf16.msra.mxu0 %v4376_v12  ;;  %3191 = vmatpush3.bf16.msra.mxu1 %v4059_v61 }
 0x570   :  { %1212 = vmatprep.subr.bf16.mxu0 %v4383_v9  ;;  %3192 = vmatprep.subr.bf16.mxu1 %v5244_v59 }
 0x573   :  { %1213 = vmatpush1.bf16.msra.mxu0 %v4390_v54  ;;  %3193 = vmatpush3.bf16.msra.mxu1 %v4066_v62 }
 0x574   :  { %1214 = vmatprep.subr.bf16.mxu0 %v4397_v43  ;;  %3194 = vmatprep.subr.bf16.mxu1 %v5244_v59 }
 0x577   :  { %1215 = vmatpush1.bf16.msra.mxu0 %v4404_v27  ;;  %3195 = vmatpush3.bf16.msra.mxu1 %v4075_v63 }
 0x578   :  { %1216 = vmatprep.subr.bf16.mxu0 %v4411_v39  ;;  %3196 = vmatprep.subr.bf16.mxu1 %v5244_v59 }
 0x57b   :  { %1217 = vmatpush1.bf16.msra.mxu0 %v4418_v56  ;;  %3197 = vmatpush3.bf16.msra.mxu1 %v4082_v0 }
 0x57c   :  { %1218 = vmatprep.subr.bf16.mxu0 %v4425_v7  ;;  %3198 = vmatprep.subr.bf16.mxu1 %v5244_v59 }
 0x57f   :  { %1219 = vmatpush1.bf16.msra.mxu0 %v4432_v8  ;;  %3199 = vmatpush3.bf16.msra.mxu1 %v4089_v2 }
 0x580   :  { %1220 = vmatprep.subr.bf16.mxu0 %v4484_v58  ;;  %3200 = vmatprep.subr.bf16.mxu1 %v5244_v59 }
 0x583   :  { %1221 = vmatpush1.bf16.msra.mxu0 %v4491_v60  ;;  %3201 = vmatpush3.bf16.msra.mxu1 %v4096_v5 }
 0x584   :  { %1317 = vmatprep.subr.bf16.mxu0 %v4328_v4  ;;  %3206 = vmatprep.subr.bf16.mxu1 %v5244_v59 }
 0x639   :  { %v1129_v61 = vpop.f32.mrb[20].mxu0  ;;  %v1170_v62 = vpop.f32.mrb[44].mxu1 }
 0x63a   :  { %v1176_v63 = vadd.f32 %v1129_v61, %v4148_v55  ;;  %v1131_v0 = vpop.f32.mrb[21].mxu0  ;;  %v3184_v2 = vpop.f32.mrb[45].mxu1  ;;  %v1190_v22 = vadd.f32 %v4180_v50, %v1170_v62 }
 0x63b   :  { %v1183_v24 = vadd.f32 %v1131_v0, %v4150_v57  ;;  %v1133_v42 = vpop.f32.mrb[22].mxu0  ;;  %v1173_v33 = vpop.f32.mrb[46].mxu1 }
 0x63c   :  { %v2806_v11 = vmul.f32 -1.442695, %v1176_v63  ;;  %v1134_v13 = vpop.f32.mrb[23].mxu0  ;;  %v3185_v14 = vpop.f32.mrb[47].mxu1 }
 0x63d   :  { %v2807_v17 = vmul.f32 -1.442695, %v1183_v24  ;;  %v1313_v63 = vpop.permute.xlu0 %1312  ;;  %v3476_v13 = vld [vmem:[%s5223_s7 + $0x18] ss:$12 sps:$4 sm:$0xff]   ;;  %v3479_v14 = vld [vmem:[%s5223_s7 + $0x20] ss:$12 sps:$4 sm:$0xff]  }
 0x63e   :  { %3594 = vpow2.f32 %v2806_v11  ;;  %vm1314_vm0 = vcmp.eq.s32.totalorder %v1313_v63, 1  ;;  %v3478_v11 = vld [vmem:[%s5223_s7 + $0x1c] ss:$12 sps:$4 sm:$0xff]  }
 0x63f   :  { %3596 = vpow2.f32 %v2807_v17  ;;  %v3482_v17 = vld [vmem:[%s5223_s7 + $0x34] ss:$12 sps:$4 sm:$0xff]   ;;  %v4822_v63 = vld [vmem:[%s5225_s8 + $0xb0] ss:$12 sps:$4 sm:$0xff]  }
 0x648   :  { %v3595_v5 = vpop.eup %3594 }
 0x649   :  { %v1180_v4 = vadd.f32 1.0, %v3595_v5  ;;  %v3597_v18 = vpop.eup %3596  ;;  %v3480_v5 = vld [vmem:[%s5223_s7 + $0x30] ss:$12 sps:$4 sm:$0xff]  }
 0x64a   :  { %v1187_v21 = vadd.f32 1.0, %v3597_v18  ;;  %v3486_v18 = vld [vmem:[%s5223_s7 + $0x4c] ss:$12 sps:$4 sm:$0xff]  }
 0x64b   :  { %3598 = vrcp.f32 %v1180_v4  ;;  %v3483_v4 = vld [vmem:[%s5223_s7 + $0x38] ss:$12 sps:$4 sm:$0xff]  }
 0x64c   :  { %3600 = vrcp.f32 %v1187_v21  ;;  %v3484_v21 = vld [vmem:[%s5223_s7 + $0x48] ss:$12 sps:$4 sm:$0xff]  }
 0x655   :  { %v3599_v55 = vpop.eup %3598 }
 0x656   :  { %v1191_v31 = vmul.f32 %v3599_v55, %v1190_v22  ;;  %v3601_v25 = vpop.eup %3600  ;;  %v3487_v22 = vld [vmem:[%s5223_s7 + $0x50] ss:$12 sps:$4 sm:$0xff]  }
 0x657   :  { %v1194_v26 = vsub.f32 1.0, %v3601_v25  ;;  %v1196_v35 = vmul.f32 %v3601_v25, %v4448_v38  ;;  %v3490_v55 = vld [vmem:[%s5223_s7 + $0x64] ss:$12 sps:$4 sm:$0xff]   ;;  %v3494_v25 = vld [vmem:[%s5223_s7 + $0x7c] ss:$12 sps:$4 sm:$0xff]  }
 0x658   :  { %v1192_v57 = vadd.f32 %v1191_v31, %v4175_v41  ;;  %v3724_v41 = vld [vmem:[%s5218_s3 + $0x8] ss:$12 sps:$4 sm:$0xff]   ;;  %v3488_v31 = vld [vmem:[%s5223_s7 + $0x60] ss:$12 sps:$4 sm:$0xff]  }
 0x65a   :  { %3602 = vtanh.f32 %v1192_v57  ;;  %v3491_v57 = vld [vmem:[%s5223_s7 + $0x68] ss:$12 sps:$4 sm:$0xff]  }
 0x664   :  { %v3603_v28 = vpop.eup %3602 }
 0x665   :  { %v1195_v44 = vmul.f32 %v3603_v28, %v1194_v26  ;;  %v3492_v26 = vld [vmem:[%s5223_s7 + $0x78] ss:$12 sps:$4 sm:$0xff]   ;;  %v3495_v28 = vld [vmem:[%s5223_s7 + $0x80] ss:$12 sps:$4 sm:$0xff]  }
 0x667   :  { %v1197_v40 = vadd.f32 %v1196_v35, %v1195_v44  ;;  %v3498_v35 = vld [vmem:[%s5223_s7 + $0x94] ss:$12 sps:$4 sm:$0xff]   ;;  %v3496_v44 = vld [vmem:[%s5223_s7 + $0x90] ss:$12 sps:$4 sm:$0xff]  }
 0x669   :  { %v4503_v32 = vsel %vm1203_vm15, %v1197_v40, %v4448_v38  ;;  %v3502_v40 = vld [vmem:[%s5223_s7 + $0xac] ss:$12 sps:$4 sm:$0xff]  }
 0x66a   :  { %v1205_v46 = vpack.c.bf16 %v4503_v32, %v4503_v32 }
 0x66c   :  { %1239 = vmatmul.mubr.bf16.vlgmr.msra.gmra.mrb[24].mxu0 %v1205_v46  ;;  %3203 = vmatmul.mubr.bf16.vlgmr.msra.gmra.mrb[48].mxu1 %v1205_v46  ;;  %v3503_v46 = vld [vmem:[%s5223_s7 + $0xb0] ss:$12 sps:$4 sm:$0xff]  }
 0x66d   :  { %1318 = vmatpush1.bf16.msra.mxu0 %v4345_v52  ;;  %3207 = vmatpush3.bf16.msra.mxu1 %v3724_v41  ;;  %v3725_v52 = vld [vmem:[%s5218_s3 + $0x20] ss:$12 sps:$4 sm:$0xff]  }
 0x66e   :  { %1319 = vmatprep.subr.bf16.mxu0 %v4352_v45  ;;  %3208 = vmatprep.subr.bf16.mxu1 %v5244_v59  ;;  %v3726_v45 = vld [vmem:[%s5218_s3 + $0x38] ss:$12 sps:$4 sm:$0xff]  }
 0x66f   :  { %1349 = vmatprep.mubr.bf16.mxu0 %v5245_v10  ;;  %3222 = vmatprep.mubr.msk.bf16.mxu1 %vm3735_vm4, %v5244_v59  ;;  %v1460_v41 = vld [vmem:[%s5224_s6] sm:$0xff] }
 0x671   :  { %1320 = vmatpush1.bf16.msra.mxu0 %v4362_v48  ;;  %3209 = vmatpush3.bf16.msra.mxu1 %v3725_v52  ;;  %v3727_v48 = vld [vmem:[%s5218_s3 + $0x50] ss:$12 sps:$4 sm:$0xff]   ;;  %v1461_v52 = vld [vmem:[%s5224_s6 + $0x8] sm:$0xff] }
 0x672   :  { %1321 = vmatprep.subr.bf16.mxu0 %v4369_v1  ;;  %3210 = vmatprep.subr.bf16.mxu1 %v5244_v59  ;;  %v3728_v1 = vld [vmem:[%s5218_s3 + $0x68] ss:$12 sps:$4 sm:$0xff]  }
 0x675   :  { %1322 = vmatpush1.bf16.msra.mxu0 %v4376_v12  ;;  %3211 = vmatpush3.bf16.msra.mxu1 %v3726_v45  ;;  %v3729_v12 = vld [vmem:[%s5218_s3 + $0x80] ss:$12 sps:$4 sm:$0xff]   ;;  %v1466_v45 = vpack.c.bf16 %v1461_v52, %v1460_v41 }
 0x676   :  { %1323 = vmatprep.subr.bf16.mxu0 %v4383_v9  ;;  %3212 = vmatprep.subr.bf16.mxu1 %v5244_v59  ;;  %v3730_v9 = vld [vmem:[%s5218_s3 + $0x98] ss:$12 sps:$4 sm:$0xff]  }
 0x679   :  { %1324 = vmatpush1.bf16.msra.mxu0 %v4390_v54  ;;  %3213 = vmatpush3.bf16.msra.mxu1 %v3727_v48  ;;  %v3731_v54 = vld [vmem:[%s5218_s3 + $0xb0] ss:$12 sps:$4 sm:$0xff]  }
 0x67a   :  { %1325 = vmatprep.subr.bf16.mxu0 %v4397_v43  ;;  %3214 = vmatprep.subr.bf16.mxu1 %v5244_v59  ;;  %v3474_v43 = vld [vmem:[%s5223_s7 + $0x4] ss:$12 sps:$4 sm:$0xff]  }
 0x67b   :  { %v4658_v48 = vld [vmem:[%s5225_s8 + $0x4] ss:$12 sps:$4 sm:$0xff]  }
 0x67d   :  { %1326 = vmatpush1.bf16.msra.mxu0 %v4404_v27  ;;  %3215 = vmatpush3.bf16.msra.mxu1 %v3728_v1  ;;  %v4664_v1 = vld [vmem:[%s5225_s8] ss:$12 sps:$4 sm:$0xff]  }
 0x67e   :  { %1327 = vmatprep.subr.bf16.mxu0 %v4411_v39  ;;  %3216 = vmatprep.subr.bf16.mxu1 %v5244_v59 }
 0x681   :  { %1328 = vmatpush1.bf16.msra.mxu0 %v4418_v56  ;;  %3217 = vmatpush3.bf16.msra.mxu1 %v3729_v12  ;;  %v4671_v12 = vld [vmem:[%s5225_s8 + $0x8] ss:$12 sps:$4 sm:$0xff]  }
 0x682   :  { %1329 = vmatprep.subr.bf16.mxu0 %v4425_v7  ;;  %3218 = vmatprep.subr.bf16.mxu1 %v5244_v59 }
 0x685   :  { %1330 = vmatpush1.bf16.msra.mxu0 %v4432_v8  ;;  %3219 = vmatpush3.bf16.msra.mxu1 %v3730_v9  ;;  %v4680_v9 = vld [vmem:[%s5225_s8 + $0x1c] ss:$12 sps:$4 sm:$0xff]  }
 0x686   :  { %1331 = vmatprep.subr.bf16.mxu0 %v4484_v58  ;;  %3220 = vmatprep.subr.bf16.mxu1 %v5244_v59 }
 0x689   :  { %1332 = vmatpush1.bf16.msra.mxu0 %v4491_v60  ;;  %3221 = vmatpush3.bf16.msra.mxu1 %v3731_v54  ;;  %v4686_v54 = vld [vmem:[%s5225_s8 + $0x18] ss:$12 sps:$4 sm:$0xff]  }
 0x68a   :  { %3226 = vmatprep.subr.bf16.mxu1 %v5244_v59  ;;  %1646 = vmatprep.subr.bf16.mxu0 %v3474_v43  ;;  %v4691_v43 = vld [vmem:[%s5225_s8 + $0x20] ss:$12 sps:$4 sm:$0xff]  }
 0x73f   :  { %v1240_v27 = vpop.f32.mrb[24].mxu0  ;;  %v1281_v39 = vpop.f32.mrb[48].mxu1 }
 0x740   :  { %v1287_v56 = vadd.f32 %v1240_v27, %v4152_v23  ;;  %v1242_v7 = vpop.f32.mrb[25].mxu0  ;;  %v3204_v8 = vpop.f32.mrb[49].mxu1  ;;  %v1301_v6 = vadd.f32 %v4180_v50, %v1281_v39  ;;  %v3472_v50 = vld [vmem:[%s5223_s7] ss:$12 sps:$4 sm:$0xff]   ;;  %v4705_v39 = vld [vmem:[%s5225_s8 + $0x30] ss:$12 sps:$4 sm:$0xff]  }
 0x741   :  { %v1294_v51 = vadd.f32 %v1242_v7, %v4155_v29  ;;  %v1244_v47 = vpop.f32.mrb[26].mxu0  ;;  %v1284_v53 = vpop.f32.mrb[50].mxu1  ;;  %v4699_v27 = vld [vmem:[%s5225_s8 + $0x34] ss:$12 sps:$4 sm:$0xff]   ;;  %v4718_v7 = vld [vmem:[%s5225_s8 + $0x4c] ss:$12 sps:$4 sm:$0xff]  }
 0x742   :  { %v2808_v30 = vmul.f32 -1.442695, %v1287_v56  ;;  %v1245_v49 = vpop.f32.mrb[27].mxu0  ;;  %v3205_v37 = vpop.f32.mrb[51].mxu1  ;;  %v4710_v56 = vld [vmem:[%s5225_s8 + $0x38] ss:$12 sps:$4 sm:$0xff]  }
 0x743   :  { %v2809_v16 = vmul.f32 -1.442695, %v1294_v51  ;;  %v1462_v8 = vld [vmem:[%s5224_s6 + $0x10] sm:$0xff]  ;;  %v1463_v51 = vld [vmem:[%s5224_s6 + $0x18] sm:$0xff]  ;;  %v4749_v37 = vld [vmem:[%s5225_s8 + $0x60] ss:$12 sps:$4 sm:$0xff]  }
 0x744   :  { %3604 = vpow2.f32 %v2808_v30  ;;  %v1467_v47 = vpack.c.bf16 %v1463_v51, %v1462_v8  ;;  %v4730_v53 = vld [vmem:[%s5225_s8 + $0x48] ss:$12 sps:$4 sm:$0xff]   ;;  %v4735_v30 = vld [vmem:[%s5225_s8 + $0x50] ss:$12 sps:$4 sm:$0xff]   ;;  %v5248_v51 = vld [vmem:[#allocation2_spill] sm:$0xff] }
 0x745   :  { %3606 = vpow2.f32 %v2809_v16  ;;  %v4743_v49 = vld [vmem:[%s5225_s8 + $0x64] ss:$12 sps:$4 sm:$0xff]   ;;  %v4754_v16 = vld [vmem:[%s5225_s8 + $0x68] ss:$12 sps:$4 sm:$0xff]  }
 0x74e   :  { %v3605_v19 = vpop.eup %3604 }
 0x74f   :  { %v1291_v3 = vadd.f32 1.0, %v3605_v19  ;;  %v3607_v36 = vpop.eup %3606  ;;  %v4765_v19 = vld [vmem:[%s5225_s8 + $0x7c] ss:$12 sps:$4 sm:$0xff]  }
 0x750   :  { %v1298_v38 = vadd.f32 1.0, %v3607_v36  ;;  %v1465_v36 = vld [vmem:[%s5224_s6 + $0x28] sm:$0xff] }
 0x751   :  { %3608 = vrcp.f32 %v1291_v3  ;;  %v1464_v3 = vld [vmem:[%s5224_s6 + $0x20] sm:$0xff] }
 0x752   :  { %3610 = vrcp.f32 %v1298_v38  ;;  %v1468_v38 = vpack.c.bf16 %v1465_v36, %v1464_v3 }
 0x75b   :  { %v3609_v23 = vpop.eup %3608 }
 0x75c   :  { %v1302_v58 = vmul.f32 %v3609_v23, %v1301_v6  ;;  %v3611_v60 = vpop.eup %3610  ;;  %v4777_v6 = vld [vmem:[%s5225_s8 + $0x78] ss:$12 sps:$4 sm:$0xff]   ;;  %v4782_v23 = vld [vmem:[%s5225_s8 + $0x80] ss:$12 sps:$4 sm:$0xff]  }
 0x75d   :  { %v1305_v61 = vsub.f32 1.0, %v3611_v60  ;;  %v1307_v0 = vmul.f32 %v3611_v60, %v4503_v32  ;;  %v4801_v60 = vld [vmem:[%s5225_s8 + $0x98] ss:$12 sps:$4 sm:$0xff]  }
 0x75e   :  { %v1303_v29 = vadd.f32 %v1302_v58, %v4169_v20  ;;  %v3475_v20 = vld [vmem:[%s5223_s7 + $0x8] ss:$12 sps:$4 sm:$0xff]  }
 0x75f   :  { %v4790_v58 = vld [vmem:[%s5225_s8 + $0x94] ss:$12 sps:$4 sm:$0xff]  }
 0x760   :  { %3612 = vtanh.f32 %v1303_v29  ;;  %v4796_v29 = vld [vmem:[%s5225_s8 + $0x90] ss:$12 sps:$4 sm:$0xff]  }
 0x76a   :  { %v3613_v62 = vpop.eup %3612 }
 0x76b   :  { %v1306_v2 = vmul.f32 %v3613_v62, %v1305_v61  ;;  %v4810_v61 = vld [vmem:[%s5225_s8 + $0xac] ss:$12 sps:$4 sm:$0xff]   ;;  %v4817_v62 = vld [vmem:[%s5225_s8 + $0xa8] ss:$12 sps:$4 sm:$0xff]  }
 0x76d   :  { %v1308_v24 = vadd.f32 %v1307_v0, %v1306_v2 }
 0x76f   :  { %v4566_v42 = vsel %vm1314_vm0, %v1308_v24, %v4503_v32  ;;  %v3500_v32 = vld [vmem:[%s5223_s7 + $0xa8] ss:$12 sps:$4 sm:$0xff]  }
 0x770   :  { %v1316_v33 = vpack.c.bf16 %v4566_v42, %v4566_v42 }
 0x772   :  { %1350 = vmatmul.mubr.bf16.vlgmr.msra.gmra.mrb[28].mxu0 %v1316_v33  ;;  %3223 = vmatmul.mubr.bf16.vlgmr.msra.gmra.mrb[52].mxu1 %v1316_v33  ;;  %v5246_v33 = vld [vmem:[#allocation3_spill] sm:$0xff] }
 0x773   :  { %1647 = vmatpush1.bf16.msra.mxu0 %v3472_v50  ;;  %3227 = vmatpush3.bf16.msra.mxu1 %v3475_v20 }
 0x774   :  { %1648 = vmatprep.subr.bf16.mxu0 %v3478_v11  ;;  %3228 = vmatprep.subr.bf16.mxu1 %v5244_v59 }
 0x775   :  { %1678 = vmatprep.mubr.bf16.mxu0 %v5245_v10  ;;  %3242 = vmatprep.mubr.msk.bf16.mxu1 %vm3735_vm4, %v5244_v59 }
 0x777   :  { %1649 = vmatpush1.bf16.msra.mxu0 %v3476_v13  ;;  %3229 = vmatpush3.bf16.msra.mxu1 %v3479_v14 }
 0x778   :  { %1650 = vmatprep.subr.bf16.mxu0 %v3482_v17  ;;  %3230 = vmatprep.subr.bf16.mxu1 %v5244_v59 }
 0x77b   :  { %1651 = vmatpush1.bf16.msra.mxu0 %v3480_v5  ;;  %3231 = vmatpush3.bf16.msra.mxu1 %v3483_v4 }
 0x77c   :  { %1652 = vmatprep.subr.bf16.mxu0 %v3486_v18  ;;  %3232 = vmatprep.subr.bf16.mxu1 %v5244_v59 }
 0x77f   :  { %1653 = vmatpush1.bf16.msra.mxu0 %v3484_v21  ;;  %3233 = vmatpush3.bf16.msra.mxu1 %v3487_v22 }
 0x780   :  { %1654 = vmatprep.subr.bf16.mxu0 %v3490_v55  ;;  %3234 = vmatprep.subr.bf16.mxu1 %v5244_v59 }
 0x783   :  { %1655 = vmatpush1.bf16.msra.mxu0 %v3488_v31  ;;  %3235 = vmatpush3.bf16.msra.mxu1 %v3491_v57 }
 0x784   :  { %1656 = vmatprep.subr.bf16.mxu0 %v3494_v25  ;;  %3236 = vmatprep.subr.bf16.mxu1 %v5244_v59 }
 0x787   :  { %1657 = vmatpush1.bf16.msra.mxu0 %v3492_v26  ;;  %3237 = vmatpush3.bf16.msra.mxu1 %v3495_v28  ;;  %v5247_v28 = vld [vmem:[#allocation4_spill] sm:$0xff] }
 0x788   :  { %1658 = vmatprep.subr.bf16.mxu0 %v3498_v35  ;;  %3238 = vmatprep.subr.bf16.mxu1 %v5244_v59 }
 0x78b   :  { %1659 = vmatpush1.bf16.msra.mxu0 %v3496_v44  ;;  %3239 = vmatpush3.bf16.msra.mxu1 %v3499_v15 }
 0x78c   :  { %1660 = vmatprep.subr.bf16.mxu0 %v3502_v40  ;;  %3240 = vmatprep.subr.bf16.mxu1 %v5244_v59 }
 0x78f   :  { %1661 = vmatpush1.bf16.msra.mxu0 %v3500_v32  ;;  %3241 = vmatpush3.bf16.msra.mxu1 %v3503_v46  ;;  %v1424_v32 = vpop.permute.xlu1 %1423 }
 0x790   :  { %3254 = vmatprep.subr.bf16.mxu1 %v5244_v59  ;;  %1895 = vmatprep.subr.bf16.mxu0 %v4658_v48  ;;  %vm1425_vm1 = vcmp.eq.s32.totalorder %v1424_v32, 1 }
 0x792   :  { %1679 = vmatmul.mubr.bf16.vlgmr.msra.gmra.mrb[32].mxu0 %v1466_v45  ;;  %3243 = vmatmul.mubr.bf16.vlgmr.msra.gmra.mrb[56].mxu1 %v1466_v45 }
 0x793   :  { %1688 = vmatprep.mubr.bf16.mxu0 %v5245_v10  ;;  %1896 = vmatpush1.bf16.msra.mxu0 %v4664_v1 }
 0x794   :  { %3246 = vmatprep.mubr.msk.bf16.mxu1 %vm3735_vm4, %v5244_v59  ;;  %3255 = vmatpush3.bf16.msra.mxu1 %v4671_v12 }
 0x795   :  { %3256 = vmatprep.subr.bf16.mxu1 %v5244_v59  ;;  %1897 = vmatprep.subr.bf16.mxu0 %v4680_v9 }
 0x797   :  { %1898 = vmatpush1.bf16.msra.mxu0 %v4686_v54 }
 0x798   :  { %3257 = vmatpush3.bf16.msra.mxu1 %v4691_v43  ;;  %1899 = vmatprep.subr.bf16.mxu0 %v4699_v27 }
 0x799   :  { %3258 = vmatprep.subr.bf16.mxu1 %v5244_v59 }
 0x79a   :  { %1689 = vmatmul.mubr.bf16.gmra.mrb[36].mxu0 %v1467_v47  ;;  %3247 = vmatmul.mubr.bf16.gmra.mrb[60].mxu1 %v1467_v47  ;;  %v5249_v47 = vsub.s32 0, %v5248_v51 }
 0x79b   :  { %1900 = vmatpush1.bf16.msra.mxu0 %v4705_v39  ;;  %1698 = vmatprep.mubr.bf16.mxu0 %v5245_v10 }
 0x79c   :  { %3259 = vmatpush3.bf16.msra.mxu1 %v4710_v56  ;;  %1901 = vmatprep.subr.bf16.mxu0 %v4718_v7 }
 0x79d   :  { %3260 = vmatprep.subr.bf16.mxu1 %v5244_v59  ;;  %3250 = vmatprep.mubr.msk.bf16.mxu1 %vm3735_vm4, %v5244_v59 }
 0x79f   :  { %1902 = vmatpush1.bf16.msra.mxu0 %v4730_v53 }
 0x7a0   :  { %3261 = vmatpush3.bf16.msra.mxu1 %v4735_v30  ;;  %1903 = vmatprep.subr.bf16.mxu0 %v4743_v49 }
 0x7a1   :  { %3262 = vmatprep.subr.bf16.mxu1 %v5244_v59 }
 0x7a2   :  { %1699 = vmatmul.mubr.bf16.gmra.mrb[40].mxu0 %v1468_v38  ;;  %3251 = vmatmul.mubr.bf16.gmra.mrb[64].mxu1 %v1468_v38  ;;  %v5250_v38 = vsub.s32 1, %v5248_v51 }
 0x7a3   :  { %1904 = vmatpush1.bf16.msra.mxu0 %v4749_v37  ;;  %1927 = vmatprep.mubr.bf16.mxu0 %v5245_v10 }
 0x7a4   :  { %3263 = vmatpush3.bf16.msra.mxu1 %v4754_v16  ;;  %1905 = vmatprep.subr.bf16.mxu0 %v4765_v19 }
 0x7a5   :  { %3264 = vmatprep.subr.bf16.mxu1 %v5244_v59  ;;  %3270 = vmatprep.mubr.msk.bf16.mxu1 %vm3735_vm4, %v5244_v59 }
 0x7a7   :  { %1906 = vmatpush1.bf16.msra.mxu0 %v4777_v6 }
 0x7a8   :  { %3265 = vmatpush3.bf16.msra.mxu1 %v4782_v23  ;;  %1907 = vmatprep.subr.bf16.mxu0 %v4790_v58 }
 0x7a9   :  { %3266 = vmatprep.subr.bf16.mxu1 %v5244_v59 }
 0x7ab   :  { %1908 = vmatpush1.bf16.msra.mxu0 %v4796_v29 }
 0x7ac   :  { %3267 = vmatpush3.bf16.msra.mxu1 %v4801_v60  ;;  %1909 = vmatprep.subr.bf16.mxu0 %v4810_v61 }
 0x7ad   :  { %3268 = vmatprep.subr.bf16.mxu1 %v5244_v59 }
 0x7af   :  { %1910 = vmatpush1.bf16.msra.mxu0 %v4817_v62 }
 0x7b0   :  { %3269 = vmatpush3.bf16.msra.mxu1 %v4822_v63  ;;  %2005 = vmatprep.subr.bf16.mxu0 %v4658_v48 }
 0x7b1   :  { %3274 = vmatprep.subr.bf16.mxu1 %v5244_v59 }
 0x845   :  { %v1351_v0 = vpop.f32.mrb[28].mxu0  ;;  %v1392_v2 = vpop.f32.mrb[52].mxu1 }
 0x846   :  { %v1398_v24 = vadd.f32 %v1351_v0, %v4157_v34  ;;  %v1353_v50 = vpop.f32.mrb[29].mxu0  ;;  %v3224_v20 = vpop.f32.mrb[53].mxu1  ;;  %v3732_v34 = vld [vmem:[%s5222_s5] ss:$0 sm:$0xff] }
 0x847   :  { %v1405_v11 = vadd.f32 %v1353_v50, %v5246_v33  ;;  %v1355_v13 = vpop.f32.mrb[30].mxu0  ;;  %v1395_v14 = vpop.f32.mrb[54].mxu1  ;;  %v1412_v57 = vadd.f32 %v3732_v34, %v1392_v2 }
 0x848   :  { %v2810_v17 = vmul.f32 -1.442695, %v1398_v24  ;;  %v1356_v5 = vpop.f32.mrb[31].mxu0  ;;  %v3225_v4 = vpop.f32.mrb[55].mxu1  ;;  %v5251_v24 = vsub.s32 2, %v5248_v51 }
 0x849   :  { %v2811_v18 = vmul.f32 -1.442695, %v1405_v11 }
 0x84a   :  { %3614 = vpow2.f32 %v2810_v17 }
 0x84b   :  { %3616 = vpow2.f32 %v2811_v18 }
 0x854   :  { %v3615_v21 = vpop.eup %3614 }
 0x855   :  { %v1402_v22 = vadd.f32 1.0, %v3615_v21  ;;  %v3617_v55 = vpop.eup %3616 }
 0x856   :  { %v1409_v31 = vadd.f32 1.0, %v3617_v55 }
 0x857   :  { %3618 = vrcp.f32 %v1402_v22 }
 0x858   :  { %3620 = vrcp.f32 %v1409_v31 }
 0x861   :  { %v3619_v25 = vpop.eup %3618 }
 0x862   :  { %v1413_v26 = vmul.f32 %v3619_v25, %v1412_v57  ;;  %v3621_v44 = vpop.eup %3620 }
 0x863   :  { %v1416_v15 = vsub.f32 1.0, %v3621_v44  ;;  %v1418_v41 = vmul.f32 %v3621_v44, %v4566_v42 }
 0x864   :  { %v1414_v35 = vadd.f32 %v1413_v26, %v5247_v28 }
 0x865   :  { %v1680_v36 = vpop.f32.mrb[32].mxu0  ;;  %v1743_v33 = vpop.f32.mrb[56].mxu1 }
 0x866   :  { %3622 = vtanh.f32 %v1414_v35  ;;  %v1682_v2 = vpop.f32.mrb[33].mxu0  ;;  %v3244_v14 = vpop.f32.mrb[57].mxu1 }
 0x867   :  { %v1684_v20 = vpop.f32.mrb[34].mxu0  ;;  %v1746_v5 = vpop.f32.mrb[58].mxu1 }
 0x868   :  { %v1686_v13 = vpop.f32.mrb[35].mxu0  ;;  %v3245_v18 = vpop.f32.mrb[59].mxu1 }
 0x86d   :  { %v1690_v21 = vpop.f32.mrb[36].mxu0  ;;  %v1751_v22 = vpop.f32.mrb[60].mxu1 }
 0x86e   :  { %v1692_v31 = vpop.f32.mrb[37].mxu0  ;;  %v3248_v57 = vpop.f32.mrb[61].mxu1 }
 0x86f   :  { %v1694_v26 = vpop.f32.mrb[38].mxu0  ;;  %v1754_v28 = vpop.f32.mrb[62].mxu1 }
 0x870   :  { %v3623_v40 = vpop.eup %3622  ;;  %v1696_v44 = vpop.f32.mrb[39].mxu0 }
 0x871   :  { %v1417_v46 = vmul.f32 %v3623_v40, %v1416_v15  ;;  %v3249_v40 = vpop.f32.mrb[63].mxu1 }
 0x873   :  { %v1419_v52 = vadd.f32 %v1418_v41, %v1417_v46 }
 0x875   :  { %v4838_v45 = vsel %vm1425_vm1, %v1419_v52, %v4566_v42  ;;  %v1501_v42 = vld [vmem:[%s5226_s9] sm:$0x7]  ;;  %v1700_v46 = vpop.f32.mrb[40].mxu0  ;;  %v1759_v41 = vpop.f32.mrb[64].mxu1 }
 0x876   :  { %v1766_v8 = vpack.c.bf16 %v4838_v45, %v4838_v45  ;;  %v1506_v3 = vrot.slane %v1501_v42, %v5249_v47  ;;  %v1510_v0 = vrot.slane %v1501_v42, %v5250_v38  ;;  %v4886_v50 = vrot.slane %v1501_v42, %v5251_v24  ;;  %v3252_v51 = vpop.f32.mrb[65].mxu1 }
 0x877   :  { %v1762_v24 = vpop.f32.mrb[66].mxu1 }
 0x878   :  { %1928 = vmatmul.mubr.bf16.vlgmr.msra.gmra.mrb[44].mxu0 %v1766_v8  ;;  %3271 = vmatmul.mubr.bf16.vlgmr.msra.gmra.mrb[68].mxu1 %v1766_v8  ;;  %v4888_v11 = vadd.f32 %v1684_v20, %v1506_v3  ;;  %v4890_v17 = vadd.f32 %v1686_v13, %v1510_v0  ;;  %v4893_v4 = vadd.f32 %v1746_v5, %v4886_v50  ;;  %v1702_v8 = vpop.f32.mrb[41].mxu0  ;;  %v3253_v5 = vpop.f32.mrb[67].mxu1 }
 0x879   :  { %2006 = vmatpush1.bf16.msra.mxu0 %v4664_v1  ;;  %3275 = vmatpush3.bf16.msra.mxu1 %v4671_v12  ;;  %v4895_v55 = vadd.f32 %v1690_v21, %v1506_v3  ;;  %v4898_v34 = vadd.f32 %v1751_v22, %v4886_v50  ;;  %v4900_v25 = vadd.f32 %v1692_v31, %v1510_v0  ;;  %v1704_v38 = vpop.f32.mrb[42].mxu0 }
 0x87a   :  { %2007 = vmatprep.subr.bf16.mxu0 %v4680_v9  ;;  %3276 = vmatprep.subr.bf16.mxu1 %v5244_v59  ;;  %v4902_v35 = vadd.f32 %v1694_v26, %v1506_v3  ;;  %v4905_v15 = vadd.f32 %v1754_v28, %v4886_v50  ;;  %v4907_v32 = vadd.f32 %v1696_v44, %v1510_v0  ;;  %v1706_v13 = vpop.f32.mrb[43].mxu0 }
 0x87b   :  { %2037 = vmatprep.mubr.bf16.mxu0 %v5245_v10  ;;  %3290 = vmatprep.mubr.msk.bf16.mxu1 %vm3735_vm4, %v5244_v59  ;;  %v4909_v52 = vadd.f32 %v1700_v46, %v1506_v3  ;;  %v4912_v42 = vadd.f32 %v1759_v41, %v4886_v50  ;;  %v4914_v47 = vadd.f32 %v1702_v8, %v1510_v0 }
 0x87c   :  { %v4916_v20 = vadd.f32 %v1704_v38, %v1506_v3  ;;  %v4919_v14 = vadd.f32 %v1762_v24, %v4886_v50  ;;  %v4921_v18 = vadd.f32 %v1706_v13, %v1510_v0  ;;  %v1681_v21 = vadd.f32 %v1680_v36, %v1506_v3  ;;  %v4926_v3 = vld [vmem:[%s5227_s10] ss:$0 sm:$0xff] }
 0x87d   :  { %2008 = vmatpush1.bf16.msra.mxu0 %v4686_v54  ;;  %3277 = vmatpush3.bf16.msra.mxu1 %v4691_v43  ;;  %v1683_v22 = vadd.f32 %v1682_v2, %v1510_v0 }
 0x87e   :  { %2009 = vmatprep.subr.bf16.mxu0 %v4699_v27  ;;  %3278 = vmatprep.subr.bf16.mxu1 %v5244_v59  ;;  %5252 = vst [vmem:[#allocation3_spill] sm:$0xff] %v4916_v20 }
 0x881   :  { %2010 = vmatpush1.bf16.msra.mxu0 %v4705_v39  ;;  %3279 = vmatpush3.bf16.msra.mxu1 %v4710_v56 }
 0x882   :  { %2011 = vmatprep.subr.bf16.mxu0 %v4718_v7  ;;  %3280 = vmatprep.subr.bf16.mxu1 %v5244_v59 }
 0x885   :  { %2012 = vmatpush1.bf16.msra.mxu0 %v4730_v53  ;;  %3281 = vmatpush3.bf16.msra.mxu1 %v4735_v30 }
 0x886   :  { %2013 = vmatprep.subr.bf16.mxu0 %v4743_v49  ;;  %3282 = vmatprep.subr.bf16.mxu1 %v5244_v59 }
 0x889   :  { %2014 = vmatpush1.bf16.msra.mxu0 %v4749_v37  ;;  %3283 = vmatpush3.bf16.msra.mxu1 %v4754_v16 }
 0x88a   :  { %2015 = vmatprep.subr.bf16.mxu0 %v4765_v19  ;;  %3284 = vmatprep.subr.bf16.mxu1 %v5244_v59 }
 0x88d   :  { %2016 = vmatpush1.bf16.msra.mxu0 %v4777_v6  ;;  %3285 = vmatpush3.bf16.msra.mxu1 %v4782_v23 }
 0x88e   :  { %2017 = vmatprep.subr.bf16.mxu0 %v4790_v58  ;;  %3286 = vmatprep.subr.bf16.mxu1 %v5244_v59 }
 0x891   :  { %2018 = vmatpush1.bf16.msra.mxu0 %v4796_v29  ;;  %3287 = vmatpush3.bf16.msra.mxu1 %v4801_v60 }
 0x892   :  { %2019 = vmatprep.subr.bf16.mxu0 %v4810_v61  ;;  %3288 = vmatprep.subr.bf16.mxu1 %v5244_v59 }
 0x895   :  { %2020 = vmatpush1.bf16.msra.mxu0 %v4817_v62  ;;  %3289 = vmatpush3.bf16.msra.mxu1 %v4822_v63 }
 0x896   :  { %2109 = vmatprep.subr.bf16.mxu0 %v4658_v48  ;;  %3294 = vmatprep.subr.bf16.mxu1 %v5244_v59 }
 0x94b   :  { %v1929_v31 = vpop.f32.mrb[44].mxu0  ;;  %v1970_v57 = vpop.f32.mrb[68].mxu1 }
 0x94c   :  { %v1976_v26 = vadd.f32 %v1929_v31, %v1681_v21  ;;  %v1931_v28 = vpop.f32.mrb[45].mxu0  ;;  %v3272_v44 = vpop.f32.mrb[69].mxu1  ;;  %v1996_v0 = vadd.f32 %v4926_v3, %v1970_v57  ;;  %v1744_v21 = vadd.f32 %v1743_v33, %v4886_v50 }
 0x94d   :  { %v1983_v40 = vadd.f32 %v1931_v28, %v1683_v22  ;;  %v1933_v46 = vpop.f32.mrb[46].mxu0  ;;  %v1973_v41 = vpop.f32.mrb[70].mxu1 }
 0x94e   :  { %v2860_v8 = vmul.f32 -1.442695, %v1976_v26  ;;  %v1934_v51 = vpop.f32.mrb[47].mxu0  ;;  %v3273_v38 = vpop.f32.mrb[71].mxu1 }
 0x94f   :  { %v2861_v20 = vmul.f32 -1.442695, %v1983_v40 }
 0x950   :  { %3624 = vpow2.f32 %v2860_v8 }
 0x951   :  { %3626 = vpow2.f32 %v2861_v20 }
 0x95a   :  { %v3625_v24 = vpop.eup %3624 }
 0x95b   :  { %v1980_v5 = vadd.f32 1.0, %v3625_v24  ;;  %v3627_v13 = vpop.eup %3626 }
 0x95c   :  { %v1987_v36 = vadd.f32 1.0, %v3627_v13 }
 0x95d   :  { %3628 = vrcp.f32 %v1980_v5 }
 0x95e   :  { %3630 = vrcp.f32 %v1987_v36 }
 0x967   :  { %v3629_v2 = vpop.eup %3628 }
 0x968   :  { %v1997_v22 = vmul.f32 %v3629_v2, %v1996_v0  ;;  %v3631_v20 = vpop.eup %3630 }
 0x969   :  { %v2000_v26 = vsub.f32 1.0, %v3631_v20  ;;  %v2002_v40 = vmul.f32 %v3631_v20, %v4838_v45 }
 0x96a   :  { %v1998_v31 = vadd.f32 %v1997_v22, %v1744_v21 }
 0x96c   :  { %3632 = vtanh.f32 %v1998_v31 }
 0x976   :  { %v3633_v28 = vpop.eup %3632 }
 0x977   :  { %v2001_v44 = vmul.f32 %v3633_v28, %v2000_v26 }
 0x979   :  { %v4931_v46 = vadd.f32 %v2002_v40, %v2001_v44 }
 0x97b   :  { %v2004_v41 = vpack.c.bf16 %v4931_v46, %v4931_v46 }
 0x97d   :  { %2038 = vmatmul.mubr.bf16.vlgmr.msra.gmra.mrb[48].mxu0 %v2004_v41  ;;  %3291 = vmatmul.mubr.bf16.vlgmr.msra.gmra.mrb[72].mxu1 %v2004_v41 }
 0x97e   :  { %2110 = vmatpush1.bf16.msra.mxu0 %v4664_v1  ;;  %3295 = vmatpush3.bf16.msra.mxu1 %v4671_v12 }
 0x97f   :  { %2111 = vmatprep.subr.bf16.mxu0 %v4680_v9  ;;  %3296 = vmatprep.subr.bf16.mxu1 %v5244_v59 }
 0x980   :  { %2141 = vmatprep.mubr.bf16.mxu0 %v5245_v10  ;;  %3310 = vmatprep.mubr.msk.bf16.mxu1 %vm3735_vm4, %v5244_v59 }
 0x982   :  { %2112 = vmatpush1.bf16.msra.mxu0 %v4686_v54  ;;  %3297 = vmatpush3.bf16.msra.mxu1 %v4691_v43 }
 0x983   :  { %2113 = vmatprep.subr.bf16.mxu0 %v4699_v27  ;;  %3298 = vmatprep.subr.bf16.mxu1 %v5244_v59 }
 0x986   :  { %2114 = vmatpush1.bf16.msra.mxu0 %v4705_v39  ;;  %3299 = vmatpush3.bf16.msra.mxu1 %v4710_v56 }
 0x987   :  { %2115 = vmatprep.subr.bf16.mxu0 %v4718_v7  ;;  %3300 = vmatprep.subr.bf16.mxu1 %v5244_v59 }
 0x98a   :  { %2116 = vmatpush1.bf16.msra.mxu0 %v4730_v53  ;;  %3301 = vmatpush3.bf16.msra.mxu1 %v4735_v30 }
 0x98b   :  { %2117 = vmatprep.subr.bf16.mxu0 %v4743_v49  ;;  %3302 = vmatprep.subr.bf16.mxu1 %v5244_v59 }
 0x98e   :  { %2118 = vmatpush1.bf16.msra.mxu0 %v4749_v37  ;;  %3303 = vmatpush3.bf16.msra.mxu1 %v4754_v16 }
 0x98f   :  { %2119 = vmatprep.subr.bf16.mxu0 %v4765_v19  ;;  %3304 = vmatprep.subr.bf16.mxu1 %v5244_v59 }
 0x992   :  { %2120 = vmatpush1.bf16.msra.mxu0 %v4777_v6  ;;  %3305 = vmatpush3.bf16.msra.mxu1 %v4782_v23 }
 0x993   :  { %2121 = vmatprep.subr.bf16.mxu0 %v4790_v58  ;;  %3306 = vmatprep.subr.bf16.mxu1 %v5244_v59 }
 0x996   :  { %2122 = vmatpush1.bf16.msra.mxu0 %v4796_v29  ;;  %3307 = vmatpush3.bf16.msra.mxu1 %v4801_v60 }
 0x997   :  { %2123 = vmatprep.subr.bf16.mxu0 %v4810_v61  ;;  %3308 = vmatprep.subr.bf16.mxu1 %v5244_v59 }
 0x99a   :  { %2124 = vmatpush1.bf16.msra.mxu0 %v4817_v62  ;;  %3309 = vmatpush3.bf16.msra.mxu1 %v4822_v63 }
 0x99b   :  { %2213 = vmatprep.subr.bf16.mxu0 %v4658_v48  ;;  %3314 = vmatprep.subr.bf16.mxu1 %v5244_v59 }
 0xa50   :  { %v2039_v45 = vpop.f32.mrb[48].mxu0  ;;  %v2080_v50 = vpop.f32.mrb[72].mxu1 }
 0xa51   :  { %v2086_v33 = vadd.f32 %v2039_v45, %v4888_v11  ;;  %v2041_v57 = vpop.f32.mrb[49].mxu0  ;;  %v3292_v8 = vpop.f32.mrb[73].mxu1  ;;  %v2100_v20 = vadd.f32 %v4926_v3, %v2080_v50 }
 0xa52   :  { %v2093_v51 = vadd.f32 %v2041_v57, %v4890_v17  ;;  %v2043_v38 = vpop.f32.mrb[50].mxu0  ;;  %v2083_v24 = vpop.f32.mrb[74].mxu1 }
 0xa53   :  { %v2863_v5 = vmul.f32 -1.442695, %v2086_v33  ;;  %v2044_v13 = vpop.f32.mrb[51].mxu0  ;;  %v3293_v36 = vpop.f32.mrb[75].mxu1 }
 0xa54   :  { %v2864_v0 = vmul.f32 -1.442695, %v2093_v51 }
 0xa55   :  { %3634 = vpow2.f32 %v2863_v5 }
 0xa56   :  { %3636 = vpow2.f32 %v2864_v0 }
 0xa5f   :  { %v3635_v2 = vpop.eup %3634 }
 0xa60   :  { %v2090_v21 = vadd.f32 1.0, %v3635_v2  ;;  %v3637_v22 = vpop.eup %3636 }
 0xa61   :  { %v2097_v31 = vadd.f32 1.0, %v3637_v22 }
 0xa62   :  { %3638 = vrcp.f32 %v2090_v21 }
 0xa63   :  { %3640 = vrcp.f32 %v2097_v31 }
 0xa6c   :  { %v3639_v11 = vpop.eup %3638 }
 0xa6d   :  { %v2101_v26 = vmul.f32 %v3639_v11, %v2100_v20  ;;  %v3641_v28 = vpop.eup %3640 }
 0xa6e   :  { %v2104_v44 = vsub.f32 1.0, %v3641_v28  ;;  %v2106_v45 = vmul.f32 %v3641_v28, %v4931_v46 }
 0xa6f   :  { %v2102_v17 = vadd.f32 %v2101_v26, %v4893_v4 }
 0xa71   :  { %3642 = vtanh.f32 %v2102_v17 }
 0xa7b   :  { %v3643_v40 = vpop.eup %3642 }
 0xa7c   :  { %v2105_v41 = vmul.f32 %v3643_v40, %v2104_v44 }
 0xa7e   :  { %v4975_v33 = vadd.f32 %v2106_v45, %v2105_v41 }
 0xa80   :  { %v2108_v57 = vpack.c.bf16 %v4975_v33, %v4975_v33 }
 0xa82   :  { %2142 = vmatmul.mubr.bf16.vlgmr.msra.gmra.mrb[52].mxu0 %v2108_v57  ;;  %3311 = vmatmul.mubr.bf16.vlgmr.msra.gmra.mrb[76].mxu1 %v2108_v57 }
 0xa83   :  { %2214 = vmatpush1.bf16.msra.mxu0 %v4664_v1  ;;  %3315 = vmatpush3.bf16.msra.mxu1 %v4671_v12 }
 0xa84   :  { %2215 = vmatprep.subr.bf16.mxu0 %v4680_v9  ;;  %3316 = vmatprep.subr.bf16.mxu1 %v5244_v59 }
 0xa85   :  { %2245 = vmatprep.mubr.bf16.mxu0 %v5245_v10  ;;  %3330 = vmatprep.mubr.msk.bf16.mxu1 %vm3735_vm4, %v5244_v59 }
 0xa87   :  { %2216 = vmatpush1.bf16.msra.mxu0 %v4686_v54  ;;  %3317 = vmatpush3.bf16.msra.mxu1 %v4691_v43 }
 0xa88   :  { %2217 = vmatprep.subr.bf16.mxu0 %v4699_v27  ;;  %3318 = vmatprep.subr.bf16.mxu1 %v5244_v59 }
 0xa8b   :  { %2218 = vmatpush1.bf16.msra.mxu0 %v4705_v39  ;;  %3319 = vmatpush3.bf16.msra.mxu1 %v4710_v56 }
 0xa8c   :  { %2219 = vmatprep.subr.bf16.mxu0 %v4718_v7  ;;  %3320 = vmatprep.subr.bf16.mxu1 %v5244_v59 }
 0xa8f   :  { %2220 = vmatpush1.bf16.msra.mxu0 %v4730_v53  ;;  %3321 = vmatpush3.bf16.msra.mxu1 %v4735_v30 }
 0xa90   :  { %2221 = vmatprep.subr.bf16.mxu0 %v4743_v49  ;;  %3322 = vmatprep.subr.bf16.mxu1 %v5244_v59 }
 0xa93   :  { %2222 = vmatpush1.bf16.msra.mxu0 %v4749_v37  ;;  %3323 = vmatpush3.bf16.msra.mxu1 %v4754_v16 }
 0xa94   :  { %2223 = vmatprep.subr.bf16.mxu0 %v4765_v19  ;;  %3324 = vmatprep.subr.bf16.mxu1 %v5244_v59 }
 0xa97   :  { %2224 = vmatpush1.bf16.msra.mxu0 %v4777_v6  ;;  %3325 = vmatpush3.bf16.msra.mxu1 %v4782_v23 }
 0xa98   :  { %2225 = vmatprep.subr.bf16.mxu0 %v4790_v58  ;;  %3326 = vmatprep.subr.bf16.mxu1 %v5244_v59 }
 0xa9b   :  { %2226 = vmatpush1.bf16.msra.mxu0 %v4796_v29  ;;  %3327 = vmatpush3.bf16.msra.mxu1 %v4801_v60 }
 0xa9c   :  { %2227 = vmatprep.subr.bf16.mxu0 %v4810_v61  ;;  %3328 = vmatprep.subr.bf16.mxu1 %v5244_v59 }
 0xa9f   :  { %2228 = vmatpush1.bf16.msra.mxu0 %v4817_v62  ;;  %3329 = vmatpush3.bf16.msra.mxu1 %v4822_v63 }
 0xaa0   :  { %2317 = vmatprep.subr.bf16.mxu0 %v4658_v48  ;;  %3334 = vmatprep.subr.bf16.mxu1 %v5244_v59 }
 0xb55   :  { %v2143_v4 = vpop.f32.mrb[52].mxu0  ;;  %v2184_v50 = vpop.f32.mrb[76].mxu1 }
 0xb56   :  { %v2190_v8 = vadd.f32 %v2143_v4, %v4895_v55  ;;  %v2145_v51 = vpop.f32.mrb[53].mxu0  ;;  %v3312_v38 = vpop.f32.mrb[77].mxu1  ;;  %v2204_v26 = vadd.f32 %v4926_v3, %v2184_v50 }
 0xb57   :  { %v2197_v24 = vadd.f32 %v2145_v51, %v4900_v25  ;;  %v2147_v5 = vpop.f32.mrb[54].mxu0  ;;  %v2187_v13 = vpop.f32.mrb[78].mxu1 }
 0xb58   :  { %v2865_v36 = vmul.f32 -1.442695, %v2190_v8  ;;  %v2148_v0 = vpop.f32.mrb[55].mxu0  ;;  %v3313_v2 = vpop.f32.mrb[79].mxu1 }
 0xb59   :  { %v2866_v21 = vmul.f32 -1.442695, %v2197_v24 }
 0xb5a   :  { %3644 = vpow2.f32 %v2865_v36 }
 0xb5b   :  { %3646 = vpow2.f32 %v2866_v21 }
 0xb64   :  { %v3645_v22 = vpop.eup %3644 }
 0xb65   :  { %v2194_v31 = vadd.f32 1.0, %v3645_v22  ;;  %v3647_v20 = vpop.eup %3646 }
 0xb66   :  { %v2201_v11 = vadd.f32 1.0, %v3647_v20 }
 0xb67   :  { %3648 = vrcp.f32 %v2194_v31 }
 0xb68   :  { %3650 = vrcp.f32 %v2201_v11 }
 0xb71   :  { %v3649_v55 = vpop.eup %3648 }
 0xb72   :  { %v2205_v17 = vmul.f32 %v3649_v55, %v2204_v26  ;;  %v3651_v28 = vpop.eup %3650 }
 0xb73   :  { %v2208_v44 = vsub.f32 1.0, %v3651_v28  ;;  %v2210_v45 = vmul.f32 %v3651_v28, %v4975_v33 }
 0xb74   :  { %v2206_v25 = vadd.f32 %v2205_v17, %v4898_v34 }
 0xb76   :  { %3652 = vtanh.f32 %v2206_v25 }
 0xb80   :  { %v3653_v40 = vpop.eup %3652 }
 0xb81   :  { %v2209_v41 = vmul.f32 %v3653_v40, %v2208_v44 }
 0xb83   :  { %v5019_v57 = vadd.f32 %v2210_v45, %v2209_v41 }
 0xb85   :  { %v2212_v4 = vpack.c.bf16 %v5019_v57, %v5019_v57 }
 0xb87   :  { %2246 = vmatmul.mubr.bf16.vlgmr.msra.gmra.mrb[56].mxu0 %v2212_v4  ;;  %3331 = vmatmul.mubr.bf16.vlgmr.msra.gmra.mrb[80].mxu1 %v2212_v4  ;;  %v3538_v4 = vld [vmem:[%s5228_s11 + $0x10] sm:$0xff]  }
 0xb88   :  { %2318 = vmatpush1.bf16.msra.mxu0 %v4664_v1  ;;  %3335 = vmatpush3.bf16.msra.mxu1 %v4671_v12 }
 0xb89   :  { %2319 = vmatprep.subr.bf16.mxu0 %v4680_v9  ;;  %3336 = vmatprep.subr.bf16.mxu1 %v5244_v59 }
 0xb8a   :  { %2349 = vmatprep.mubr.bf16.mxu0 %v5245_v10  ;;  %3350 = vmatprep.mubr.msk.bf16.mxu1 %vm3735_vm4, %v5244_v59 }
 0xb8c   :  { %2320 = vmatpush1.bf16.msra.mxu0 %v4686_v54  ;;  %3337 = vmatpush3.bf16.msra.mxu1 %v4691_v43 }
 0xb8d   :  { %2321 = vmatprep.subr.bf16.mxu0 %v4699_v27  ;;  %3338 = vmatprep.subr.bf16.mxu1 %v5244_v59 }
 0xb90   :  { %2322 = vmatpush1.bf16.msra.mxu0 %v4705_v39  ;;  %3339 = vmatpush3.bf16.msra.mxu1 %v4710_v56 }
 0xb91   :  { %2323 = vmatprep.subr.bf16.mxu0 %v4718_v7  ;;  %3340 = vmatprep.subr.bf16.mxu1 %v5244_v59 }
 0xb94   :  { %2324 = vmatpush1.bf16.msra.mxu0 %v4730_v53  ;;  %3341 = vmatpush3.bf16.msra.mxu1 %v4735_v30 }
 0xb95   :  { %2325 = vmatprep.subr.bf16.mxu0 %v4743_v49  ;;  %3342 = vmatprep.subr.bf16.mxu1 %v5244_v59 }
 0xb98   :  { %2326 = vmatpush1.bf16.msra.mxu0 %v4749_v37  ;;  %3343 = vmatpush3.bf16.msra.mxu1 %v4754_v16 }
 0xb99   :  { %2327 = vmatprep.subr.bf16.mxu0 %v4765_v19  ;;  %3344 = vmatprep.subr.bf16.mxu1 %v5244_v59 }
 0xb9c   :  { %2328 = vmatpush1.bf16.msra.mxu0 %v4777_v6  ;;  %3345 = vmatpush3.bf16.msra.mxu1 %v4782_v23 }
 0xb9d   :  { %2329 = vmatprep.subr.bf16.mxu0 %v4790_v58  ;;  %3346 = vmatprep.subr.bf16.mxu1 %v5244_v59 }
 0xba0   :  { %2330 = vmatpush1.bf16.msra.mxu0 %v4796_v29  ;;  %3347 = vmatpush3.bf16.msra.mxu1 %v4801_v60 }
 0xba1   :  { %2331 = vmatprep.subr.bf16.mxu0 %v4810_v61  ;;  %3348 = vmatprep.subr.bf16.mxu1 %v5244_v59 }
 0xba4   :  { %2332 = vmatpush1.bf16.msra.mxu0 %v4817_v62  ;;  %3349 = vmatpush3.bf16.msra.mxu1 %v4822_v63 }
 0xba5   :  { %2421 = vmatprep.subr.bf16.mxu0 %v4658_v48  ;;  %3354 = vmatprep.subr.bf16.mxu1 %v5244_v59 }
 0xc5a   :  { %v2247_v34 = vpop.f32.mrb[56].mxu0  ;;  %v2288_v50 = vpop.f32.mrb[80].mxu1 }
 0xc5b   :  { %v2294_v8 = vadd.f32 %v2247_v34, %v4902_v35  ;;  %v2249_v51 = vpop.f32.mrb[57].mxu0  ;;  %v3332_v38 = vpop.f32.mrb[81].mxu1  ;;  %v2308_v11 = vadd.f32 %v4926_v3, %v2288_v50  ;;  %v3539_v34 = vld [vmem:[%s5228_s11 + $0x18] sm:$0xff]   ;;  %v3540_v50 = vld [vmem:[%s5228_s11 + $0x20] sm:$0xff]  }
 0xc5c   :  { %v2301_v24 = vadd.f32 %v2249_v51, %v4907_v32  ;;  %v2251_v5 = vpop.f32.mrb[58].mxu0  ;;  %v2291_v13 = vpop.f32.mrb[82].mxu1  ;;  %v3542_v51 = vld [vmem:[%s5228_s11 + $0x30] sm:$0xff]   ;;  %v3543_v38 = vld [vmem:[%s5228_s11 + $0x38] sm:$0xff]  }
 0xc5d   :  { %v2867_v36 = vmul.f32 -1.442695, %v2294_v8  ;;  %v2252_v0 = vpop.f32.mrb[59].mxu0  ;;  %v3333_v2 = vpop.f32.mrb[83].mxu1  ;;  %v3541_v8 = vld [vmem:[%s5228_s11 + $0x28] sm:$0xff]  }
 0xc5e   :  { %v2868_v21 = vmul.f32 -1.442695, %v2301_v24  ;;  %v2528_v24 = vpack.c.bf16 %v4975_v33, %v4931_v46  ;;  %v5253_v0 = vld [vmem:[#allocation3_spill] sm:$0xff] }
 0xc5f   :  { %3654 = vpow2.f32 %v2867_v36 }
 0xc60   :  { %3656 = vpow2.f32 %v2868_v21 }
 0xc69   :  { %v3655_v22 = vpop.eup %3654 }
 0xc6a   :  { %v2298_v48 = vadd.f32 1.0, %v3655_v22  ;;  %v3657_v31 = vpop.eup %3656 }
 0xc6b   :  { %v2305_v20 = vadd.f32 1.0, %v3657_v31 }
 0xc6c   :  { %3658 = vrcp.f32 %v2298_v48 }
 0xc6d   :  { %3660 = vrcp.f32 %v2305_v20 }
 0xc76   :  { %v3659_v35 = vpop.eup %3658 }
 0xc77   :  { %v2309_v26 = vmul.f32 %v3659_v35, %v2308_v11  ;;  %v3661_v55 = vpop.eup %3660 }
 0xc78   :  { %v2312_v17 = vsub.f32 1.0, %v3661_v55  ;;  %v2314_v44 = vmul.f32 %v3661_v55, %v5019_v57  ;;  %v5254_v55 = vlaneseq }
 0xc79   :  { %v2310_v32 = vadd.f32 %v2309_v26, %v4905_v15 }
 0xc7b   :  { %3662 = vtanh.f32 %v2310_v32 }
 0xc85   :  { %v3663_v25 = vpop.eup %3662 }
 0xc86   :  { %v2313_v28 = vmul.f32 %v3663_v25, %v2312_v17  ;;  %v2525_v17 = vand.u32 127, %v5254_v55 }
 0xc88   :  { %v5063_v40 = vadd.f32 %v2314_v44, %v2313_v28  ;;  %vm2526_vm2 = vcmp.lt.s32.totalorder %v2525_v17, 41 }
 0xc8a   :  { %v2316_v41 = vpack.c.bf16 %v5063_v40, %v5063_v40  ;;  %v2529_v5 = vpack.c.bf16 %v5063_v40, %v5019_v57 }
 0xc8c   :  { %2350 = vmatmul.mubr.bf16.vlgmr.msra.gmra.mrb[60].mxu0 %v2316_v41  ;;  %3351 = vmatmul.mubr.bf16.vlgmr.msra.gmra.mrb[84].mxu1 %v2316_v41  ;;  %v3736_v41 = vmov -1e+30  }
 0xc8d   :  { %2422 = vmatpush1.bf16.msra.mxu0 %v4664_v1  ;;  %3355 = vmatpush3.bf16.msra.mxu1 %v4671_v12 }
 0xc8e   :  { %2423 = vmatprep.subr.bf16.mxu0 %v4680_v9  ;;  %3356 = vmatprep.subr.bf16.mxu1 %v5244_v59 }
 0xc8f   :  { %2453 = vmatprep.mubr.bf16.mxu0 %v5245_v10  ;;  %3370 = vmatprep.mubr.msk.bf16.mxu1 %vm3735_vm4, %v5244_v59 }
 0xc91   :  { %2424 = vmatpush1.bf16.msra.mxu0 %v4686_v54  ;;  %3357 = vmatpush3.bf16.msra.mxu1 %v4691_v43 }
 0xc92   :  { %2425 = vmatprep.subr.bf16.mxu0 %v4699_v27  ;;  %3358 = vmatprep.subr.bf16.mxu1 %v5244_v59 }
 0xc95   :  { %2426 = vmatpush1.bf16.msra.mxu0 %v4705_v39  ;;  %3359 = vmatpush3.bf16.msra.mxu1 %v4710_v56 }
 0xc96   :  { %2427 = vmatprep.subr.bf16.mxu0 %v4718_v7  ;;  %3360 = vmatprep.subr.bf16.mxu1 %v5244_v59 }
 0xc99   :  { %2428 = vmatpush1.bf16.msra.mxu0 %v4730_v53  ;;  %3361 = vmatpush3.bf16.msra.mxu1 %v4735_v30 }
 0xc9a   :  { %2429 = vmatprep.subr.bf16.mxu0 %v4743_v49  ;;  %3362 = vmatprep.subr.bf16.mxu1 %v5244_v59 }
 0xc9d   :  { %2430 = vmatpush1.bf16.msra.mxu0 %v4749_v37  ;;  %3363 = vmatpush3.bf16.msra.mxu1 %v4754_v16 }
 0xc9e   :  { %2431 = vmatprep.subr.bf16.mxu0 %v4765_v19  ;;  %3364 = vmatprep.subr.bf16.mxu1 %v5244_v59 }
 0xca1   :  { %2432 = vmatpush1.bf16.msra.mxu0 %v4777_v6  ;;  %3365 = vmatpush3.bf16.msra.mxu1 %v4782_v23 }
 0xca2   :  { %2433 = vmatprep.subr.bf16.mxu0 %v4790_v58  ;;  %3366 = vmatprep.subr.bf16.mxu1 %v5244_v59 }
 0xca5   :  { %2434 = vmatpush1.bf16.msra.mxu0 %v4796_v29  ;;  %3367 = vmatpush3.bf16.msra.mxu1 %v4801_v60 }
 0xca6   :  { %2435 = vmatprep.subr.bf16.mxu0 %v4810_v61  ;;  %3368 = vmatprep.subr.bf16.mxu1 %v5244_v59 }
 0xca9   :  { %2436 = vmatpush1.bf16.msra.mxu0 %v4817_v62  ;;  %3369 = vmatpush3.bf16.msra.mxu1 %v4822_v63 }
 0xcaa   :  { %3374 = vmatprep.subr.bf16.mxu0 %v5244_v59 }
 0xd5f   :  { %v2351_v10 = vpop.f32.mrb[60].mxu0  ;;  %v2392_v1 = vpop.f32.mrb[84].mxu1 }
 0xd60   :  { %v2398_v12 = vadd.f32 %v2351_v10, %v4909_v52  ;;  %v2353_v9 = vpop.f32.mrb[61].mxu0  ;;  %v3352_v54 = vpop.f32.mrb[85].mxu1  ;;  %v2412_v6 = vadd.f32 %v4926_v3, %v2392_v1  ;;  %v2527_v10 = vsel %vm2526_vm2, 0.0, %v3736_v41 }
 0xd61   :  { %v2405_v43 = vadd.f32 %v2353_v9, %v4914_v47  ;;  %v2355_v27 = vpop.f32.mrb[62].mxu0  ;;  %v2395_v39 = vpop.f32.mrb[86].mxu1  ;;  %v3536_v47 = vld [vmem:[%s5228_s11] sm:$0xff]  }
 0xd62   :  { %v2869_v56 = vmul.f32 -1.442695, %v2398_v12  ;;  %v2356_v7 = vpop.f32.mrb[63].mxu0  ;;  %v3353_v53 = vpop.f32.mrb[87].mxu1 }
 0xd63   :  { %v2870_v30 = vmul.f32 -1.442695, %v2405_v43 }
 0xd64   :  { %3664 = vpow2.f32 %v2869_v56 }
 0xd65   :  { %3666 = vpow2.f32 %v2870_v30 }
 0xd6e   :  { %v3665_v49 = vpop.eup %3664 }
 0xd6f   :  { %v2402_v37 = vadd.f32 1.0, %v3665_v49  ;;  %v3667_v16 = vpop.eup %3666 }
 0xd70   :  { %v2409_v19 = vadd.f32 1.0, %v3667_v16 }
 0xd71   :  { %3668 = vrcp.f32 %v2402_v37 }
 0xd72   :  { %3670 = vrcp.f32 %v2409_v19 }
 0xd7b   :  { %v3669_v23 = vpop.eup %3668 }
 0xd7c   :  { %v2413_v58 = vmul.f32 %v3669_v23, %v2412_v6  ;;  %v3671_v60 = vpop.eup %3670 }
 0xd7d   :  { %v2416_v61 = vsub.f32 1.0, %v3671_v60  ;;  %v2418_v15 = vmul.f32 %v3671_v60, %v5063_v40 }
 0xd7e   :  { %v2414_v29 = vadd.f32 %v2413_v58, %v4912_v42  ;;  %v3537_v42 = vld [vmem:[%s5228_s11 + $0x8] sm:$0xff]  }
 0xd80   :  { %3672 = vtanh.f32 %v2414_v29 }
 0xd8a   :  { %v3673_v62 = vpop.eup %3672 }
 0xd8b   :  { %v2417_v63 = vmul.f32 %v3673_v62, %v2416_v61 }
 0xd8d   :  { %v5106_v52 = vadd.f32 %v2418_v15, %v2417_v63 }
 0xd8f   :  { %v2420_v45 = vpack.c.bf16 %v5106_v52, %v5106_v52 }
 0xd91   :  { %2454 = vmatmul.mubr.bf16.vlgmr.msra.gmra.mrb[64].mxu0 %v2420_v45  ;;  %3371 = vmatmul.mubr.bf16.vlgmr.msra.gmra.mrb[88].mxu1 %v2420_v45 }
 0xd92   :  { %3375 = vmatpush3.bf16.msra.mxu0 %v3536_v47  ;;  %3390 = vmatprep.mubr.msk.bf16.mxu0 %vm3735_vm4, %v5244_v59 }
 0xd93   :  { %3376 = vmatprep.subr.bf16.mxu0 %v5244_v59 }
 0xd96   :  { %3377 = vmatpush3.bf16.msra.mxu0 %v3537_v42 }
 0xd97   :  { %3378 = vmatprep.subr.bf16.mxu0 %v5244_v59 }
 0xd9a   :  { %3379 = vmatpush3.bf16.msra.mxu0 %v3538_v4 }
 0xd9b   :  { %3380 = vmatprep.subr.bf16.mxu0 %v5244_v59 }
 0xd9e   :  { %3381 = vmatpush3.bf16.msra.mxu0 %v3539_v34 }
 0xd9f   :  { %3382 = vmatprep.subr.bf16.mxu0 %v5244_v59 }
 0xda2   :  { %3383 = vmatpush3.bf16.msra.mxu0 %v3540_v50 }
 0xda3   :  { %3384 = vmatprep.subr.bf16.mxu0 %v5244_v59 }
 0xda6   :  { %3385 = vmatpush3.bf16.msra.mxu0 %v3541_v8 }
 0xda7   :  { %3386 = vmatprep.subr.bf16.mxu0 %v5244_v59 }
 0xdaa   :  { %3387 = vmatpush3.bf16.msra.mxu0 %v3542_v51 }
 0xdab   :  { %3388 = vmatprep.subr.bf16.mxu0 %v5244_v59 }
 0xdae   :  { %3389 = vmatpush3.bf16.msra.mxu0 %v3543_v38 }
 0xdb1   :  { %3391 = vmatmul.mubr.bf16.vlgmr.msra.gmra.mrb[68].mxu0 %v2528_v24 }
 0xdb2   :  { %3394 = vmatprep.mubr.msk.bf16.mxu0 %vm3735_vm4, %v5244_v59 }
 0xdb9   :  { %3395 = vmatmul.mubr.bf16.gmra.mrb[72].mxu0 %v2529_v5 }
 0xdba   :  { %3398 = vmatprep.mubr.msk.bf16.mxu0 %vm3735_vm4, %v5244_v59 }
 0xe64   :  { %v2455_v13 = vpop.f32.mrb[64].mxu0  ;;  %v2496_v36 = vpop.f32.mrb[88].mxu1 }
 0xe65   :  { %v2502_v2 = vadd.f32 %v2455_v13, %v5253_v0  ;;  %v2457_v21 = vpop.f32.mrb[65].mxu0  ;;  %v3372_v22 = vpop.f32.mrb[89].mxu1  ;;  %v2516_v25 = vadd.f32 %v4926_v3, %v2496_v36 }
 0xe66   :  { %v2509_v48 = vadd.f32 %v2457_v21, %v4921_v18  ;;  %v2459_v46 = vpop.f32.mrb[66].mxu0  ;;  %v2499_v33 = vpop.f32.mrb[90].mxu1  ;;  %v2873_v18 = vld [vmem:[%s5229_s12] ss:$0 sm:$0xff] }
 0xe67   :  { %v2871_v31 = vmul.f32 -1.442695, %v2502_v2  ;;  %v2460_v20 = vpop.f32.mrb[67].mxu0  ;;  %v3373_v11 = vpop.f32.mrb[91].mxu1 }
 0xe68   :  { %v2872_v35 = vmul.f32 -1.442695, %v2509_v48 }
 0xe69   :  { %3674 = vpow2.f32 %v2871_v31 }
 0xe6a   :  { %3676 = vpow2.f32 %v2872_v35 }
 0xe73   :  { %v3675_v57 = vpop.eup %3674 }
 0xe74   :  { %v2506_v26 = vadd.f32 1.0, %v3675_v57  ;;  %v3677_v59 = vpop.eup %3676 }
 0xe75   :  { %v2513_v32 = vadd.f32 1.0, %v3677_v59 }
 0xe76   :  { %3678 = vrcp.f32 %v2506_v26 }
 0xe77   :  { %3680 = vrcp.f32 %v2513_v32 }
 0xe80   :  { %v3679_v28 = vpop.eup %3678 }
 0xe81   :  { %v2517_v44 = vmul.f32 %v3679_v28, %v2516_v25  ;;  %v3681_v56 = vpop.eup %3680 }
 0xe82   :  { %v2520_v49 = vsub.f32 1.0, %v3681_v56  ;;  %v2522_v58 = vmul.f32 %v3681_v56, %v5106_v52 }
 0xe83   :  { %v2518_v40 = vadd.f32 %v2517_v44, %v4919_v14 }
 0xe84   :  { %v2636_v1 = vpop.f32.mrb[68].mxu0 }
 0xe85   :  { %3682 = vtanh.f32 %v2518_v40  ;;  %v2637_v12 = vadd.f32 %v2873_v18, %v2636_v1  ;;  %v3392_v9 = vpop.f32.mrb[69].mxu0 }
 0xe86   :  { %v2639_v54 = vpop.f32.mrb[70].mxu0 }
 0xe87   :  { %v5159_v43 = vadd.f32 %v2637_v12, %v2527_v10  ;;  %v2640_v3 = vadd.f32 %v2873_v18, %v2639_v54  ;;  %v3393_v27 = vpop.f32.mrb[71].mxu0 }
 0xe89   :  { %v5161_v39 = vadd.f32 %v2640_v3, %v2527_v10  ;;  %2665 = vmax.xlane.f32.xlu0 %v5159_v43 }
 0xe8b   :  { %2667 = vmax.xlane.f32.xlu1 %v5161_v39 }
 0xe8c   :  { %v2644_v7 = vpop.f32.mrb[72].mxu0 }
 0xe8d   :  { %v2645_v14 = vadd.f32 %v2873_v18, %v2644_v7  ;;  %v3396_v53 = vpop.f32.mrb[73].mxu0 }
 0xe8e   :  { %v2647_v30 = vpop.f32.mrb[74].mxu0 }
 0xe8f   :  { %v3683_v37 = vpop.eup %3682  ;;  %v5165_v16 = vadd.f32 %v2645_v14, %v2527_v10  ;;  %v2648_v19 = vadd.f32 %v2873_v18, %v2647_v30  ;;  %v3397_v6 = vpop.f32.mrb[75].mxu0 }
 0xe90   :  { %v2521_v23 = vmul.f32 %v3683_v37, %v2520_v49 }
 0xe91   :  { %2669 = vmax.xlane.f32.xlu0 %v5165_v16  ;;  %v5169_v60 = vadd.f32 %v2648_v19, %v2527_v10 }
 0xe92   :  { %v2523_v29 = vadd.f32 %v2522_v58, %v2521_v23 }
 0xe94   :  { %v2530_v61 = vpack.c.bf16 %v2523_v29, %v5106_v52 }
 0xe95   :  { %2671 = vmax.xlane.f32.xlu0 %v5169_v60 }
 0xe96   :  { %3399 = vmatmul.mubr.bf16.gmra.mrb[76].mxu0 %v2530_v61 }
 0xf16   :  { %v2666_v62 = vpop.xlane.xlu0 %2665 }
 0xf17   :  { %v2677_v47 = vsub.f32 %v5159_v43, %v2666_v62 }
 0xf18   :  { %v2668_v15 = vpop.xlane.xlu1 %2667 }
 0xf19   :  { %v2678_v45 = vsub.f32 %v5161_v39, %v2668_v15  ;;  %v2683_v4 = vmul.f32 1.442695, %v2677_v47 }
 0xf1b   :  { %v2685_v50 = vmul.f32 1.442695, %v2678_v45  ;;  %3684 = vpow2.f32 %v2683_v4 }
 0xf1d   :  { %3686 = vpow2.f32 %v2685_v50 }
 0xf1e   :  { %v5173_v63 = vpop.xlane.xlu0 %2669 }
 0xf1f   :  { %v2679_v34 = vsub.f32 %v5165_v16, %v5173_v63 }
 0xf21   :  { %v2687_v8 = vmul.f32 1.442695, %v2679_v34 }
 0xf22   :  { %v5177_v42 = vpop.xlane.xlu0 %2671 }
 0xf23   :  { %v2680_v52 = vsub.f32 %v5169_v60, %v5177_v42  ;;  %3688 = vpow2.f32 %v2687_v8 }
 0xf25   :  { %v2689_v51 = vmul.f32 1.442695, %v2680_v52  ;;  %v3685_v22 = vpop.eup %3684 }
 0xf27   :  { %3690 = vpow2.f32 %v2689_v51  ;;  %v3687_v48 = vpop.eup %3686 }
 0xf2d   :  { %v3689_v46 = vpop.eup %3688 }
 0xf31   :  { %v3691_v33 = vpop.eup %3690 }
 0xf69   :  { %v2652_v38 = vpop.f32.mrb[76].mxu0 }
 0xf6a   :  { %v2653_v24 = vadd.f32 %v2873_v18, %v2652_v38  ;;  %v3400_v5 = vpop.f32.mrb[77].mxu0 }
 0xf6b   :  { %v2655_v13 = vpop.f32.mrb[78].mxu0 }
 0xf6c   :  { %v5183_v36 = vadd.f32 %v2653_v24, %v2527_v10  ;;  %v2656_v0 = vadd.f32 %v2873_v18, %v2655_v13  ;;  %v3401_v2 = vpop.f32.mrb[79].mxu0 }
 0xf6e   :  { %v5185_v21 = vadd.f32 %v2656_v0, %v2527_v10  ;;  %2673 = vmax.xlane.f32.xlu1 %v5183_v36 }
 0xf70   :  { %2675 = vmax.xlane.f32.xlu0 %v5185_v21 }
 0xf72   :  { %2695 = vadd.xlane.f32.xlu1 %v3685_v22 }
 0xf74   :  { %2697 = vadd.xlane.f32.xlu0 %v3687_v48 }
 0xf76   :  { %2699 = vadd.xlane.f32.xlu1 %v3689_v46 }
 0xf78   :  { %2701 = vadd.xlane.f32.xlu0 %v3691_v33 }
 0xffb   :  { %v2674_v31 = vpop.xlane.xlu1 %2673 }
 0xffc   :  { %v2681_v20 = vsub.f32 %v5183_v36, %v2674_v31 }
 0xffd   :  { %v2676_v11 = vpop.xlane.xlu0 %2675 }
 0xffe   :  { %v2691_v35 = vmul.f32 1.442695, %v2681_v20  ;;  %v2682_v57 = vsub.f32 %v5185_v21, %v2676_v11 }
 0xfff   :  { %v2696_v26 = vpop.xlane.xlu1 %2695 }
0x1000   :  { %3692 = vpow2.f32 %v2691_v35  ;;  %v2693_v59 = vmul.f32 1.442695, %v2682_v57 }
0x1001   :  { %3694 = vlog2.f32 %v2696_v26  ;;  %v2698_v32 = vpop.xlane.xlu0 %2697 }
0x1002   :  { %3696 = vpow2.f32 %v2693_v59 }
0x1003   :  { %3698 = vlog2.f32 %v2698_v32  ;;  %v2700_v55 = vpop.xlane.xlu1 %2699 }
0x1004   :  { %3700 = vlog2.f32 %v2700_v55 }
0x1005   :  { %v2702_v17 = vpop.xlane.xlu0 %2701 }
0x1006   :  { %3702 = vlog2.f32 %v2702_v17 }
0x100a   :  { %v3693_v25 = vpop.eup %3692 }
0x100b   :  { %v3695_v28 = vpop.eup %3694  ;;  %2703 = vadd.xlane.f32.xlu1 %v3693_v25 }
0x100c   :  { %v3697_v44 = vpop.eup %3696  ;;  %v2708_v18 = vmul.f32 0.6931472, %v3695_v28 }
0x100d   :  { %v3699_v40 = vpop.eup %3698  ;;  %2705 = vadd.xlane.f32.xlu0 %v3697_v44 }
0x100e   :  { %v3701_v41 = vpop.eup %3700  ;;  %v2719_v10 = vadd.f32 %v2708_v18, %v2666_v62  ;;  %v2710_v1 = vmul.f32 0.6931472, %v3699_v40 }
0x100f   :  { %v2712_v12 = vmul.f32 0.6931472, %v3701_v41 }
0x1010   :  { %v3703_v9 = vpop.eup %3702  ;;  %v2725_v54 = vsub.f32 %v5159_v43, %v2719_v10  ;;  %v2720_v3 = vadd.f32 %v2710_v1, %v2668_v15 }
0x1011   :  { %v2721_v27 = vadd.f32 %v2712_v12, %v5173_v63  ;;  %v2714_v56 = vmul.f32 0.6931472, %v3703_v9 }
0x1012   :  { %2731 = vst [vmem:[%s5230_s13] sm:$0xff] %v2725_v54  ;;  %v2726_v7 = vsub.f32 %v5161_v39, %v2720_v3 }
0x1013   :  { %v2727_v14 = vsub.f32 %v5165_v16, %v2721_v27  ;;  %v2722_v53 = vadd.f32 %v2714_v56, %v5177_v42 }
0x1014   :  { %2732 = vst [vmem:[%s5230_s13 + $0x8] sm:$0xff] %v2726_v7 }
0x1015   :  { %2733 = vst [vmem:[%s5230_s13 + $0x10] sm:$0xff] %v2727_v14  ;;  %v2728_v43 = vsub.f32 %v5169_v60, %v2722_v53 }
0x1017   :  { %2734 = vst [vmem:[%s5230_s13 + $0x18] sm:$0xff] %v2728_v43 }
0x1098   :  { %v2704_v30 = vpop.xlane.xlu1 %2703 }
0x1099   :  { %3704 = vlog2.f32 %v2704_v30 }
0x109a   :  { %v2706_v39 = vpop.xlane.xlu0 %2705 }
0x109b   :  { %3706 = vlog2.f32 %v2706_v39 }
0x10a3   :  { %v3705_v49 = vpop.eup %3704 }
0x10a4   :  { %v2716_v37 = vmul.f32 0.6931472, %v3705_v49 }
0x10a5   :  { %v3707_v16 = vpop.eup %3706 }
0x10a6   :  { %v2723_v19 = vadd.f32 %v2716_v37, %v2674_v31  ;;  %v2718_v6 = vmul.f32 0.6931472, %v3707_v16 }
0x10a8   :  { %v2729_v23 = vsub.f32 %v5183_v36, %v2723_v19  ;;  %v2724_v58 = vadd.f32 %v2718_v6, %v2676_v11 }
0x10aa   :  { %2735 = vst [vmem:[%s5230_s13 + $0x20] sm:$0xff] %v2729_v23  ;;  %v2730_v29 = vsub.f32 %v5185_v21, %v2724_v58 }
0x10ac   :  { %2736 = vst [vmem:[%s5230_s13 + $0x28] sm:$0xff] %v2730_v29 }

</bundles_post_ra>
